<compile_context>
chip_gen: v7x
topology: tpu7x:2x2x1
jax: 0.10.0
libtpu: 0.0.40
codegen_flags: <defaults>
</compile_context>

<pallas_src>
import functools

import jax
import jax.numpy as jnp
import numpy as np
from jax.experimental import pallas as pl
from jax.experimental.pallas import tpu as pltpu

C1 = 64   # convc1 output channels
C2 = 64   # convc2 output channels
C3 = 32   # conv   output channels


# ---------------------------------------------------------------------------
# Fused kernel: conv1x1+relu -> conv3x3/s2+relu -> conv3x3/s2+relu (one image)
# ---------------------------------------------------------------------------
def _motion_encoder_kernel(h4, w4,
                           x_ref, w1_ref, b1_ref, w2_ref, b2_ref, w3_ref, b3_ref,
                           o_ref, ph2_ref, ph3_ref):
    # x_ref : (1, cin, H*W) bf16, pixel order (rh, rw, u, v) with h=4u+rh, w=4v+rw
    # w1_ref: (64, cin) bf16 (transposed 1x1 weights)      b1_ref: (64, 1) f32
    # w2_ref: (576, 64) bf16, rows ordered (di, dj, ci)    b2_ref: (1, 64) f32
    # w3_ref: (576, 32) bf16                               b3_ref: (1, 32) f32
    # o_ref : (1, 32, h4*w4) f32 channels-first output
    # ph2_ref: (4, 4, h4+1, w4+1, 64) bf16  padded, 4-way parity-split conv1 out
    # ph3_ref: (2, 2, h4+1, w4+1, 64) bf16  padded, 2-way parity-split conv2 out
    bf16 = jnp.bfloat16

    # --- zero ONLY the padded borders (positions read but never written).
    # Interiors are fully rewritten below every grid step -> megacore-safe.
    for q in range(4):
        ph2_ref[0, q, 0:1, :, :] = jnp.zeros((1, w4 + 1, C1), bf16)   # padded row 0
        ph2_ref[q, 0, :, 0:1, :] = jnp.zeros((h4 + 1, 1, C1), bf16)   # padded col 0
    for q in range(2):
        ph3_ref[0, q, 0:1, :, :] = jnp.zeros((1, w4 + 1, C2), bf16)
        ph3_ref[q, 0, :, 0:1, :] = jnp.zeros((h4 + 1, 1, C2), bf16)

    # ---- stage 1: 1x1 conv + relu (single transposed GEMM over all pixels) --
    x = x_ref[0]                                                     # (cin, H*W) bf16
    y1t = jnp.dot(w1_ref[...], x, preferred_element_type=jnp.float32)  # (64, H*W)
    y1t = jnp.maximum(y1t + b1_ref[...], 0.0)
    y1 = y1t.T.astype(bf16)                                          # (H*W, 64)
    y1r = y1.reshape(4, 4, h4, w4, C1)                               # (rh, rw, u, v, c)

    # scatter the 16 (rh, rw) phases into the padded / parity-split scratch:
    #   padded row R = 4u + rh + 1 -> class (rh+1)%4, offset (rh+1)//4 (cols same)
    for rh in range(4):
        for rw in range(4):
            ph2_ref[(rh + 1) % 4, (rw + 1) % 4,
                    pl.ds((rh + 1) // 4, h4),
                    pl.ds((rw + 1) // 4, w4), :] = y1r[rh, rw]

    # ---- stage 2: 3x3 stride-2 conv + relu ----------------------------------
    # The 4 output parities are stacked along GEMM-M (sublane concat) and the
    # 9 taps are accumulated as K=64 dots (no 576-wide lane concat).
    parities = ((0, 0), (0, 1), (1, 0), (1, 1))
    m2 = 4 * h4 * w4
    acc2 = jnp.zeros((m2, C2), jnp.float32)
    for di in range(3):
        for dj in range(3):
            pieces = []
            for (r, s) in parities:
                a, b = 2 * r + di, 2 * s + dj                 # padded coords R=4u+a
                pieces.append(
                    ph2_ref[a % 4, b % 4,
                            pl.ds(a // 4, h4),
                            pl.ds(b // 4, w4), :].reshape(h4 * w4, C1))
            xt = jnp.concatenate(pieces, axis=0)              # (4*h4*w4, 64) bf16
            t = di * 3 + dj
            acc2 = acc2 + jnp.dot(xt, w2_ref[pl.ds(t * C1, C1), :],
                                  preferred_element_type=jnp.float32)
    y2 = jnp.maximum(acc2 + b2_ref[...], 0.0).astype(bf16)    # (4*h4*w4, 64)
    # split the stacked parities back out and write into the stage-3 scratch:
    #   padded row R3 = 2u + r + 1 -> class (r+1)%2, offset (r+1)//2
    for idx, (r, s) in enumerate(parities):
        ph3_ref[(r + 1) % 2, (s + 1) % 2,
                pl.ds((r + 1) // 2, h4),
                pl.ds((s + 1) // 2, w4), :] = (
            y2[idx * h4 * w4:(idx + 1) * h4 * w4].reshape(h4, w4, C2))

    # ---- stage 3: 3x3 stride-2 conv + relu, nine accumulated K=64 dots ------
    acc3 = jnp.zeros((h4 * w4, C3), jnp.float32)
    for di in range(3):
        for dj in range(3):
            p = ph3_ref[di % 2, dj % 2,
                        pl.ds(di // 2, h4),
                        pl.ds(dj // 2, w4), :].reshape(h4 * w4, C2)
            t = di * 3 + dj
            acc3 = acc3 + jnp.dot(p, w3_ref[pl.ds(t * C2, C2), :],
                                  preferred_element_type=jnp.float32)
    y3 = jnp.maximum(acc3 + b3_ref[...], 0.0)                 # (h4*w4, 32)

    # channels-first store -> NCHW output via a free XLA reshape outside.
    o_ref[0] = y3.T.astype(o_ref.dtype)                       # (32, h4*w4)


# ---------------------------------------------------------------------------
# Wrapper
# ---------------------------------------------------------------------------
@jax.jit
def motion_encoder_forward(corr, w1, b1, w2, b2, w3, b3):
    """corr: (N, cor_planes, H, W) NCHW  ->  (N, 32, H//4, W//4) NCHW."""
    n, cin, h, wd = corr.shape
    # TODO(synk): the parity-split scheme requires H, W divisible by 4; the
    # PyTorch module also handles other sizes via conv padding.
    assert h % 4 == 0 and wd % 4 == 0, "H and W must be multiples of 4"
    h4, w4 = h // 4, wd // 4
    hw = h * wd

    # Channels-first space-to-depth: pixel order (rh, rw, u, v), channels lead,
    # so the kernel's input block is lane-dense over pixels and the 9-channel
    # dim pads only to 16 sublanes.  bf16 halves the input DMA.
    xp = corr.reshape(n, cin, h4, 4, w4, 4)       # (n, c, u, rh, v, rw)
    xp = xp.transpose(0, 1, 3, 5, 2, 4)           # (n, c, rh, rw, u, v)
    xp = xp.reshape(n, cin, hw).astype(jnp.bfloat16)

    w1t = jnp.transpose(w1).astype(jnp.bfloat16)           # (64, cin)
    w2c = w2.reshape(9 * C1, C2).astype(jnp.bfloat16)      # (576, 64), rows=(di,dj,ci)
    w3c = w3.reshape(9 * C2, C3).astype(jnp.bfloat16)      # (576, 32)
    b1c = b1.reshape(C1, 1).astype(jnp.float32)
    b2c = b2.reshape(1, C2).astype(jnp.float32)
    b3c = b3.reshape(1, C3).astype(jnp.float32)

    # Explicit VMEM budget: double-buffered in/out blocks + weights + scratches
    # + generous temporary slack, clamped to a sane range.
    def _pad(v, m):
        return -(-v // m) * m
    inp_b = 2 * _pad(cin, 16) * _pad(hw, 128) * 2
    out_b = 2 * _pad(C3, 8) * _pad(h4 * w4, 128) * 4
    wts_b = 2 * (_pad(C1, 16) * 128 * 2 + _pad(C1, 8) * 128 * 4
                 + _pad(9 * C1, 16) * 128 * 2 + 8 * 128 * 4
                 + _pad(9 * C2, 16) * 128 * 2 + 8 * 128 * 4)
    ph2_b = 16 * (h4 + 1) * _pad(w4 + 1, 16) * 128 * 2
    ph3_b = 4 * (h4 + 1) * _pad(w4 + 1, 16) * 128 * 2
    tmp_b = 8 * C1 * _pad(hw, 128) * 4            # y1t / y1 / acc / concat temps
    vmem_limit = int(max(32 << 20,
                         min(inp_b + out_b + wts_b + ph2_b + ph3_b + tmp_b
                             + (4 << 20), 128 << 20)))

    kernel = functools.partial(_motion_encoder_kernel, h4, w4)

    out = pl.pallas_call(
        kernel,
        out_shape=jax.ShapeDtypeStruct((n, C3, h4 * w4), jnp.float32),
        grid=(n,),
        in_specs=[
            pl.BlockSpec((1, cin, hw), lambda i: (i, 0, 0)),
            pl.BlockSpec((C1, cin), lambda i: (0, 0)),
            pl.BlockSpec((C1, 1), lambda i: (0, 0)),
            pl.BlockSpec((9 * C1, C2), lambda i: (0, 0)),
            pl.BlockSpec((1, C2), lambda i: (0, 0)),
            pl.BlockSpec((9 * C2, C3), lambda i: (0, 0)),
            pl.BlockSpec((1, C3), lambda i: (0, 0)),
        ],
        out_specs=pl.BlockSpec((1, C3, h4 * w4), lambda i: (i, 0, 0)),
        scratch_shapes=[
            pltpu.VMEM((4, 4, h4 + 1, w4 + 1, C1), jnp.bfloat16),
            pltpu.VMEM((2, 2, h4 + 1, w4 + 1, C2), jnp.bfloat16),
        ],
        compiler_params=pltpu.CompilerParams(
            dimension_semantics=("parallel",),
            vmem_limit_bytes=vmem_limit),
    )(xp, w1t, b1c, w2c, b2c, w3c, b3c)

    return out.reshape(n, C3, h4, w4)


# ---------------------------------------------------------------------------
# Pure-JAX reference (correctness sanity check)
# ---------------------------------------------------------------------------
def reference_forward(corr_nchw, w1, b1, w2, b2, w3, b3):
    dn = ("NHWC", "HWIO", "NHWC")
    x = jnp.transpose(corr_nchw, (0, 2, 3, 1))
    y = jax.lax.conv_general_dilated(x, w1.reshape(1, 1, *w1.shape),
                                     (1, 1), "VALID", dimension_numbers=dn)
    y = jax.nn.relu(y + b1.reshape(1, 1, 1, -1))
    y = jax.lax.conv_general_dilated(y, w2, (2, 2), [(1, 1), (1, 1)],
                                     dimension_numbers=dn)
    y = jax.nn.relu(y + b2.reshape(1, 1, 1, -1))
    y = jax.lax.conv_general_dilated(y, w3, (2, 2), [(1, 1), (1, 1)],
                                     dimension_numbers=dn)
    y = jax.nn.relu(y + b3.reshape(1, 1, 1, -1))
    return jnp.transpose(y, (0, 3, 1, 2))


# ---------------------------------------------------------------------------
if __name__ == "__main__":
    # Module config (small): corr_levels=1, corr_radius=1 -> cor_planes = 9
    corr_levels, corr_radius = 1, 1
    cor_planes = corr_levels * (2 * corr_radius + 1) ** 2
    N, H, W = 2, 16, 16

    key = jax.random.PRNGKey(0)
    k1, k2, k3, k4, k5, k6, k7 = jax.random.split(key, 7)

    # Parameters (PyTorch shapes, stored HWIO / IO here):
    #   convc1.weight (64, cor_planes, 1, 1) -> w1 (cor_planes, 64)
    #   convc2.weight (64, 64, 3, 3)         -> w2 (3, 3, 64, 64)
    #   conv.weight   (32, 64, 3, 3)         -> w3 (3, 3, 64, 32)
    w1 = jax.random.normal(k1, (cor_planes, 64), jnp.float32) * 0.1
    b1 = jax.random.normal(k2, (64,), jnp.float32) * 0.1
    w2 = jax.random.normal(k3, (3, 3, 64, 64), jnp.float32) * 0.05
    b2 = jax.random.normal(k4, (64,), jnp.float32) * 0.1
    w3 = jax.random.normal(k5, (3, 3, 64, 32), jnp.float32) * 0.05
    b3 = jax.random.normal(k6, (32,), jnp.float32) * 0.1

    corr = jax.random.normal(k7, (N, cor_planes, H, W), jnp.float32)

    out = motion_encoder_forward(corr, w1, b1, w2, b2, w3, b3)
    out = jax.block_until_ready(out)
    assert out.shape == (N, 32, H // 4, W // 4), out.shape

    ref = jax.block_until_ready(reference_forward(corr, w1, b1, w2, b2, w3, b3))
    # bf16 MXU operands with f32 accumulation -> loosened tolerance vs pure f32.
    np.testing.assert_allclose(np.asarray(out), np.asarray(ref),
                               rtol=2e-2, atol=2e-2)

    print("KERNEL_OK")
</pallas_src>

<mosaic_0001>
module attributes {stable_mosaic.version = 11 : i64} {
  func.func @_motion_encoder_kernel(%arg0: i32, %arg1: memref<1x9x256xbf16, #tpu.memory_space<vmem>>, %arg2: memref<64x9xbf16, #tpu.memory_space<vmem>>, %arg3: memref<64x1xf32, #tpu.memory_space<vmem>>, %arg4: memref<576x64xbf16, #tpu.memory_space<vmem>>, %arg5: memref<1x64xf32, #tpu.memory_space<vmem>>, %arg6: memref<576x32xbf16, #tpu.memory_space<vmem>>, %arg7: memref<1x32xf32, #tpu.memory_space<vmem>>, %arg8: memref<1x32x16xf32, #tpu.memory_space<vmem>>, %arg9: memref<4x4x5x5x64xbf16, #tpu.memory_space<vmem>>, %arg10: memref<2x2x5x5x64xbf16, #tpu.memory_space<vmem>>) attributes {dimension_semantics = [#tpu.dimension_semantics<parallel>], iteration_bounds = array<i64: 2>, scalar_prefetch = 0 : i64, scratch_operands = 2 : i64, tpu.core_type = #tpu.core_type<tc>, window_params = [{transform_indices = @transform_0, window_bounds = array<i64: 1, 9, 256>}, {pipeline_mode = #tpu.pipeline_mode<synchronous>, transform_indices = @transform_1, window_bounds = array<i64: 64, 9>}, {pipeline_mode = #tpu.pipeline_mode<synchronous>, transform_indices = @transform_2, window_bounds = array<i64: 64, 1>}, {pipeline_mode = #tpu.pipeline_mode<synchronous>, transform_indices = @transform_3, window_bounds = array<i64: 576, 64>}, {pipeline_mode = #tpu.pipeline_mode<synchronous>, transform_indices = @transform_4, window_bounds = array<i64: 1, 64>}, {pipeline_mode = #tpu.pipeline_mode<synchronous>, transform_indices = @transform_5, window_bounds = array<i64: 576, 32>}, {pipeline_mode = #tpu.pipeline_mode<synchronous>, transform_indices = @transform_6, window_bounds = array<i64: 1, 32>}, {transform_indices = @transform_7, window_bounds = array<i64: 1, 32, 16>}]} {
    %cst = arith.constant 0.000000e+00 : bf16
    %0 = vector.broadcast %cst : bf16 to vector<1x5x64xbf16>
    %c0 = arith.constant 0 : index
    %c0_0 = arith.constant 0 : index
    %c0_1 = arith.constant 0 : index
    %c0_2 = arith.constant 0 : index
    %c0_3 = arith.constant 0 : index
    %1 = vector.load %arg9[%c0, %c0_0, %c0_1, %c0_2, %c0_3] : memref<4x4x5x5x64xbf16, #tpu.memory_space<vmem>>, vector<1x1x1x5x64xbf16>
    %2 = vector.shape_cast %1 : vector<1x1x1x5x64xbf16> to vector<1x5x64xbf16>
    %3 = vector.shape_cast %0 : vector<1x5x64xbf16> to vector<1x1x1x5x64xbf16>
    tpu.vector_store %arg9[%c0, %c0_0, %c0_1, %c0_2, %c0_3], %3 {strides = array<i32>} : memref<4x4x5x5x64xbf16, #tpu.memory_space<vmem>>, vector<1x1x1x5x64xbf16>,
    %cst_4 = arith.constant 0.000000e+00 : bf16
    %4 = vector.broadcast %cst_4 : bf16 to vector<5x1x64xbf16>
    %c0_5 = arith.constant 0 : index
    %c0_6 = arith.constant 0 : index
    %c0_7 = arith.constant 0 : index
    %c0_8 = arith.constant 0 : index
    %c0_9 = arith.constant 0 : index
    %5 = vector.load %arg9[%c0_5, %c0_6, %c0_7, %c0_8, %c0_9] : memref<4x4x5x5x64xbf16, #tpu.memory_space<vmem>>, vector<1x1x5x1x64xbf16>
    %6 = vector.shape_cast %5 : vector<1x1x5x1x64xbf16> to vector<5x1x64xbf16>
    %7 = vector.shape_cast %4 : vector<5x1x64xbf16> to vector<1x1x5x1x64xbf16>
    tpu.vector_store %arg9[%c0_5, %c0_6, %c0_7, %c0_8, %c0_9], %7 {strides = array<i32>} : memref<4x4x5x5x64xbf16, #tpu.memory_space<vmem>>, vector<1x1x5x1x64xbf16>,
    %cst_10 = arith.constant 0.000000e+00 : bf16
    %8 = vector.broadcast %cst_10 : bf16 to vector<1x5x64xbf16>
    %c0_11 = arith.constant 0 : index
    %c1 = arith.constant 1 : index
    %c0_12 = arith.constant 0 : index
    %c0_13 = arith.constant 0 : index
    %c0_14 = arith.constant 0 : index
    %9 = vector.load %arg9[%c0_11, %c1, %c0_12, %c0_13, %c0_14] : memref<4x4x5x5x64xbf16, #tpu.memory_space<vmem>>, vector<1x1x1x5x64xbf16>
    %10 = vector.shape_cast %9 : vector<1x1x1x5x64xbf16> to vector<1x5x64xbf16>
    %11 = vector.shape_cast %8 : vector<1x5x64xbf16> to vector<1x1x1x5x64xbf16>
    tpu.vector_store %arg9[%c0_11, %c1, %c0_12, %c0_13, %c0_14], %11 {strides = array<i32>} : memref<4x4x5x5x64xbf16, #tpu.memory_space<vmem>>, vector<1x1x1x5x64xbf16>,
    %cst_15 = arith.constant 0.000000e+00 : bf16
    %12 = vector.broadcast %cst_15 : bf16 to vector<5x1x64xbf16>
    %c1_16 = arith.constant 1 : index
    %c0_17 = arith.constant 0 : index
    %c0_18 = arith.constant 0 : index
    %c0_19 = arith.constant 0 : index
    %c0_20 = arith.constant 0 : index
    %13 = vector.load %arg9[%c1_16, %c0_17, %c0_18, %c0_19, %c0_20] : memref<4x4x5x5x64xbf16, #tpu.memory_space<vmem>>, vector<1x1x5x1x64xbf16>
    %14 = vector.shape_cast %13 : vector<1x1x5x1x64xbf16> to vector<5x1x64xbf16>
    %15 = vector.shape_cast %12 : vector<5x1x64xbf16> to vector<1x1x5x1x64xbf16>
    tpu.vector_store %arg9[%c1_16, %c0_17, %c0_18, %c0_19, %c0_20], %15 {strides = array<i32>} : memref<4x4x5x5x64xbf16, #tpu.memory_space<vmem>>, vector<1x1x5x1x64xbf16>,
    %cst_21 = arith.constant 0.000000e+00 : bf16
    %16 = vector.broadcast %cst_21 : bf16 to vector<1x5x64xbf16>
    %c0_22 = arith.constant 0 : index
    %c2 = arith.constant 2 : index
    %c0_23 = arith.constant 0 : index
    %c0_24 = arith.constant 0 : index
    %c0_25 = arith.constant 0 : index
    %17 = vector.load %arg9[%c0_22, %c2, %c0_23, %c0_24, %c0_25] : memref<4x4x5x5x64xbf16, #tpu.memory_space<vmem>>, vector<1x1x1x5x64xbf16>
    %18 = vector.shape_cast %17 : vector<1x1x1x5x64xbf16> to vector<1x5x64xbf16>
    %19 = vector.shape_cast %16 : vector<1x5x64xbf16> to vector<1x1x1x5x64xbf16>
    tpu.vector_store %arg9[%c0_22, %c2, %c0_23, %c0_24, %c0_25], %19 {strides = array<i32>} : memref<4x4x5x5x64xbf16, #tpu.memory_space<vmem>>, vector<1x1x1x5x64xbf16>,
    %cst_26 = arith.constant 0.000000e+00 : bf16
    %20 = vector.broadcast %cst_26 : bf16 to vector<5x1x64xbf16>
    %c2_27 = arith.constant 2 : index
    %c0_28 = arith.constant 0 : index
    %c0_29 = arith.constant 0 : index
    %c0_30 = arith.constant 0 : index
    %c0_31 = arith.constant 0 : index
    %21 = vector.load %arg9[%c2_27, %c0_28, %c0_29, %c0_30, %c0_31] : memref<4x4x5x5x64xbf16, #tpu.memory_space<vmem>>, vector<1x1x5x1x64xbf16>
    %22 = vector.shape_cast %21 : vector<1x1x5x1x64xbf16> to vector<5x1x64xbf16>
    %23 = vector.shape_cast %20 : vector<5x1x64xbf16> to vector<1x1x5x1x64xbf16>
    tpu.vector_store %arg9[%c2_27, %c0_28, %c0_29, %c0_30, %c0_31], %23 {strides = array<i32>} : memref<4x4x5x5x64xbf16, #tpu.memory_space<vmem>>, vector<1x1x5x1x64xbf16>,
    %cst_32 = arith.constant 0.000000e+00 : bf16
    %24 = vector.broadcast %cst_32 : bf16 to vector<1x5x64xbf16>
    %c0_33 = arith.constant 0 : index
    %c3 = arith.constant 3 : index
    %c0_34 = arith.constant 0 : index
    %c0_35 = arith.constant 0 : index
    %c0_36 = arith.constant 0 : index
    %25 = vector.load %arg9[%c0_33, %c3, %c0_34, %c0_35, %c0_36] : memref<4x4x5x5x64xbf16, #tpu.memory_space<vmem>>, vector<1x1x1x5x64xbf16>
    %26 = vector.shape_cast %25 : vector<1x1x1x5x64xbf16> to vector<1x5x64xbf16>
    %27 = vector.shape_cast %24 : vector<1x5x64xbf16> to vector<1x1x1x5x64xbf16>
    tpu.vector_store %arg9[%c0_33, %c3, %c0_34, %c0_35, %c0_36], %27 {strides = array<i32>} : memref<4x4x5x5x64xbf16, #tpu.memory_space<vmem>>, vector<1x1x1x5x64xbf16>,
    %cst_37 = arith.constant 0.000000e+00 : bf16
    %28 = vector.broadcast %cst_37 : bf16 to vector<5x1x64xbf16>
    %c3_38 = arith.constant 3 : index
    %c0_39 = arith.constant 0 : index
    %c0_40 = arith.constant 0 : index
    %c0_41 = arith.constant 0 : index
    %c0_42 = arith.constant 0 : index
    %29 = vector.load %arg9[%c3_38, %c0_39, %c0_40, %c0_41, %c0_42] : memref<4x4x5x5x64xbf16, #tpu.memory_space<vmem>>, vector<1x1x5x1x64xbf16>
    %30 = vector.shape_cast %29 : vector<1x1x5x1x64xbf16> to vector<5x1x64xbf16>
    %31 = vector.shape_cast %28 : vector<5x1x64xbf16> to vector<1x1x5x1x64xbf16>
    tpu.vector_store %arg9[%c3_38, %c0_39, %c0_40, %c0_41, %c0_42], %31 {strides = array<i32>} : memref<4x4x5x5x64xbf16, #tpu.memory_space<vmem>>, vector<1x1x5x1x64xbf16>,
    %cst_43 = arith.constant 0.000000e+00 : bf16
    %32 = vector.broadcast %cst_43 : bf16 to vector<1x5x64xbf16>
    %c0_44 = arith.constant 0 : index
    %c0_45 = arith.constant 0 : index
    %c0_46 = arith.constant 0 : index
    %c0_47 = arith.constant 0 : index
    %c0_48 = arith.constant 0 : index
    %33 = vector.load %arg10[%c0_44, %c0_45, %c0_46, %c0_47, %c0_48] : memref<2x2x5x5x64xbf16, #tpu.memory_space<vmem>>, vector<1x1x1x5x64xbf16>
    %34 = vector.shape_cast %33 : vector<1x1x1x5x64xbf16> to vector<1x5x64xbf16>
    %35 = vector.shape_cast %32 : vector<1x5x64xbf16> to vector<1x1x1x5x64xbf16>
    tpu.vector_store %arg10[%c0_44, %c0_45, %c0_46, %c0_47, %c0_48], %35 {strides = array<i32>} : memref<2x2x5x5x64xbf16, #tpu.memory_space<vmem>>, vector<1x1x1x5x64xbf16>,
    %cst_49 = arith.constant 0.000000e+00 : bf16
    %36 = vector.broadcast %cst_49 : bf16 to vector<5x1x64xbf16>
    %c0_50 = arith.constant 0 : index
    %c0_51 = arith.constant 0 : index
    %c0_52 = arith.constant 0 : index
    %c0_53 = arith.constant 0 : index
    %c0_54 = arith.constant 0 : index
    %37 = vector.load %arg10[%c0_50, %c0_51, %c0_52, %c0_53, %c0_54] : memref<2x2x5x5x64xbf16, #tpu.memory_space<vmem>>, vector<1x1x5x1x64xbf16>
    %38 = vector.shape_cast %37 : vector<1x1x5x1x64xbf16> to vector<5x1x64xbf16>
    %39 = vector.shape_cast %36 : vector<5x1x64xbf16> to vector<1x1x5x1x64xbf16>
    tpu.vector_store %arg10[%c0_50, %c0_51, %c0_52, %c0_53, %c0_54], %39 {strides = array<i32>} : memref<2x2x5x5x64xbf16, #tpu.memory_space<vmem>>, vector<1x1x5x1x64xbf16>,
    %cst_55 = arith.constant 0.000000e+00 : bf16
    %40 = vector.broadcast %cst_55 : bf16 to vector<1x5x64xbf16>
    %c0_56 = arith.constant 0 : index
    %c1_57 = arith.constant 1 : index
    %c0_58 = arith.constant 0 : index
    %c0_59 = arith.constant 0 : index
    %c0_60 = arith.constant 0 : index
    %41 = vector.load %arg10[%c0_56, %c1_57, %c0_58, %c0_59, %c0_60] : memref<2x2x5x5x64xbf16, #tpu.memory_space<vmem>>, vector<1x1x1x5x64xbf16>
    %42 = vector.shape_cast %41 : vector<1x1x1x5x64xbf16> to vector<1x5x64xbf16>
    %43 = vector.shape_cast %40 : vector<1x5x64xbf16> to vector<1x1x1x5x64xbf16>
    tpu.vector_store %arg10[%c0_56, %c1_57, %c0_58, %c0_59, %c0_60], %43 {strides = array<i32>} : memref<2x2x5x5x64xbf16, #tpu.memory_space<vmem>>, vector<1x1x1x5x64xbf16>,
    %cst_61 = arith.constant 0.000000e+00 : bf16
    %44 = vector.broadcast %cst_61 : bf16 to vector<5x1x64xbf16>
    %c1_62 = arith.constant 1 : index
    %c0_63 = arith.constant 0 : index
    %c0_64 = arith.constant 0 : index
    %c0_65 = arith.constant 0 : index
    %c0_66 = arith.constant 0 : index
    %45 = vector.load %arg10[%c1_62, %c0_63, %c0_64, %c0_65, %c0_66] : memref<2x2x5x5x64xbf16, #tpu.memory_space<vmem>>, vector<1x1x5x1x64xbf16>
    %46 = vector.shape_cast %45 : vector<1x1x5x1x64xbf16> to vector<5x1x64xbf16>
    %47 = vector.shape_cast %44 : vector<5x1x64xbf16> to vector<1x1x5x1x64xbf16>
    tpu.vector_store %arg10[%c1_62, %c0_63, %c0_64, %c0_65, %c0_66], %47 {strides = array<i32>} : memref<2x2x5x5x64xbf16, #tpu.memory_space<vmem>>, vector<1x1x5x1x64xbf16>,
    %c0_67 = arith.constant 0 : index
    %c0_68 = arith.constant 0 : index
    %c0_69 = arith.constant 0 : index
    %48 = vector.load %arg1[%c0_67, %c0_68, %c0_69] : memref<1x9x256xbf16, #tpu.memory_space<vmem>>, vector<1x9x256xbf16>
    %49 = vector.shape_cast %48 : vector<1x9x256xbf16> to vector<9x256xbf16>
    %c0_70 = arith.constant 0 : index
    %c0_71 = arith.constant 0 : index
    %50 = vector.load %arg2[%c0_70, %c0_71] : memref<64x9xbf16, #tpu.memory_space<vmem>>, vector<64x9xbf16>
    %cst_72 = arith.constant dense<0.000000e+00> : vector<64x256xf32>
    %51 = tpu.matmul %50, %49, %cst_72 {dimension_numbers = #tpu.dot_dimension_numbers<[1], [0], [0], [1], [0, 0, 1, 1], [], []>} : vector<64x9xbf16>, vector<9x256xbf16>, vector<64x256xf32> -> vector<64x256xf32>
    %c0_73 = arith.constant 0 : index
    %c0_74 = arith.constant 0 : index
    %52 = vector.load %arg3[%c0_73, %c0_74] : memref<64x1xf32, #tpu.memory_space<vmem>>, vector<64x1xf32>
    %53 = vector.broadcast %52 : vector<64x1xf32> to vector<64x256xf32>
    %54 = arith.addf %51, %53 : vector<64x256xf32>
    %cst_75 = arith.constant 0.000000e+00 : f32
    %55 = vector.broadcast %cst_75 : f32 to vector<64x256xf32>
    %56 = arith.maximumf %54, %55 : vector<64x256xf32>
    %57 = tpu.transpose %56, [1, 0] : vector<64x256xf32> -> vector<256x64xf32>
    %58 = arith.truncf %57 : vector<256x64xf32> to vector<256x64xbf16>
    %59 = vector.shape_cast %58 : vector<256x64xbf16> to vector<4x4x4x4x64xbf16>
    %60 = vector.extract_strided_slice %59 {offsets = [0, 0, 0, 0, 0], sizes = [1, 1, 4, 4, 64], strides = [1, 1, 1, 1, 1]} : vector<4x4x4x4x64xbf16> to vector<1x1x4x4x64xbf16>
    %61 = vector.shape_cast %60 : vector<1x1x4x4x64xbf16> to vector<4x4x64xbf16>
    %c1_76 = arith.constant 1 : index
    %c1_77 = arith.constant 1 : index
    %c0_78 = arith.constant 0 : index
    %c0_79 = arith.constant 0 : index
    %c0_80 = arith.constant 0 : index
    %62 = vector.load %arg9[%c1_76, %c1_77, %c0_78, %c0_79, %c0_80] : memref<4x4x5x5x64xbf16, #tpu.memory_space<vmem>>, vector<1x1x4x4x64xbf16>
    %63 = vector.shape_cast %62 : vector<1x1x4x4x64xbf16> to vector<4x4x64xbf16>
    %64 = vector.shape_cast %61 : vector<4x4x64xbf16> to vector<1x1x4x4x64xbf16>
    tpu.vector_store %arg9[%c1_76, %c1_77, %c0_78, %c0_79, %c0_80], %64 {strides = array<i32>} : memref<4x4x5x5x64xbf16, #tpu.memory_space<vmem>>, vector<1x1x4x4x64xbf16>,
    %65 = vector.extract_strided_slice %59 {offsets = [0, 1, 0, 0, 0], sizes = [1, 1, 4, 4, 64], strides = [1, 1, 1, 1, 1]} : vector<4x4x4x4x64xbf16> to vector<1x1x4x4x64xbf16>
    %66 = vector.shape_cast %65 : vector<1x1x4x4x64xbf16> to vector<4x4x64xbf16>
    %c1_81 = arith.constant 1 : index
    %c2_82 = arith.constant 2 : index
    %c0_83 = arith.constant 0 : index
    %c0_84 = arith.constant 0 : index
    %c0_85 = arith.constant 0 : index
    %67 = vector.load %arg9[%c1_81, %c2_82, %c0_83, %c0_84, %c0_85] : memref<4x4x5x5x64xbf16, #tpu.memory_space<vmem>>, vector<1x1x4x4x64xbf16>
    %68 = vector.shape_cast %67 : vector<1x1x4x4x64xbf16> to vector<4x4x64xbf16>
    %69 = vector.shape_cast %66 : vector<4x4x64xbf16> to vector<1x1x4x4x64xbf16>
    tpu.vector_store %arg9[%c1_81, %c2_82, %c0_83, %c0_84, %c0_85], %69 {strides = array<i32>} : memref<4x4x5x5x64xbf16, #tpu.memory_space<vmem>>, vector<1x1x4x4x64xbf16>,
    %70 = vector.extract_strided_slice %59 {offsets = [0, 2, 0, 0, 0], sizes = [1, 1, 4, 4, 64], strides = [1, 1, 1, 1, 1]} : vector<4x4x4x4x64xbf16> to vector<1x1x4x4x64xbf16>
    %71 = vector.shape_cast %70 : vector<1x1x4x4x64xbf16> to vector<4x4x64xbf16>
    %c1_86 = arith.constant 1 : index
    %c3_87 = arith.constant 3 : index
    %c0_88 = arith.constant 0 : index
    %c0_89 = arith.constant 0 : index
    %c0_90 = arith.constant 0 : index
    %72 = vector.load %arg9[%c1_86, %c3_87, %c0_88, %c0_89, %c0_90] : memref<4x4x5x5x64xbf16, #tpu.memory_space<vmem>>, vector<1x1x4x4x64xbf16>
    %73 = vector.shape_cast %72 : vector<1x1x4x4x64xbf16> to vector<4x4x64xbf16>
    %74 = vector.shape_cast %71 : vector<4x4x64xbf16> to vector<1x1x4x4x64xbf16>
    tpu.vector_store %arg9[%c1_86, %c3_87, %c0_88, %c0_89, %c0_90], %74 {strides = array<i32>} : memref<4x4x5x5x64xbf16, #tpu.memory_space<vmem>>, vector<1x1x4x4x64xbf16>,
    %75 = vector.extract_strided_slice %59 {offsets = [0, 3, 0, 0, 0], sizes = [1, 1, 4, 4, 64], strides = [1, 1, 1, 1, 1]} : vector<4x4x4x4x64xbf16> to vector<1x1x4x4x64xbf16>
    %76 = vector.shape_cast %75 : vector<1x1x4x4x64xbf16> to vector<4x4x64xbf16>
    %c1_91 = arith.constant 1 : index
    %c0_92 = arith.constant 0 : index
    %c0_93 = arith.constant 0 : index
    %c1_94 = arith.constant 1 : index
    %c0_95 = arith.constant 0 : index
    %77 = vector.load %arg9[%c1_91, %c0_92, %c0_93, %c1_94, %c0_95] : memref<4x4x5x5x64xbf16, #tpu.memory_space<vmem>>, vector<1x1x4x4x64xbf16>
    %78 = vector.shape_cast %77 : vector<1x1x4x4x64xbf16> to vector<4x4x64xbf16>
    %79 = vector.shape_cast %76 : vector<4x4x64xbf16> to vector<1x1x4x4x64xbf16>
    tpu.vector_store %arg9[%c1_91, %c0_92, %c0_93, %c1_94, %c0_95], %79 {strides = array<i32>} : memref<4x4x5x5x64xbf16, #tpu.memory_space<vmem>>, vector<1x1x4x4x64xbf16>,
    %80 = vector.extract_strided_slice %59 {offsets = [1, 0, 0, 0, 0], sizes = [1, 1, 4, 4, 64], strides = [1, 1, 1, 1, 1]} : vector<4x4x4x4x64xbf16> to vector<1x1x4x4x64xbf16>
    %81 = vector.shape_cast %80 : vector<1x1x4x4x64xbf16> to vector<4x4x64xbf16>
    %c2_96 = arith.constant 2 : index
    %c1_97 = arith.constant 1 : index
    %c0_98 = arith.constant 0 : index
    %c0_99 = arith.constant 0 : index
    %c0_100 = arith.constant 0 : index
    %82 = vector.load %arg9[%c2_96, %c1_97, %c0_98, %c0_99, %c0_100] : memref<4x4x5x5x64xbf16, #tpu.memory_space<vmem>>, vector<1x1x4x4x64xbf16>
    %83 = vector.shape_cast %82 : vector<1x1x4x4x64xbf16> to vector<4x4x64xbf16>
    %84 = vector.shape_cast %81 : vector<4x4x64xbf16> to vector<1x1x4x4x64xbf16>
    tpu.vector_store %arg9[%c2_96, %c1_97, %c0_98, %c0_99, %c0_100], %84 {strides = array<i32>} : memref<4x4x5x5x64xbf16, #tpu.memory_space<vmem>>, vector<1x1x4x4x64xbf16>,
    %85 = vector.extract_strided_slice %59 {offsets = [1, 1, 0, 0, 0], sizes = [1, 1, 4, 4, 64], strides = [1, 1, 1, 1, 1]} : vector<4x4x4x4x64xbf16> to vector<1x1x4x4x64xbf16>
    %86 = vector.shape_cast %85 : vector<1x1x4x4x64xbf16> to vector<4x4x64xbf16>
    %c2_101 = arith.constant 2 : index
    %c2_102 = arith.constant 2 : index
    %c0_103 = arith.constant 0 : index
    %c0_104 = arith.constant 0 : index
    %c0_105 = arith.constant 0 : index
    %87 = vector.load %arg9[%c2_101, %c2_102, %c0_103, %c0_104, %c0_105] : memref<4x4x5x5x64xbf16, #tpu.memory_space<vmem>>, vector<1x1x4x4x64xbf16>
    %88 = vector.shape_cast %87 : vector<1x1x4x4x64xbf16> to vector<4x4x64xbf16>
    %89 = vector.shape_cast %86 : vector<4x4x64xbf16> to vector<1x1x4x4x64xbf16>
    tpu.vector_store %arg9[%c2_101, %c2_102, %c0_103, %c0_104, %c0_105], %89 {strides = array<i32>} : memref<4x4x5x5x64xbf16, #tpu.memory_space<vmem>>, vector<1x1x4x4x64xbf16>,
    %90 = vector.extract_strided_slice %59 {offsets = [1, 2, 0, 0, 0], sizes = [1, 1, 4, 4, 64], strides = [1, 1, 1, 1, 1]} : vector<4x4x4x4x64xbf16> to vector<1x1x4x4x64xbf16>
    %91 = vector.shape_cast %90 : vector<1x1x4x4x64xbf16> to vector<4x4x64xbf16>
    %c2_106 = arith.constant 2 : index
    %c3_107 = arith.constant 3 : index
    %c0_108 = arith.constant 0 : index
    %c0_109 = arith.constant 0 : index
    %c0_110 = arith.constant 0 : index
    %92 = vector.load %arg9[%c2_106, %c3_107, %c0_108, %c0_109, %c0_110] : memref<4x4x5x5x64xbf16, #tpu.memory_space<vmem>>, vector<1x1x4x4x64xbf16>
    %93 = vector.shape_cast %92 : vector<1x1x4x4x64xbf16> to vector<4x4x64xbf16>
    %94 = vector.shape_cast %91 : vector<4x4x64xbf16> to vector<1x1x4x4x64xbf16>
    tpu.vector_store %arg9[%c2_106, %c3_107, %c0_108, %c0_109, %c0_110], %94 {strides = array<i32>} : memref<4x4x5x5x64xbf16, #tpu.memory_space<vmem>>, vector<1x1x4x4x64xbf16>,
    %95 = vector.extract_strided_slice %59 {offsets = [1, 3, 0, 0, 0], sizes = [1, 1, 4, 4, 64], strides = [1, 1, 1, 1, 1]} : vector<4x4x4x4x64xbf16> to vector<1x1x4x4x64xbf16>
    %96 = vector.shape_cast %95 : vector<1x1x4x4x64xbf16> to vector<4x4x64xbf16>
    %c2_111 = arith.constant 2 : index
    %c0_112 = arith.constant 0 : index
    %c0_113 = arith.constant 0 : index
    %c1_114 = arith.constant 1 : index
    %c0_115 = arith.constant 0 : index
    %97 = vector.load %arg9[%c2_111, %c0_112, %c0_113, %c1_114, %c0_115] : memref<4x4x5x5x64xbf16, #tpu.memory_space<vmem>>, vector<1x1x4x4x64xbf16>
    %98 = vector.shape_cast %97 : vector<1x1x4x4x64xbf16> to vector<4x4x64xbf16>
    %99 = vector.shape_cast %96 : vector<4x4x64xbf16> to vector<1x1x4x4x64xbf16>
    tpu.vector_store %arg9[%c2_111, %c0_112, %c0_113, %c1_114, %c0_115], %99 {strides = array<i32>} : memref<4x4x5x5x64xbf16, #tpu.memory_space<vmem>>, vector<1x1x4x4x64xbf16>,
    %100 = vector.extract_strided_slice %59 {offsets = [2, 0, 0, 0, 0], sizes = [1, 1, 4, 4, 64], strides = [1, 1, 1, 1, 1]} : vector<4x4x4x4x64xbf16> to vector<1x1x4x4x64xbf16>
    %101 = vector.shape_cast %100 : vector<1x1x4x4x64xbf16> to vector<4x4x64xbf16>
    %c3_116 = arith.constant 3 : index
    %c1_117 = arith.constant 1 : index
    %c0_118 = arith.constant 0 : index
    %c0_119 = arith.constant 0 : index
    %c0_120 = arith.constant 0 : index
    %102 = vector.load %arg9[%c3_116, %c1_117, %c0_118, %c0_119, %c0_120] : memref<4x4x5x5x64xbf16, #tpu.memory_space<vmem>>, vector<1x1x4x4x64xbf16>
    %103 = vector.shape_cast %102 : vector<1x1x4x4x64xbf16> to vector<4x4x64xbf16>
    %104 = vector.shape_cast %101 : vector<4x4x64xbf16> to vector<1x1x4x4x64xbf16>
    tpu.vector_store %arg9[%c3_116, %c1_117, %c0_118, %c0_119, %c0_120], %104 {strides = array<i32>} : memref<4x4x5x5x64xbf16, #tpu.memory_space<vmem>>, vector<1x1x4x4x64xbf16>,
    %105 = vector.extract_strided_slice %59 {offsets = [2, 1, 0, 0, 0], sizes = [1, 1, 4, 4, 64], strides = [1, 1, 1, 1, 1]} : vector<4x4x4x4x64xbf16> to vector<1x1x4x4x64xbf16>
    %106 = vector.shape_cast %105 : vector<1x1x4x4x64xbf16> to vector<4x4x64xbf16>
    %c3_121 = arith.constant 3 : index
    %c2_122 = arith.constant 2 : index
    %c0_123 = arith.constant 0 : index
    %c0_124 = arith.constant 0 : index
    %c0_125 = arith.constant 0 : index
    %107 = vector.load %arg9[%c3_121, %c2_122, %c0_123, %c0_124, %c0_125] : memref<4x4x5x5x64xbf16, #tpu.memory_space<vmem>>, vector<1x1x4x4x64xbf16>
    %108 = vector.shape_cast %107 : vector<1x1x4x4x64xbf16> to vector<4x4x64xbf16>
    %109 = vector.shape_cast %106 : vector<4x4x64xbf16> to vector<1x1x4x4x64xbf16>
    tpu.vector_store %arg9[%c3_121, %c2_122, %c0_123, %c0_124, %c0_125], %109 {strides = array<i32>} : memref<4x4x5x5x64xbf16, #tpu.memory_space<vmem>>, vector<1x1x4x4x64xbf16>,
    %110 = vector.extract_strided_slice %59 {offsets = [2, 2, 0, 0, 0], sizes = [1, 1, 4, 4, 64], strides = [1, 1, 1, 1, 1]} : vector<4x4x4x4x64xbf16> to vector<1x1x4x4x64xbf16>
    %111 = vector.shape_cast %110 : vector<1x1x4x4x64xbf16> to vector<4x4x64xbf16>
    %c3_126 = arith.constant 3 : index
    %c3_127 = arith.constant 3 : index
    %c0_128 = arith.constant 0 : index
    %c0_129 = arith.constant 0 : index
    %c0_130 = arith.constant 0 : index
    %112 = vector.load %arg9[%c3_126, %c3_127, %c0_128, %c0_129, %c0_130] : memref<4x4x5x5x64xbf16, #tpu.memory_space<vmem>>, vector<1x1x4x4x64xbf16>
    %113 = vector.shape_cast %112 : vector<1x1x4x4x64xbf16> to vector<4x4x64xbf16>
    %114 = vector.shape_cast %111 : vector<4x4x64xbf16> to vector<1x1x4x4x64xbf16>
    tpu.vector_store %arg9[%c3_126, %c3_127, %c0_128, %c0_129, %c0_130], %114 {strides = array<i32>} : memref<4x4x5x5x64xbf16, #tpu.memory_space<vmem>>, vector<1x1x4x4x64xbf16>,
    %115 = vector.extract_strided_slice %59 {offsets = [2, 3, 0, 0, 0], sizes = [1, 1, 4, 4, 64], strides = [1, 1, 1, 1, 1]} : vector<4x4x4x4x64xbf16> to vector<1x1x4x4x64xbf16>
    %116 = vector.shape_cast %115 : vector<1x1x4x4x64xbf16> to vector<4x4x64xbf16>
    %c3_131 = arith.constant 3 : index
    %c0_132 = arith.constant 0 : index
    %c0_133 = arith.constant 0 : index
    %c1_134 = arith.constant 1 : index
    %c0_135 = arith.constant 0 : index
    %117 = vector.load %arg9[%c3_131, %c0_132, %c0_133, %c1_134, %c0_135] : memref<4x4x5x5x64xbf16, #tpu.memory_space<vmem>>, vector<1x1x4x4x64xbf16>
    %118 = vector.shape_cast %117 : vector<1x1x4x4x64xbf16> to vector<4x4x64xbf16>
    %119 = vector.shape_cast %116 : vector<4x4x64xbf16> to vector<1x1x4x4x64xbf16>
    tpu.vector_store %arg9[%c3_131, %c0_132, %c0_133, %c1_134, %c0_135], %119 {strides = array<i32>} : memref<4x4x5x5x64xbf16, #tpu.memory_space<vmem>>, vector<1x1x4x4x64xbf16>,
    %120 = vector.extract_strided_slice %59 {offsets = [3, 0, 0, 0, 0], sizes = [1, 1, 4, 4, 64], strides = [1, 1, 1, 1, 1]} : vector<4x4x4x4x64xbf16> to vector<1x1x4x4x64xbf16>
    %121 = vector.shape_cast %120 : vector<1x1x4x4x64xbf16> to vector<4x4x64xbf16>
    %c0_136 = arith.constant 0 : index
    %c1_137 = arith.constant 1 : index
    %c1_138 = arith.constant 1 : index
    %c0_139 = arith.constant 0 : index
    %c0_140 = arith.constant 0 : index
    %122 = vector.load %arg9[%c0_136, %c1_137, %c1_138, %c0_139, %c0_140] : memref<4x4x5x5x64xbf16, #tpu.memory_space<vmem>>, vector<1x1x4x4x64xbf16>
    %123 = vector.shape_cast %122 : vector<1x1x4x4x64xbf16> to vector<4x4x64xbf16>
    %124 = vector.shape_cast %121 : vector<4x4x64xbf16> to vector<1x1x4x4x64xbf16>
    tpu.vector_store %arg9[%c0_136, %c1_137, %c1_138, %c0_139, %c0_140], %124 {strides = array<i32>} : memref<4x4x5x5x64xbf16, #tpu.memory_space<vmem>>, vector<1x1x4x4x64xbf16>,
    %125 = vector.extract_strided_slice %59 {offsets = [3, 1, 0, 0, 0], sizes = [1, 1, 4, 4, 64], strides = [1, 1, 1, 1, 1]} : vector<4x4x4x4x64xbf16> to vector<1x1x4x4x64xbf16>
    %126 = vector.shape_cast %125 : vector<1x1x4x4x64xbf16> to vector<4x4x64xbf16>
    %c0_141 = arith.constant 0 : index
    %c2_142 = arith.constant 2 : index
    %c1_143 = arith.constant 1 : index
    %c0_144 = arith.constant 0 : index
    %c0_145 = arith.constant 0 : index
    %127 = vector.load %arg9[%c0_141, %c2_142, %c1_143, %c0_144, %c0_145] : memref<4x4x5x5x64xbf16, #tpu.memory_space<vmem>>, vector<1x1x4x4x64xbf16>
    %128 = vector.shape_cast %127 : vector<1x1x4x4x64xbf16> to vector<4x4x64xbf16>
    %129 = vector.shape_cast %126 : vector<4x4x64xbf16> to vector<1x1x4x4x64xbf16>
    tpu.vector_store %arg9[%c0_141, %c2_142, %c1_143, %c0_144, %c0_145], %129 {strides = array<i32>} : memref<4x4x5x5x64xbf16, #tpu.memory_space<vmem>>, vector<1x1x4x4x64xbf16>,
    %130 = vector.extract_strided_slice %59 {offsets = [3, 2, 0, 0, 0], sizes = [1, 1, 4, 4, 64], strides = [1, 1, 1, 1, 1]} : vector<4x4x4x4x64xbf16> to vector<1x1x4x4x64xbf16>
    %131 = vector.shape_cast %130 : vector<1x1x4x4x64xbf16> to vector<4x4x64xbf16>
    %c0_146 = arith.constant 0 : index
    %c3_147 = arith.constant 3 : index
    %c1_148 = arith.constant 1 : index
    %c0_149 = arith.constant 0 : index
    %c0_150 = arith.constant 0 : index
    %132 = vector.load %arg9[%c0_146, %c3_147, %c1_148, %c0_149, %c0_150] : memref<4x4x5x5x64xbf16, #tpu.memory_space<vmem>>, vector<1x1x4x4x64xbf16>
    %133 = vector.shape_cast %132 : vector<1x1x4x4x64xbf16> to vector<4x4x64xbf16>
    %134 = vector.shape_cast %131 : vector<4x4x64xbf16> to vector<1x1x4x4x64xbf16>
    tpu.vector_store %arg9[%c0_146, %c3_147, %c1_148, %c0_149, %c0_150], %134 {strides = array<i32>} : memref<4x4x5x5x64xbf16, #tpu.memory_space<vmem>>, vector<1x1x4x4x64xbf16>,
    %135 = vector.extract_strided_slice %59 {offsets = [3, 3, 0, 0, 0], sizes = [1, 1, 4, 4, 64], strides = [1, 1, 1, 1, 1]} : vector<4x4x4x4x64xbf16> to vector<1x1x4x4x64xbf16>
    %136 = vector.shape_cast %135 : vector<1x1x4x4x64xbf16> to vector<4x4x64xbf16>
    %c0_151 = arith.constant 0 : index
    %c0_152 = arith.constant 0 : index
    %c1_153 = arith.constant 1 : index
    %c1_154 = arith.constant 1 : index
    %c0_155 = arith.constant 0 : index
    %137 = vector.load %arg9[%c0_151, %c0_152, %c1_153, %c1_154, %c0_155] : memref<4x4x5x5x64xbf16, #tpu.memory_space<vmem>>, vector<1x1x4x4x64xbf16>
    %138 = vector.shape_cast %137 : vector<1x1x4x4x64xbf16> to vector<4x4x64xbf16>
    %139 = vector.shape_cast %136 : vector<4x4x64xbf16> to vector<1x1x4x4x64xbf16>
    tpu.vector_store %arg9[%c0_151, %c0_152, %c1_153, %c1_154, %c0_155], %139 {strides = array<i32>} : memref<4x4x5x5x64xbf16, #tpu.memory_space<vmem>>, vector<1x1x4x4x64xbf16>,
    %cst_156 = arith.constant 0.000000e+00 : f32
    %140 = vector.broadcast %cst_156 : f32 to vector<64x64xf32>
    %c0_157 = arith.constant 0 : index
    %c0_158 = arith.constant 0 : index
    %c0_159 = arith.constant 0 : index
    %c0_160 = arith.constant 0 : index
    %c0_161 = arith.constant 0 : index
    %141 = vector.load %arg9[%c0_157, %c0_158, %c0_159, %c0_160, %c0_161] : memref<4x4x5x5x64xbf16, #tpu.memory_space<vmem>>, vector<1x1x4x4x64xbf16>
    %142 = vector.shape_cast %141 : vector<1x1x4x4x64xbf16> to vector<4x4x64xbf16>
    %143 = vector.shape_cast %142 : vector<4x4x64xbf16> to vector<16x64xbf16>
    %c0_162 = arith.constant 0 : index
    %c2_163 = arith.constant 2 : index
    %c0_164 = arith.constant 0 : index
    %c0_165 = arith.constant 0 : index
    %c0_166 = arith.constant 0 : index
    %144 = vector.load %arg9[%c0_162, %c2_163, %c0_164, %c0_165, %c0_166] : memref<4x4x5x5x64xbf16, #tpu.memory_space<vmem>>, vector<1x1x4x4x64xbf16>
    %145 = vector.shape_cast %144 : vector<1x1x4x4x64xbf16> to vector<4x4x64xbf16>
    %146 = vector.shape_cast %145 : vector<4x4x64xbf16> to vector<16x64xbf16>
    %c2_167 = arith.constant 2 : index
    %c0_168 = arith.constant 0 : index
    %c0_169 = arith.constant 0 : index
    %c0_170 = arith.constant 0 : index
    %c0_171 = arith.constant 0 : index
    %147 = vector.load %arg9[%c2_167, %c0_168, %c0_169, %c0_170, %c0_171] : memref<4x4x5x5x64xbf16, #tpu.memory_space<vmem>>, vector<1x1x4x4x64xbf16>
    %148 = vector.shape_cast %147 : vector<1x1x4x4x64xbf16> to vector<4x4x64xbf16>
    %149 = vector.shape_cast %148 : vector<4x4x64xbf16> to vector<16x64xbf16>
    %c2_172 = arith.constant 2 : index
    %c2_173 = arith.constant 2 : index
    %c0_174 = arith.constant 0 : index
    %c0_175 = arith.constant 0 : index
    %c0_176 = arith.constant 0 : index
    %150 = vector.load %arg9[%c2_172, %c2_173, %c0_174, %c0_175, %c0_176] : memref<4x4x5x5x64xbf16, #tpu.memory_space<vmem>>, vector<1x1x4x4x64xbf16>
    %151 = vector.shape_cast %150 : vector<1x1x4x4x64xbf16> to vector<4x4x64xbf16>
    %152 = vector.shape_cast %151 : vector<4x4x64xbf16> to vector<16x64xbf16>
    %153 = tpu.concatenate %143, %146, %149, %152 in 0 : vector<16x64xbf16>, vector<16x64xbf16>, vector<16x64xbf16>, vector<16x64xbf16> -> vector<64x64xbf16>
    %c0_177 = arith.constant 0 : index
    %c0_178 = arith.constant 0 : index
    %154 = vector.load %arg4[%c0_177, %c0_178] : memref<576x64xbf16, #tpu.memory_space<vmem>>, vector<64x64xbf16>
    %cst_179 = arith.constant dense<0.000000e+00> : vector<64x64xf32>
    %155 = tpu.matmul %153, %154, %cst_179 {dimension_numbers = #tpu.dot_dimension_numbers<[1], [0], [0], [1], [0, 0, 1, 1], [], []>} : vector<64x64xbf16>, vector<64x64xbf16>, vector<64x64xf32> -> vector<64x64xf32>
    %156 = arith.addf %140, %155 : vector<64x64xf32>
    %c0_180 = arith.constant 0 : index
    %c1_181 = arith.constant 1 : index
    %c0_182 = arith.constant 0 : index
    %c0_183 = arith.constant 0 : index
    %c0_184 = arith.constant 0 : index
    %157 = vector.load %arg9[%c0_180, %c1_181, %c0_182, %c0_183, %c0_184] : memref<4x4x5x5x64xbf16, #tpu.memory_space<vmem>>, vector<1x1x4x4x64xbf16>
    %158 = vector.shape_cast %157 : vector<1x1x4x4x64xbf16> to vector<4x4x64xbf16>
    %159 = vector.shape_cast %158 : vector<4x4x64xbf16> to vector<16x64xbf16>
    %c0_185 = arith.constant 0 : index
    %c3_186 = arith.constant 3 : index
    %c0_187 = arith.constant 0 : index
    %c0_188 = arith.constant 0 : index
    %c0_189 = arith.constant 0 : index
    %160 = vector.load %arg9[%c0_185, %c3_186, %c0_187, %c0_188, %c0_189] : memref<4x4x5x5x64xbf16, #tpu.memory_space<vmem>>, vector<1x1x4x4x64xbf16>
    %161 = vector.shape_cast %160 : vector<1x1x4x4x64xbf16> to vector<4x4x64xbf16>
    %162 = vector.shape_cast %161 : vector<4x4x64xbf16> to vector<16x64xbf16>
    %c2_190 = arith.constant 2 : index
    %c1_191 = arith.constant 1 : index
    %c0_192 = arith.constant 0 : index
    %c0_193 = arith.constant 0 : index
    %c0_194 = arith.constant 0 : index
    %163 = vector.load %arg9[%c2_190, %c1_191, %c0_192, %c0_193, %c0_194] : memref<4x4x5x5x64xbf16, #tpu.memory_space<vmem>>, vector<1x1x4x4x64xbf16>
    %164 = vector.shape_cast %163 : vector<1x1x4x4x64xbf16> to vector<4x4x64xbf16>
    %165 = vector.shape_cast %164 : vector<4x4x64xbf16> to vector<16x64xbf16>
    %c2_195 = arith.constant 2 : index
    %c3_196 = arith.constant 3 : index
    %c0_197 = arith.constant 0 : index
    %c0_198 = arith.constant 0 : index
    %c0_199 = arith.constant 0 : index
    %166 = vector.load %arg9[%c2_195, %c3_196, %c0_197, %c0_198, %c0_199] : memref<4x4x5x5x64xbf16, #tpu.memory_space<vmem>>, vector<1x1x4x4x64xbf16>
    %167 = vector.shape_cast %166 : vector<1x1x4x4x64xbf16> to vector<4x4x64xbf16>
    %168 = vector.shape_cast %167 : vector<4x4x64xbf16> to vector<16x64xbf16>
    %169 = tpu.concatenate %159, %162, %165, %168 in 0 : vector<16x64xbf16>, vector<16x64xbf16>, vector<16x64xbf16>, vector<16x64xbf16> -> vector<64x64xbf16>
    %c64 = arith.constant 64 : index
    %c0_200 = arith.constant 0 : index
    %170 = vector.load %arg4[%c64, %c0_200] : memref<576x64xbf16, #tpu.memory_space<vmem>>, vector<64x64xbf16>
    %cst_201 = arith.constant dense<0.000000e+00> : vector<64x64xf32>
    %171 = tpu.matmul %169, %170, %cst_201 {dimension_numbers = #tpu.dot_dimension_numbers<[1], [0], [0], [1], [0, 0, 1, 1], [], []>} : vector<64x64xbf16>, vector<64x64xbf16>, vector<64x64xf32> -> vector<64x64xf32>
    %172 = arith.addf %156, %171 : vector<64x64xf32>
    %c0_202 = arith.constant 0 : index
    %c2_203 = arith.constant 2 : index
    %c0_204 = arith.constant 0 : index
    %c0_205 = arith.constant 0 : index
    %c0_206 = arith.constant 0 : index
    %173 = vector.load %arg9[%c0_202, %c2_203, %c0_204, %c0_205, %c0_206] : memref<4x4x5x5x64xbf16, #tpu.memory_space<vmem>>, vector<1x1x4x4x64xbf16>
    %174 = vector.shape_cast %173 : vector<1x1x4x4x64xbf16> to vector<4x4x64xbf16>
    %175 = vector.shape_cast %174 : vector<4x4x64xbf16> to vector<16x64xbf16>
    %c0_207 = arith.constant 0 : index
    %c0_208 = arith.constant 0 : index
    %c0_209 = arith.constant 0 : index
    %c1_210 = arith.constant 1 : index
    %c0_211 = arith.constant 0 : index
    %176 = vector.load %arg9[%c0_207, %c0_208, %c0_209, %c1_210, %c0_211] : memref<4x4x5x5x64xbf16, #tpu.memory_space<vmem>>, vector<1x1x4x4x64xbf16>
    %177 = vector.shape_cast %176 : vector<1x1x4x4x64xbf16> to vector<4x4x64xbf16>
    %178 = vector.shape_cast %177 : vector<4x4x64xbf16> to vector<16x64xbf16>
    %c2_212 = arith.constant 2 : index
    %c2_213 = arith.constant 2 : index
    %c0_214 = arith.constant 0 : index
    %c0_215 = arith.constant 0 : index
    %c0_216 = arith.constant 0 : index
    %179 = vector.load %arg9[%c2_212, %c2_213, %c0_214, %c0_215, %c0_216] : memref<4x4x5x5x64xbf16, #tpu.memory_space<vmem>>, vector<1x1x4x4x64xbf16>
    %180 = vector.shape_cast %179 : vector<1x1x4x4x64xbf16> to vector<4x4x64xbf16>
    %181 = vector.shape_cast %180 : vector<4x4x64xbf16> to vector<16x64xbf16>
    %c2_217 = arith.constant 2 : index
    %c0_218 = arith.constant 0 : index
    %c0_219 = arith.constant 0 : index
    %c1_220 = arith.constant 1 : index
    %c0_221 = arith.constant 0 : index
    %182 = vector.load %arg9[%c2_217, %c0_218, %c0_219, %c1_220, %c0_221] : memref<4x4x5x5x64xbf16, #tpu.memory_space<vmem>>, vector<1x1x4x4x64xbf16>
    %183 = vector.shape_cast %182 : vector<1x1x4x4x64xbf16> to vector<4x4x64xbf16>
    %184 = vector.shape_cast %183 : vector<4x4x64xbf16> to vector<16x64xbf16>
    %185 = tpu.concatenate %175, %178, %181, %184 in 0 : vector<16x64xbf16>, vector<16x64xbf16>, vector<16x64xbf16>, vector<16x64xbf16> -> vector<64x64xbf16>
    %c128 = arith.constant 128 : index
    %c0_222 = arith.constant 0 : index
    %186 = vector.load %arg4[%c128, %c0_222] : memref<576x64xbf16, #tpu.memory_space<vmem>>, vector<64x64xbf16>
    %cst_223 = arith.constant dense<0.000000e+00> : vector<64x64xf32>
    %187 = tpu.matmul %185, %186, %cst_223 {dimension_numbers = #tpu.dot_dimension_numbers<[1], [0], [0], [1], [0, 0, 1, 1], [], []>} : vector<64x64xbf16>, vector<64x64xbf16>, vector<64x64xf32> -> vector<64x64xf32>
    %188 = arith.addf %172, %187 : vector<64x64xf32>
    %c1_224 = arith.constant 1 : index
    %c0_225 = arith.constant 0 : index
    %c0_226 = arith.constant 0 : index
    %c0_227 = arith.constant 0 : index
    %c0_228 = arith.constant 0 : index
    %189 = vector.load %arg9[%c1_224, %c0_225, %c0_226, %c0_227, %c0_228] : memref<4x4x5x5x64xbf16, #tpu.memory_space<vmem>>, vector<1x1x4x4x64xbf16>
    %190 = vector.shape_cast %189 : vector<1x1x4x4x64xbf16> to vector<4x4x64xbf16>
    %191 = vector.shape_cast %190 : vector<4x4x64xbf16> to vector<16x64xbf16>
    %c1_229 = arith.constant 1 : index
    %c2_230 = arith.constant 2 : index
    %c0_231 = arith.constant 0 : index
    %c0_232 = arith.constant 0 : index
    %c0_233 = arith.constant 0 : index
    %192 = vector.load %arg9[%c1_229, %c2_230, %c0_231, %c0_232, %c0_233] : memref<4x4x5x5x64xbf16, #tpu.memory_space<vmem>>, vector<1x1x4x4x64xbf16>
    %193 = vector.shape_cast %192 : vector<1x1x4x4x64xbf16> to vector<4x4x64xbf16>
    %194 = vector.shape_cast %193 : vector<4x4x64xbf16> to vector<16x64xbf16>
    %c3_234 = arith.constant 3 : index
    %c0_235 = arith.constant 0 : index
    %c0_236 = arith.constant 0 : index
    %c0_237 = arith.constant 0 : index
    %c0_238 = arith.constant 0 : index
    %195 = vector.load %arg9[%c3_234, %c0_235, %c0_236, %c0_237, %c0_238] : memref<4x4x5x5x64xbf16, #tpu.memory_space<vmem>>, vector<1x1x4x4x64xbf16>
    %196 = vector.shape_cast %195 : vector<1x1x4x4x64xbf16> to vector<4x4x64xbf16>
    %197 = vector.shape_cast %196 : vector<4x4x64xbf16> to vector<16x64xbf16>
    %c3_239 = arith.constant 3 : index
    %c2_240 = arith.constant 2 : index
    %c0_241 = arith.constant 0 : index
    %c0_242 = arith.constant 0 : index
    %c0_243 = arith.constant 0 : index
    %198 = vector.load %arg9[%c3_239, %c2_240, %c0_241, %c0_242, %c0_243] : memref<4x4x5x5x64xbf16, #tpu.memory_space<vmem>>, vector<1x1x4x4x64xbf16>
    %199 = vector.shape_cast %198 : vector<1x1x4x4x64xbf16> to vector<4x4x64xbf16>
    %200 = vector.shape_cast %199 : vector<4x4x64xbf16> to vector<16x64xbf16>
    %201 = tpu.concatenate %191, %194, %197, %200 in 0 : vector<16x64xbf16>, vector<16x64xbf16>, vector<16x64xbf16>, vector<16x64xbf16> -> vector<64x64xbf16>
    %c192 = arith.constant 192 : index
    %c0_244 = arith.constant 0 : index
    %202 = vector.load %arg4[%c192, %c0_244] : memref<576x64xbf16, #tpu.memory_space<vmem>>, vector<64x64xbf16>
    %cst_245 = arith.constant dense<0.000000e+00> : vector<64x64xf32>
    %203 = tpu.matmul %201, %202, %cst_245 {dimension_numbers = #tpu.dot_dimension_numbers<[1], [0], [0], [1], [0, 0, 1, 1], [], []>} : vector<64x64xbf16>, vector<64x64xbf16>, vector<64x64xf32> -> vector<64x64xf32>
    %204 = arith.addf %188, %203 : vector<64x64xf32>
    %c1_246 = arith.constant 1 : index
    %c1_247 = arith.constant 1 : index
    %c0_248 = arith.constant 0 : index
    %c0_249 = arith.constant 0 : index
    %c0_250 = arith.constant 0 : index
    %205 = vector.load %arg9[%c1_246, %c1_247, %c0_248, %c0_249, %c0_250] : memref<4x4x5x5x64xbf16, #tpu.memory_space<vmem>>, vector<1x1x4x4x64xbf16>
    %206 = vector.shape_cast %205 : vector<1x1x4x4x64xbf16> to vector<4x4x64xbf16>
    %207 = vector.shape_cast %206 : vector<4x4x64xbf16> to vector<16x64xbf16>
    %c1_251 = arith.constant 1 : index
    %c3_252 = arith.constant 3 : index
    %c0_253 = arith.constant 0 : index
    %c0_254 = arith.constant 0 : index
    %c0_255 = arith.constant 0 : index
    %208 = vector.load %arg9[%c1_251, %c3_252, %c0_253, %c0_254, %c0_255] : memref<4x4x5x5x64xbf16, #tpu.memory_space<vmem>>, vector<1x1x4x4x64xbf16>
    %209 = vector.shape_cast %208 : vector<1x1x4x4x64xbf16> to vector<4x4x64xbf16>
    %210 = vector.shape_cast %209 : vector<4x4x64xbf16> to vector<16x64xbf16>
    %c3_256 = arith.constant 3 : index
    %c1_257 = arith.constant 1 : index
    %c0_258 = arith.constant 0 : index
    %c0_259 = arith.constant 0 : index
    %c0_260 = arith.constant 0 : index
    %211 = vector.load %arg9[%c3_256, %c1_257, %c0_258, %c0_259, %c0_260] : memref<4x4x5x5x64xbf16, #tpu.memory_space<vmem>>, vector<1x1x4x4x64xbf16>
    %212 = vector.shape_cast %211 : vector<1x1x4x4x64xbf16> to vector<4x4x64xbf16>
    %213 = vector.shape_cast %212 : vector<4x4x64xbf16> to vector<16x64xbf16>
    %c3_261 = arith.constant 3 : index
    %c3_262 = arith.constant 3 : index
    %c0_263 = arith.constant 0 : index
    %c0_264 = arith.constant 0 : index
    %c0_265 = arith.constant 0 : index
    %214 = vector.load %arg9[%c3_261, %c3_262, %c0_263, %c0_264, %c0_265] : memref<4x4x5x5x64xbf16, #tpu.memory_space<vmem>>, vector<1x1x4x4x64xbf16>
    %215 = vector.shape_cast %214 : vector<1x1x4x4x64xbf16> to vector<4x4x64xbf16>
    %216 = vector.shape_cast %215 : vector<4x4x64xbf16> to vector<16x64xbf16>
    %217 = tpu.concatenate %207, %210, %213, %216 in 0 : vector<16x64xbf16>, vector<16x64xbf16>, vector<16x64xbf16>, vector<16x64xbf16> -> vector<64x64xbf16>
    %c256 = arith.constant 256 : index
    %c0_266 = arith.constant 0 : index
    %218 = vector.load %arg4[%c256, %c0_266] : memref<576x64xbf16, #tpu.memory_space<vmem>>, vector<64x64xbf16>
    %cst_267 = arith.constant dense<0.000000e+00> : vector<64x64xf32>
    %219 = tpu.matmul %217, %218, %cst_267 {dimension_numbers = #tpu.dot_dimension_numbers<[1], [0], [0], [1], [0, 0, 1, 1], [], []>} : vector<64x64xbf16>, vector<64x64xbf16>, vector<64x64xf32> -> vector<64x64xf32>
    %220 = arith.addf %204, %219 : vector<64x64xf32>
    %c1_268 = arith.constant 1 : index
    %c2_269 = arith.constant 2 : index
    %c0_270 = arith.constant 0 : index
    %c0_271 = arith.constant 0 : index
    %c0_272 = arith.constant 0 : index
    %221 = vector.load %arg9[%c1_268, %c2_269, %c0_270, %c0_271, %c0_272] : memref<4x4x5x5x64xbf16, #tpu.memory_space<vmem>>, vector<1x1x4x4x64xbf16>
    %222 = vector.shape_cast %221 : vector<1x1x4x4x64xbf16> to vector<4x4x64xbf16>
    %223 = vector.shape_cast %222 : vector<4x4x64xbf16> to vector<16x64xbf16>
    %c1_273 = arith.constant 1 : index
    %c0_274 = arith.constant 0 : index
    %c0_275 = arith.constant 0 : index
    %c1_276 = arith.constant 1 : index
    %c0_277 = arith.constant 0 : index
    %224 = vector.load %arg9[%c1_273, %c0_274, %c0_275, %c1_276, %c0_277] : memref<4x4x5x5x64xbf16, #tpu.memory_space<vmem>>, vector<1x1x4x4x64xbf16>
    %225 = vector.shape_cast %224 : vector<1x1x4x4x64xbf16> to vector<4x4x64xbf16>
    %226 = vector.shape_cast %225 : vector<4x4x64xbf16> to vector<16x64xbf16>
    %c3_278 = arith.constant 3 : index
    %c2_279 = arith.constant 2 : index
    %c0_280 = arith.constant 0 : index
    %c0_281 = arith.constant 0 : index
    %c0_282 = arith.constant 0 : index
    %227 = vector.load %arg9[%c3_278, %c2_279, %c0_280, %c0_281, %c0_282] : memref<4x4x5x5x64xbf16, #tpu.memory_space<vmem>>, vector<1x1x4x4x64xbf16>
    %228 = vector.shape_cast %227 : vector<1x1x4x4x64xbf16> to vector<4x4x64xbf16>
    %229 = vector.shape_cast %228 : vector<4x4x64xbf16> to vector<16x64xbf16>
    %c3_283 = arith.constant 3 : index
    %c0_284 = arith.constant 0 : index
    %c0_285 = arith.constant 0 : index
    %c1_286 = arith.constant 1 : index
    %c0_287 = arith.constant 0 : index
    %230 = vector.load %arg9[%c3_283, %c0_284, %c0_285, %c1_286, %c0_287] : memref<4x4x5x5x64xbf16, #tpu.memory_space<vmem>>, vector<1x1x4x4x64xbf16>
    %231 = vector.shape_cast %230 : vector<1x1x4x4x64xbf16> to vector<4x4x64xbf16>
    %232 = vector.shape_cast %231 : vector<4x4x64xbf16> to vector<16x64xbf16>
    %233 = tpu.concatenate %223, %226, %229, %232 in 0 : vector<16x64xbf16>, vector<16x64xbf16>, vector<16x64xbf16>, vector<16x64xbf16> -> vector<64x64xbf16>
    %c320 = arith.constant 320 : index
    %c0_288 = arith.constant 0 : index
    %234 = vector.load %arg4[%c320, %c0_288] : memref<576x64xbf16, #tpu.memory_space<vmem>>, vector<64x64xbf16>
    %cst_289 = arith.constant dense<0.000000e+00> : vector<64x64xf32>
    %235 = tpu.matmul %233, %234, %cst_289 {dimension_numbers = #tpu.dot_dimension_numbers<[1], [0], [0], [1], [0, 0, 1, 1], [], []>} : vector<64x64xbf16>, vector<64x64xbf16>, vector<64x64xf32> -> vector<64x64xf32>
    %236 = arith.addf %220, %235 : vector<64x64xf32>
    %c2_290 = arith.constant 2 : index
    %c0_291 = arith.constant 0 : index
    %c0_292 = arith.constant 0 : index
    %c0_293 = arith.constant 0 : index
    %c0_294 = arith.constant 0 : index
    %237 = vector.load %arg9[%c2_290, %c0_291, %c0_292, %c0_293, %c0_294] : memref<4x4x5x5x64xbf16, #tpu.memory_space<vmem>>, vector<1x1x4x4x64xbf16>
    %238 = vector.shape_cast %237 : vector<1x1x4x4x64xbf16> to vector<4x4x64xbf16>
    %239 = vector.shape_cast %238 : vector<4x4x64xbf16> to vector<16x64xbf16>
    %c2_295 = arith.constant 2 : index
    %c2_296 = arith.constant 2 : index
    %c0_297 = arith.constant 0 : index
    %c0_298 = arith.constant 0 : index
    %c0_299 = arith.constant 0 : index
    %240 = vector.load %arg9[%c2_295, %c2_296, %c0_297, %c0_298, %c0_299] : memref<4x4x5x5x64xbf16, #tpu.memory_space<vmem>>, vector<1x1x4x4x64xbf16>
    %241 = vector.shape_cast %240 : vector<1x1x4x4x64xbf16> to vector<4x4x64xbf16>
    %242 = vector.shape_cast %241 : vector<4x4x64xbf16> to vector<16x64xbf16>
    %c0_300 = arith.constant 0 : index
    %c0_301 = arith.constant 0 : index
    %c1_302 = arith.constant 1 : index
    %c0_303 = arith.constant 0 : index
    %c0_304 = arith.constant 0 : index
    %243 = vector.load %arg9[%c0_300, %c0_301, %c1_302, %c0_303, %c0_304] : memref<4x4x5x5x64xbf16, #tpu.memory_space<vmem>>, vector<1x1x4x4x64xbf16>
    %244 = vector.shape_cast %243 : vector<1x1x4x4x64xbf16> to vector<4x4x64xbf16>
    %245 = vector.shape_cast %244 : vector<4x4x64xbf16> to vector<16x64xbf16>
    %c0_305 = arith.constant 0 : index
    %c2_306 = arith.constant 2 : index
    %c1_307 = arith.constant 1 : index
    %c0_308 = arith.constant 0 : index
    %c0_309 = arith.constant 0 : index
    %246 = vector.load %arg9[%c0_305, %c2_306, %c1_307, %c0_308, %c0_309] : memref<4x4x5x5x64xbf16, #tpu.memory_space<vmem>>, vector<1x1x4x4x64xbf16>
    %247 = vector.shape_cast %246 : vector<1x1x4x4x64xbf16> to vector<4x4x64xbf16>
    %248 = vector.shape_cast %247 : vector<4x4x64xbf16> to vector<16x64xbf16>
    %249 = tpu.concatenate %239, %242, %245, %248 in 0 : vector<16x64xbf16>, vector<16x64xbf16>, vector<16x64xbf16>, vector<16x64xbf16> -> vector<64x64xbf16>
    %c384 = arith.constant 384 : index
    %c0_310 = arith.constant 0 : index
    %250 = vector.load %arg4[%c384, %c0_310] : memref<576x64xbf16, #tpu.memory_space<vmem>>, vector<64x64xbf16>
    %cst_311 = arith.constant dense<0.000000e+00> : vector<64x64xf32>
    %251 = tpu.matmul %249, %250, %cst_311 {dimension_numbers = #tpu.dot_dimension_numbers<[1], [0], [0], [1], [0, 0, 1, 1], [], []>} : vector<64x64xbf16>, vector<64x64xbf16>, vector<64x64xf32> -> vector<64x64xf32>
    %252 = arith.addf %236, %251 : vector<64x64xf32>
    %c2_312 = arith.constant 2 : index
    %c1_313 = arith.constant 1 : index
    %c0_314 = arith.constant 0 : index
    %c0_315 = arith.constant 0 : index
    %c0_316 = arith.constant 0 : index
    %253 = vector.load %arg9[%c2_312, %c1_313, %c0_314, %c0_315, %c0_316] : memref<4x4x5x5x64xbf16, #tpu.memory_space<vmem>>, vector<1x1x4x4x64xbf16>
    %254 = vector.shape_cast %253 : vector<1x1x4x4x64xbf16> to vector<4x4x64xbf16>
    %255 = vector.shape_cast %254 : vector<4x4x64xbf16> to vector<16x64xbf16>
    %c2_317 = arith.constant 2 : index
    %c3_318 = arith.constant 3 : index
    %c0_319 = arith.constant 0 : index
    %c0_320 = arith.constant 0 : index
    %c0_321 = arith.constant 0 : index
    %256 = vector.load %arg9[%c2_317, %c3_318, %c0_319, %c0_320, %c0_321] : memref<4x4x5x5x64xbf16, #tpu.memory_space<vmem>>, vector<1x1x4x4x64xbf16>
    %257 = vector.shape_cast %256 : vector<1x1x4x4x64xbf16> to vector<4x4x64xbf16>
    %258 = vector.shape_cast %257 : vector<4x4x64xbf16> to vector<16x64xbf16>
    %c0_322 = arith.constant 0 : index
    %c1_323 = arith.constant 1 : index
    %c1_324 = arith.constant 1 : index
    %c0_325 = arith.constant 0 : index
    %c0_326 = arith.constant 0 : index
    %259 = vector.load %arg9[%c0_322, %c1_323, %c1_324, %c0_325, %c0_326] : memref<4x4x5x5x64xbf16, #tpu.memory_space<vmem>>, vector<1x1x4x4x64xbf16>
    %260 = vector.shape_cast %259 : vector<1x1x4x4x64xbf16> to vector<4x4x64xbf16>
    %261 = vector.shape_cast %260 : vector<4x4x64xbf16> to vector<16x64xbf16>
    %c0_327 = arith.constant 0 : index
    %c3_328 = arith.constant 3 : index
    %c1_329 = arith.constant 1 : index
    %c0_330 = arith.constant 0 : index
    %c0_331 = arith.constant 0 : index
    %262 = vector.load %arg9[%c0_327, %c3_328, %c1_329, %c0_330, %c0_331] : memref<4x4x5x5x64xbf16, #tpu.memory_space<vmem>>, vector<1x1x4x4x64xbf16>
    %263 = vector.shape_cast %262 : vector<1x1x4x4x64xbf16> to vector<4x4x64xbf16>
    %264 = vector.shape_cast %263 : vector<4x4x64xbf16> to vector<16x64xbf16>
    %265 = tpu.concatenate %255, %258, %261, %264 in 0 : vector<16x64xbf16>, vector<16x64xbf16>, vector<16x64xbf16>, vector<16x64xbf16> -> vector<64x64xbf16>
    %c448 = arith.constant 448 : index
    %c0_332 = arith.constant 0 : index
    %266 = vector.load %arg4[%c448, %c0_332] : memref<576x64xbf16, #tpu.memory_space<vmem>>, vector<64x64xbf16>
    %cst_333 = arith.constant dense<0.000000e+00> : vector<64x64xf32>
    %267 = tpu.matmul %265, %266, %cst_333 {dimension_numbers = #tpu.dot_dimension_numbers<[1], [0], [0], [1], [0, 0, 1, 1], [], []>} : vector<64x64xbf16>, vector<64x64xbf16>, vector<64x64xf32> -> vector<64x64xf32>
    %268 = arith.addf %252, %267 : vector<64x64xf32>
    %c2_334 = arith.constant 2 : index
    %c2_335 = arith.constant 2 : index
    %c0_336 = arith.constant 0 : index
    %c0_337 = arith.constant 0 : index
    %c0_338 = arith.constant 0 : index
    %269 = vector.load %arg9[%c2_334, %c2_335, %c0_336, %c0_337, %c0_338] : memref<4x4x5x5x64xbf16, #tpu.memory_space<vmem>>, vector<1x1x4x4x64xbf16>
    %270 = vector.shape_cast %269 : vector<1x1x4x4x64xbf16> to vector<4x4x64xbf16>
    %271 = vector.shape_cast %270 : vector<4x4x64xbf16> to vector<16x64xbf16>
    %c2_339 = arith.constant 2 : index
    %c0_340 = arith.constant 0 : index
    %c0_341 = arith.constant 0 : index
    %c1_342 = arith.constant 1 : index
    %c0_343 = arith.constant 0 : index
    %272 = vector.load %arg9[%c2_339, %c0_340, %c0_341, %c1_342, %c0_343] : memref<4x4x5x5x64xbf16, #tpu.memory_space<vmem>>, vector<1x1x4x4x64xbf16>
    %273 = vector.shape_cast %272 : vector<1x1x4x4x64xbf16> to vector<4x4x64xbf16>
    %274 = vector.shape_cast %273 : vector<4x4x64xbf16> to vector<16x64xbf16>
    %c0_344 = arith.constant 0 : index
    %c2_345 = arith.constant 2 : index
    %c1_346 = arith.constant 1 : index
    %c0_347 = arith.constant 0 : index
    %c0_348 = arith.constant 0 : index
    %275 = vector.load %arg9[%c0_344, %c2_345, %c1_346, %c0_347, %c0_348] : memref<4x4x5x5x64xbf16, #tpu.memory_space<vmem>>, vector<1x1x4x4x64xbf16>
    %276 = vector.shape_cast %275 : vector<1x1x4x4x64xbf16> to vector<4x4x64xbf16>
    %277 = vector.shape_cast %276 : vector<4x4x64xbf16> to vector<16x64xbf16>
    %c0_349 = arith.constant 0 : index
    %c0_350 = arith.constant 0 : index
    %c1_351 = arith.constant 1 : index
    %c1_352 = arith.constant 1 : index
    %c0_353 = arith.constant 0 : index
    %278 = vector.load %arg9[%c0_349, %c0_350, %c1_351, %c1_352, %c0_353] : memref<4x4x5x5x64xbf16, #tpu.memory_space<vmem>>, vector<1x1x4x4x64xbf16>
    %279 = vector.shape_cast %278 : vector<1x1x4x4x64xbf16> to vector<4x4x64xbf16>
    %280 = vector.shape_cast %279 : vector<4x4x64xbf16> to vector<16x64xbf16>
    %281 = tpu.concatenate %271, %274, %277, %280 in 0 : vector<16x64xbf16>, vector<16x64xbf16>, vector<16x64xbf16>, vector<16x64xbf16> -> vector<64x64xbf16>
    %c512 = arith.constant 512 : index
    %c0_354 = arith.constant 0 : index
    %282 = vector.load %arg4[%c512, %c0_354] : memref<576x64xbf16, #tpu.memory_space<vmem>>, vector<64x64xbf16>
    %cst_355 = arith.constant dense<0.000000e+00> : vector<64x64xf32>
    %283 = tpu.matmul %281, %282, %cst_355 {dimension_numbers = #tpu.dot_dimension_numbers<[1], [0], [0], [1], [0, 0, 1, 1], [], []>} : vector<64x64xbf16>, vector<64x64xbf16>, vector<64x64xf32> -> vector<64x64xf32>
    %284 = arith.addf %268, %283 : vector<64x64xf32>
    %c0_356 = arith.constant 0 : index
    %c0_357 = arith.constant 0 : index
    %285 = vector.load %arg5[%c0_356, %c0_357] : memref<1x64xf32, #tpu.memory_space<vmem>>, vector<1x64xf32>
    %286 = vector.broadcast %285 : vector<1x64xf32> to vector<64x64xf32>
    %287 = arith.addf %284, %286 : vector<64x64xf32>
    %cst_358 = arith.constant 0.000000e+00 : f32
    %288 = vector.broadcast %cst_358 : f32 to vector<64x64xf32>
    %289 = arith.maximumf %287, %288 : vector<64x64xf32>
    %290 = arith.truncf %289 : vector<64x64xf32> to vector<64x64xbf16>
    %291 = vector.extract_strided_slice %290 {offsets = [0, 0], sizes = [16, 64], strides = [1, 1]} : vector<64x64xbf16> to vector<16x64xbf16>
    %292 = vector.shape_cast %291 : vector<16x64xbf16> to vector<4x4x64xbf16>
    %c1_359 = arith.constant 1 : index
    %c1_360 = arith.constant 1 : index
    %c0_361 = arith.constant 0 : index
    %c0_362 = arith.constant 0 : index
    %c0_363 = arith.constant 0 : index
    %293 = vector.load %arg10[%c1_359, %c1_360, %c0_361, %c0_362, %c0_363] : memref<2x2x5x5x64xbf16, #tpu.memory_space<vmem>>, vector<1x1x4x4x64xbf16>
    %294 = vector.shape_cast %293 : vector<1x1x4x4x64xbf16> to vector<4x4x64xbf16>
    %295 = vector.shape_cast %292 : vector<4x4x64xbf16> to vector<1x1x4x4x64xbf16>
    tpu.vector_store %arg10[%c1_359, %c1_360, %c0_361, %c0_362, %c0_363], %295 {strides = array<i32>} : memref<2x2x5x5x64xbf16, #tpu.memory_space<vmem>>, vector<1x1x4x4x64xbf16>,
    %296 = vector.extract_strided_slice %290 {offsets = [16, 0], sizes = [16, 64], strides = [1, 1]} : vector<64x64xbf16> to vector<16x64xbf16>
    %297 = vector.shape_cast %296 : vector<16x64xbf16> to vector<4x4x64xbf16>
    %c1_364 = arith.constant 1 : index
    %c0_365 = arith.constant 0 : index
    %c0_366 = arith.constant 0 : index
    %c1_367 = arith.constant 1 : index
    %c0_368 = arith.constant 0 : index
    %298 = vector.load %arg10[%c1_364, %c0_365, %c0_366, %c1_367, %c0_368] : memref<2x2x5x5x64xbf16, #tpu.memory_space<vmem>>, vector<1x1x4x4x64xbf16>
    %299 = vector.shape_cast %298 : vector<1x1x4x4x64xbf16> to vector<4x4x64xbf16>
    %300 = vector.shape_cast %297 : vector<4x4x64xbf16> to vector<1x1x4x4x64xbf16>
    tpu.vector_store %arg10[%c1_364, %c0_365, %c0_366, %c1_367, %c0_368], %300 {strides = array<i32>} : memref<2x2x5x5x64xbf16, #tpu.memory_space<vmem>>, vector<1x1x4x4x64xbf16>,
    %301 = vector.extract_strided_slice %290 {offsets = [32, 0], sizes = [16, 64], strides = [1, 1]} : vector<64x64xbf16> to vector<16x64xbf16>
    %302 = vector.shape_cast %301 : vector<16x64xbf16> to vector<4x4x64xbf16>
    %c0_369 = arith.constant 0 : index
    %c1_370 = arith.constant 1 : index
    %c1_371 = arith.constant 1 : index
    %c0_372 = arith.constant 0 : index
    %c0_373 = arith.constant 0 : index
    %303 = vector.load %arg10[%c0_369, %c1_370, %c1_371, %c0_372, %c0_373] : memref<2x2x5x5x64xbf16, #tpu.memory_space<vmem>>, vector<1x1x4x4x64xbf16>
    %304 = vector.shape_cast %303 : vector<1x1x4x4x64xbf16> to vector<4x4x64xbf16>
    %305 = vector.shape_cast %302 : vector<4x4x64xbf16> to vector<1x1x4x4x64xbf16>
    tpu.vector_store %arg10[%c0_369, %c1_370, %c1_371, %c0_372, %c0_373], %305 {strides = array<i32>} : memref<2x2x5x5x64xbf16, #tpu.memory_space<vmem>>, vector<1x1x4x4x64xbf16>,
    %306 = vector.extract_strided_slice %290 {offsets = [48, 0], sizes = [16, 64], strides = [1, 1]} : vector<64x64xbf16> to vector<16x64xbf16>
    %307 = vector.shape_cast %306 : vector<16x64xbf16> to vector<4x4x64xbf16>
    %c0_374 = arith.constant 0 : index
    %c0_375 = arith.constant 0 : index
    %c1_376 = arith.constant 1 : index
    %c1_377 = arith.constant 1 : index
    %c0_378 = arith.constant 0 : index
    %308 = vector.load %arg10[%c0_374, %c0_375, %c1_376, %c1_377, %c0_378] : memref<2x2x5x5x64xbf16, #tpu.memory_space<vmem>>, vector<1x1x4x4x64xbf16>
    %309 = vector.shape_cast %308 : vector<1x1x4x4x64xbf16> to vector<4x4x64xbf16>
    %310 = vector.shape_cast %307 : vector<4x4x64xbf16> to vector<1x1x4x4x64xbf16>
    tpu.vector_store %arg10[%c0_374, %c0_375, %c1_376, %c1_377, %c0_378], %310 {strides = array<i32>} : memref<2x2x5x5x64xbf16, #tpu.memory_space<vmem>>, vector<1x1x4x4x64xbf16>,
    %cst_379 = arith.constant 0.000000e+00 : f32
    %311 = vector.broadcast %cst_379 : f32 to vector<16x32xf32>
    %c0_380 = arith.constant 0 : index
    %c0_381 = arith.constant 0 : index
    %c0_382 = arith.constant 0 : index
    %c0_383 = arith.constant 0 : index
    %c0_384 = arith.constant 0 : index
    %312 = vector.load %arg10[%c0_380, %c0_381, %c0_382, %c0_383, %c0_384] : memref<2x2x5x5x64xbf16, #tpu.memory_space<vmem>>, vector<1x1x4x4x64xbf16>
    %313 = vector.shape_cast %312 : vector<1x1x4x4x64xbf16> to vector<4x4x64xbf16>
    %314 = vector.shape_cast %313 : vector<4x4x64xbf16> to vector<16x64xbf16>
    %c0_385 = arith.constant 0 : index
    %c0_386 = arith.constant 0 : index
    %315 = vector.load %arg6[%c0_385, %c0_386] : memref<576x32xbf16, #tpu.memory_space<vmem>>, vector<64x32xbf16>
    %cst_387 = arith.constant dense<0.000000e+00> : vector<16x32xf32>
    %316 = tpu.matmul %314, %315, %cst_387 {dimension_numbers = #tpu.dot_dimension_numbers<[1], [0], [0], [1], [0, 0, 1, 1], [], []>} : vector<16x64xbf16>, vector<64x32xbf16>, vector<16x32xf32> -> vector<16x32xf32>
    %317 = arith.addf %311, %316 : vector<16x32xf32>
    %c0_388 = arith.constant 0 : index
    %c1_389 = arith.constant 1 : index
    %c0_390 = arith.constant 0 : index
    %c0_391 = arith.constant 0 : index
    %c0_392 = arith.constant 0 : index
    %318 = vector.load %arg10[%c0_388, %c1_389, %c0_390, %c0_391, %c0_392] : memref<2x2x5x5x64xbf16, #tpu.memory_space<vmem>>, vector<1x1x4x4x64xbf16>
    %319 = vector.shape_cast %318 : vector<1x1x4x4x64xbf16> to vector<4x4x64xbf16>
    %320 = vector.shape_cast %319 : vector<4x4x64xbf16> to vector<16x64xbf16>
    %c64_393 = arith.constant 64 : index
    %c0_394 = arith.constant 0 : index
    %321 = vector.load %arg6[%c64_393, %c0_394] : memref<576x32xbf16, #tpu.memory_space<vmem>>, vector<64x32xbf16>
    %cst_395 = arith.constant dense<0.000000e+00> : vector<16x32xf32>
    %322 = tpu.matmul %320, %321, %cst_395 {dimension_numbers = #tpu.dot_dimension_numbers<[1], [0], [0], [1], [0, 0, 1, 1], [], []>} : vector<16x64xbf16>, vector<64x32xbf16>, vector<16x32xf32> -> vector<16x32xf32>
    %323 = arith.addf %317, %322 : vector<16x32xf32>
    %c0_396 = arith.constant 0 : index
    %c0_397 = arith.constant 0 : index
    %c0_398 = arith.constant 0 : index
    %c1_399 = arith.constant 1 : index
    %c0_400 = arith.constant 0 : index
    %324 = vector.load %arg10[%c0_396, %c0_397, %c0_398, %c1_399, %c0_400] : memref<2x2x5x5x64xbf16, #tpu.memory_space<vmem>>, vector<1x1x4x4x64xbf16>
    %325 = vector.shape_cast %324 : vector<1x1x4x4x64xbf16> to vector<4x4x64xbf16>
    %326 = vector.shape_cast %325 : vector<4x4x64xbf16> to vector<16x64xbf16>
    %c128_401 = arith.constant 128 : index
    %c0_402 = arith.constant 0 : index
    %327 = vector.load %arg6[%c128_401, %c0_402] : memref<576x32xbf16, #tpu.memory_space<vmem>>, vector<64x32xbf16>
    %cst_403 = arith.constant dense<0.000000e+00> : vector<16x32xf32>
    %328 = tpu.matmul %326, %327, %cst_403 {dimension_numbers = #tpu.dot_dimension_numbers<[1], [0], [0], [1], [0, 0, 1, 1], [], []>} : vector<16x64xbf16>, vector<64x32xbf16>, vector<16x32xf32> -> vector<16x32xf32>
    %329 = arith.addf %323, %328 : vector<16x32xf32>
    %c1_404 = arith.constant 1 : index
    %c0_405 = arith.constant 0 : index
    %c0_406 = arith.constant 0 : index
    %c0_407 = arith.constant 0 : index
    %c0_408 = arith.constant 0 : index
    %330 = vector.load %arg10[%c1_404, %c0_405, %c0_406, %c0_407, %c0_408] : memref<2x2x5x5x64xbf16, #tpu.memory_space<vmem>>, vector<1x1x4x4x64xbf16>
    %331 = vector.shape_cast %330 : vector<1x1x4x4x64xbf16> to vector<4x4x64xbf16>
    %332 = vector.shape_cast %331 : vector<4x4x64xbf16> to vector<16x64xbf16>
    %c192_409 = arith.constant 192 : index
    %c0_410 = arith.constant 0 : index
    %333 = vector.load %arg6[%c192_409, %c0_410] : memref<576x32xbf16, #tpu.memory_space<vmem>>, vector<64x32xbf16>
    %cst_411 = arith.constant dense<0.000000e+00> : vector<16x32xf32>
    %334 = tpu.matmul %332, %333, %cst_411 {dimension_numbers = #tpu.dot_dimension_numbers<[1], [0], [0], [1], [0, 0, 1, 1], [], []>} : vector<16x64xbf16>, vector<64x32xbf16>, vector<16x32xf32> -> vector<16x32xf32>
    %335 = arith.addf %329, %334 : vector<16x32xf32>
    %c1_412 = arith.constant 1 : index
    %c1_413 = arith.constant 1 : index
    %c0_414 = arith.constant 0 : index
    %c0_415 = arith.constant 0 : index
    %c0_416 = arith.constant 0 : index
    %336 = vector.load %arg10[%c1_412, %c1_413, %c0_414, %c0_415, %c0_416] : memref<2x2x5x5x64xbf16, #tpu.memory_space<vmem>>, vector<1x1x4x4x64xbf16>
    %337 = vector.shape_cast %336 : vector<1x1x4x4x64xbf16> to vector<4x4x64xbf16>
    %338 = vector.shape_cast %337 : vector<4x4x64xbf16> to vector<16x64xbf16>
    %c256_417 = arith.constant 256 : index
    %c0_418 = arith.constant 0 : index
    %339 = vector.load %arg6[%c256_417, %c0_418] : memref<576x32xbf16, #tpu.memory_space<vmem>>, vector<64x32xbf16>
    %cst_419 = arith.constant dense<0.000000e+00> : vector<16x32xf32>
    %340 = tpu.matmul %338, %339, %cst_419 {dimension_numbers = #tpu.dot_dimension_numbers<[1], [0], [0], [1], [0, 0, 1, 1], [], []>} : vector<16x64xbf16>, vector<64x32xbf16>, vector<16x32xf32> -> vector<16x32xf32>
    %341 = arith.addf %335, %340 : vector<16x32xf32>
    %c1_420 = arith.constant 1 : index
    %c0_421 = arith.constant 0 : index
    %c0_422 = arith.constant 0 : index
    %c1_423 = arith.constant 1 : index
    %c0_424 = arith.constant 0 : index
    %342 = vector.load %arg10[%c1_420, %c0_421, %c0_422, %c1_423, %c0_424] : memref<2x2x5x5x64xbf16, #tpu.memory_space<vmem>>, vector<1x1x4x4x64xbf16>
    %343 = vector.shape_cast %342 : vector<1x1x4x4x64xbf16> to vector<4x4x64xbf16>
    %344 = vector.shape_cast %343 : vector<4x4x64xbf16> to vector<16x64xbf16>
    %c320_425 = arith.constant 320 : index
    %c0_426 = arith.constant 0 : index
    %345 = vector.load %arg6[%c320_425, %c0_426] : memref<576x32xbf16, #tpu.memory_space<vmem>>, vector<64x32xbf16>
    %cst_427 = arith.constant dense<0.000000e+00> : vector<16x32xf32>
    %346 = tpu.matmul %344, %345, %cst_427 {dimension_numbers = #tpu.dot_dimension_numbers<[1], [0], [0], [1], [0, 0, 1, 1], [], []>} : vector<16x64xbf16>, vector<64x32xbf16>, vector<16x32xf32> -> vector<16x32xf32>
    %347 = arith.addf %341, %346 : vector<16x32xf32>
    %c0_428 = arith.constant 0 : index
    %c0_429 = arith.constant 0 : index
    %c1_430 = arith.constant 1 : index
    %c0_431 = arith.constant 0 : index
    %c0_432 = arith.constant 0 : index
    %348 = vector.load %arg10[%c0_428, %c0_429, %c1_430, %c0_431, %c0_432] : memref<2x2x5x5x64xbf16, #tpu.memory_space<vmem>>, vector<1x1x4x4x64xbf16>
    %349 = vector.shape_cast %348 : vector<1x1x4x4x64xbf16> to vector<4x4x64xbf16>
    %350 = vector.shape_cast %349 : vector<4x4x64xbf16> to vector<16x64xbf16>
    %c384_433 = arith.constant 384 : index
    %c0_434 = arith.constant 0 : index
    %351 = vector.load %arg6[%c384_433, %c0_434] : memref<576x32xbf16, #tpu.memory_space<vmem>>, vector<64x32xbf16>
    %cst_435 = arith.constant dense<0.000000e+00> : vector<16x32xf32>
    %352 = tpu.matmul %350, %351, %cst_435 {dimension_numbers = #tpu.dot_dimension_numbers<[1], [0], [0], [1], [0, 0, 1, 1], [], []>} : vector<16x64xbf16>, vector<64x32xbf16>, vector<16x32xf32> -> vector<16x32xf32>
    %353 = arith.addf %347, %352 : vector<16x32xf32>
    %c0_436 = arith.constant 0 : index
    %c1_437 = arith.constant 1 : index
    %c1_438 = arith.constant 1 : index
    %c0_439 = arith.constant 0 : index
    %c0_440 = arith.constant 0 : index
    %354 = vector.load %arg10[%c0_436, %c1_437, %c1_438, %c0_439, %c0_440] : memref<2x2x5x5x64xbf16, #tpu.memory_space<vmem>>, vector<1x1x4x4x64xbf16>
    %355 = vector.shape_cast %354 : vector<1x1x4x4x64xbf16> to vector<4x4x64xbf16>
    %356 = vector.shape_cast %355 : vector<4x4x64xbf16> to vector<16x64xbf16>
    %c448_441 = arith.constant 448 : index
    %c0_442 = arith.constant 0 : index
    %357 = vector.load %arg6[%c448_441, %c0_442] : memref<576x32xbf16, #tpu.memory_space<vmem>>, vector<64x32xbf16>
    %cst_443 = arith.constant dense<0.000000e+00> : vector<16x32xf32>
    %358 = tpu.matmul %356, %357, %cst_443 {dimension_numbers = #tpu.dot_dimension_numbers<[1], [0], [0], [1], [0, 0, 1, 1], [], []>} : vector<16x64xbf16>, vector<64x32xbf16>, vector<16x32xf32> -> vector<16x32xf32>
    %359 = arith.addf %353, %358 : vector<16x32xf32>
    %c0_444 = arith.constant 0 : index
    %c0_445 = arith.constant 0 : index
    %c1_446 = arith.constant 1 : index
    %c1_447 = arith.constant 1 : index
    %c0_448 = arith.constant 0 : index
    %360 = vector.load %arg10[%c0_444, %c0_445, %c1_446, %c1_447, %c0_448] : memref<2x2x5x5x64xbf16, #tpu.memory_space<vmem>>, vector<1x1x4x4x64xbf16>
    %361 = vector.shape_cast %360 : vector<1x1x4x4x64xbf16> to vector<4x4x64xbf16>
    %362 = vector.shape_cast %361 : vector<4x4x64xbf16> to vector<16x64xbf16>
    %c512_449 = arith.constant 512 : index
    %c0_450 = arith.constant 0 : index
    %363 = vector.load %arg6[%c512_449, %c0_450] : memref<576x32xbf16, #tpu.memory_space<vmem>>, vector<64x32xbf16>
    %cst_451 = arith.constant dense<0.000000e+00> : vector<16x32xf32>
    %364 = tpu.matmul %362, %363, %cst_451 {dimension_numbers = #tpu.dot_dimension_numbers<[1], [0], [0], [1], [0, 0, 1, 1], [], []>} : vector<16x64xbf16>, vector<64x32xbf16>, vector<16x32xf32> -> vector<16x32xf32>
    %365 = arith.addf %359, %364 : vector<16x32xf32>
    %c0_452 = arith.constant 0 : index
    %c0_453 = arith.constant 0 : index
    %366 = vector.load %arg7[%c0_452, %c0_453] : memref<1x32xf32, #tpu.memory_space<vmem>>, vector<1x32xf32>
    %367 = vector.broadcast %366 : vector<1x32xf32> to vector<16x32xf32>
    %368 = arith.addf %365, %367 : vector<16x32xf32>
    %cst_454 = arith.constant 0.000000e+00 : f32
    %369 = vector.broadcast %cst_454 : f32 to vector<16x32xf32>
    %370 = arith.maximumf %368, %369 : vector<16x32xf32>
    %371 = tpu.transpose %370, [1, 0] : vector<16x32xf32> -> vector<32x16xf32>
    %c0_455 = arith.constant 0 : index
    %c0_456 = arith.constant 0 : index
    %c0_457 = arith.constant 0 : index
    %372 = vector.load %arg8[%c0_455, %c0_456, %c0_457] : memref<1x32x16xf32, #tpu.memory_space<vmem>>, vector<1x32x16xf32>
    %373 = vector.shape_cast %372 : vector<1x32x16xf32> to vector<32x16xf32>
    %374 = vector.shape_cast %371 : vector<32x16xf32> to vector<1x32x16xf32>
    tpu.vector_store %arg8[%c0_455, %c0_456, %c0_457], %374 {strides = array<i32>} : memref<1x32x16xf32, #tpu.memory_space<vmem>>, vector<1x32x16xf32>,
    return
  }
  func.func @transform_0(%arg0: i32) -> (i32, i32, i32) {
    %c0_i32 = arith.constant 0 : i32
    %c0_i32_0 = arith.constant 0 : i32
    %c0_i32_1 = arith.constant 0 : i32
    return %arg0, %c0_i32, %c0_i32_0 : i32, i32, i32
  }
  func.func @transform_1(%arg0: i32) -> (i32, i32) {
    %c0_i32 = arith.constant 0 : i32
    %c0_i32_0 = arith.constant 0 : i32
    %c0_i32_1 = arith.constant 0 : i32
    return %c0_i32, %c0_i32_0 : i32, i32
  }
  func.func @transform_2(%arg0: i32) -> (i32, i32) {
    %c0_i32 = arith.constant 0 : i32
    %c0_i32_0 = arith.constant 0 : i32
    %c0_i32_1 = arith.constant 0 : i32
    return %c0_i32, %c0_i32_0 : i32, i32
  }
  func.func @transform_3(%arg0: i32) -> (i32, i32) {
    %c0_i32 = arith.constant 0 : i32
    %c0_i32_0 = arith.constant 0 : i32
    %c0_i32_1 = arith.constant 0 : i32
    return %c0_i32, %c0_i32_0 : i32, i32
  }
  func.func @transform_4(%arg0: i32) -> (i32, i32) {
    %c0_i32 = arith.constant 0 : i32
    %c0_i32_0 = arith.constant 0 : i32
    %c0_i32_1 = arith.constant 0 : i32
    return %c0_i32, %c0_i32_0 : i32, i32
  }
  func.func @transform_5(%arg0: i32) -> (i32, i32) {
    %c0_i32 = arith.constant 0 : i32
    %c0_i32_0 = arith.constant 0 : i32
    %c0_i32_1 = arith.constant 0 : i32
    return %c0_i32, %c0_i32_0 : i32, i32
  }
  func.func @transform_6(%arg0: i32) -> (i32, i32) {
    %c0_i32 = arith.constant 0 : i32
    %c0_i32_0 = arith.constant 0 : i32
    %c0_i32_1 = arith.constant 0 : i32
    return %c0_i32, %c0_i32_0 : i32, i32
  }
  func.func @transform_7(%arg0: i32) -> (i32, i32, i32) {
    %c0_i32 = arith.constant 0 : i32
    %c0_i32_0 = arith.constant 0 : i32
    %c0_i32_1 = arith.constant 0 : i32
    return %arg0, %c0_i32, %c0_i32_0 : i32, i32, i32
  }
}

</mosaic_0001>

<bundles_post_ra>
// kernel: motion_encoder_forward.1
= control target key start
LH: loop header
LB: loop body
LE: loop exit
PB: predicated region body
PF: predicated region fallthrough
CT: control target
= control target key end

     0   :  { %s5971_s24 = smov 0   ;;  %s6876_s0 = inlined_call_operand.vmem [shape: bf16[2,9,256], index: 0, kind: input, shape index: {}]   ;;  %s6877_s1 = inlined_call_operand.vmem [shape: bf16[64,9], index: 1, kind: input, shape index: {}]   ;;  %s6878_s2 = inlined_call_operand.vmem [shape: f32[64,1], index: 2, kind: input, shape index: {}]   ;;  %s6879_s3 = inlined_call_operand.vmem [shape: bf16[576,64], index: 3, kind: input, shape index: {}]   ;;  %s6880_s4 = inlined_call_operand.vmem [shape: f32[1,64], index: 4, kind: input, shape index: {}]   ;;  %s6881_s5 = inlined_call_operand.vmem [shape: bf16[576,32], index: 5, kind: input, shape index: {}]   ;;  %s6882_s6 = inlined_call_operand.vmem [shape: f32[1,32], index: 6, kind: input, shape index: {}]   ;;  %s6883_s7 = inlined_call_operand.vmem [shape: f32[2,32,16], index: 7, kind: output, shape index: {}]  }
   0x1 LB: > { %s4997_s25 = sadd.s32 4294967295, %s5924_s24   ;;  %p5001_p0 = scmp.ge.s32.totalorder %s5924_s24, 1  ;;  %s5924_s24 = sphi %s5971_s24, %s17_s24  }
   0x2   : > { %p237_p1 = scmp.lt.s32.totalorder %s5924_s24, 3 }
   0x4   : > { %p238_p2 = pnand %p5001_p0, %p237_p1 }
   0x5   : > { %p269_p3 = scmp.lt.s32.totalorder (!%p238_p2), %s4997_s25, 1  ;;  %vm501_vm0 = vcmask (!%p238_p2), 1043456   ;;  %vm502_vm1 = vcmask (!%p238_p2), 1044480   ;;  %v5926_v0 = vmov (!%p238_p2), 65535   ;;  %v5927_v2 = vmov (!%p238_p2), 0   ;;  %v412_v7 = vld [vmem:[%s6878_s2] sm:$0xff] (!%p238_p2) }
   0x6   : > { %241 = sbr.rel (%p238_p2) target bundleno = 1299 (0x513), region = 48  ;;  %v503_v1 = vsel (!%p238_p2), %vm501_vm0, 4294967295, %v5926_v0  ;;  %543 = vmatprep.mubr.bf16.mxu0 (!%p238_p2), %v5927_v2  ;;  %5637 = vset.pattern.permute.xlu0 (!%p238_p2), %v5927_v2  ;;  %v414_v8 = vld [vmem:[%s6878_s2 + $0x10] sm:$0xff] (!%p238_p2)  ;;  %v5738_v10 = vld [vmem:[%s6877_s1] sm:$0xff] (!%p238_p2)   ;;  %vm488_vm2 = vcmask (!%p238_p2), 72704   ;;  %v413_v11 = vld [vmem:[%s6878_s2 + $0x8] sm:$0xff] (!%p238_p2) }
   0x7   : > { %5638 = vset.pattern.permute.xlu1 (!%p238_p2), %v5927_v2  ;;  %v504_v3 = vsel (!%p238_p2), %vm502_vm1, %v503_v1, 0  ;;  %422 = vperm.xlu0 (!%p238_p2), %5637, %v412_v7   ;;  %v415_v12 = vld [vmem:[%s6878_s2 + $0x18] sm:$0xff] (!%p238_p2)  ;;  %v416_v13 = vld [vmem:[%s6878_s2 + $0x20] sm:$0xff] (!%p238_p2)  ;;  %v417_v14 = vld [vmem:[%s6878_s2 + $0x28] sm:$0xff] (!%p238_p2)  ;;  %vm286_vm3 = vcmask (!%p238_p2), 516096   ;;  %vm280_vm6 = vcmask (!%p238_p2), 518144  }
   0x8   : > { %432 = vperm.xlu1 (!%p238_p2), %5638, %v414_v8   ;;  %v5739_v15 = vld [vmem:[%s6877_s1 + $0x8] sm:$0xff] (!%p238_p2)   ;;  %v418_v16 = vld [vmem:[%s6878_s2 + $0x30] sm:$0xff] (!%p238_p2)  ;;  %v419_v17 = vld [vmem:[%s6878_s2 + $0x38] sm:$0xff] (!%p238_p2)  ;;  %vm287_vm4 = vsmask.f32 (!%p238_p2), 256  ;;  %vm1017_vm9 = vcmask (!%p238_p2), 517120  }
   0x9   : > { %v5740_v18 = vld [vmem:[%s6877_s1 + $0x10] sm:$0xff] (!%p238_p2)   ;;  %v5741_v19 = vld [vmem:[%s6877_s1 + $0x18] sm:$0xff] (!%p238_p2)   ;;  %vm6025_vm5 = vmand (!%p238_p2), %vm286_vm3, %vm287_vm4  ;;  %vm281_vm7 = vsmask.f32 (!%p238_p2), 2304  ;;  %vm1092_vm10 = vsmask.f32 (!%p238_p2), 2306 }
   0xa   : > { %vm6054_vm8 = vmand (!%p238_p2), %vm280_vm6, %vm281_vm7  ;;  %vm1608_vm12 = vcmask (!%p238_p2), 523264   ;;  %vm1827_vm13 = vsmask.f32 (!%p238_p2), 1280  ;;  %vm1828_vm14 = vsmask.f32 (!%p238_p2), 3336  ;;  %vm5930_vm4 = vmmov (!%p238_p2), 0  }
   0xb   : > { %427 = vperm.xlu0 (!%p238_p2), %5637, %v413_v11   ;;  %vm6164_vm11 = vmand (!%p238_p2), %vm280_vm6, %vm1092_vm10  ;;  %vm1830_vm15 = vsmask.f32 (!%p238_p2), 5392  ;;  %vm1832_vm0 = vsmask.f32 (!%p238_p2), 7448 }
   0xc   : > { %437 = vperm.xlu1 (!%p238_p2), %5638, %v415_v12   ;;  %vm6266_vm1 = vmor (!%p238_p2), %vm1827_vm13, %vm1828_vm14 }
   0xd   : > { %s6895_s25 = smov (!%p269_p3, %s4997_s25), 1 }
   0xe   : > { %s5189_s26 = sshll.u32 %s6895_s25, 4  ;;  %s5190_s11 = sshll.u32 %s6895_s25, 5 }
   0xf   : > { %s273_s29 = scalar_lea.vmem %s6876_s0, %s5189_s26  ;;  %442 = vperm.xlu0 %5637, %v416_v13   ;;  %s278_s14 = scalar_lea.vmem %s6883_s7, %s5190_s11 }
  0x10   : > { %v5735_v4 = vld [vmem:[%s273_s29 + $0x4] ss:$8 sps:$4 sm:$0x1f]   ;;  %v5737_v5 = vld [vmem:[%s273_s29] ss:$8 sps:$4 sm:$0x1f]   ;;  %447 = vperm.xlu1 %5638, %v417_v14  }
  0x11   : > { %v509_v6 = vand.u32 %v5735_v4, %v504_v3  ;;  %v506_v9 = vand.u32 %v5737_v5, %v504_v3 }
  0x13   : > { %511 = vmatprep.subr.bf16.mxu0 %v509_v6  ;;  %452 = vperm.xlu0 %5637, %v418_v16  }
  0x14   : > { %512 = vmatpush1.bf16.msra.mxu0 %v506_v9  ;;  %457 = vperm.xlu1 %5638, %v419_v17  }
  0x17   : > { %5012 = vmatmul.mubr.msk.bf16.vlgmr.msra.gmra.mrb[0].mxu0 %vm488_vm2, %v5738_v10 }
  0x18   : > { %553 = vmatprep.mubr.bf16.mxu0 %v5927_v2 }
  0x1f   : > { %5013 = vmatmul.mubr.msk.bf16.gmra.mrb[4].mxu0 %vm488_vm2, %v5739_v15 }
  0x20   : > { %563 = vmatprep.mubr.bf16.mxu0 %v5927_v2 }
  0x27   : > { %5014 = vmatmul.mubr.msk.bf16.gmra.mrb[8].mxu0 %vm488_vm2, %v5740_v18 }
  0x28   : > { %573 = vmatprep.mubr.bf16.mxu0 %v5927_v2 }
  0x2f   : > { %5015 = vmatmul.mubr.msk.bf16.gmra.mrb[12].mxu0 %vm488_vm2, %v5741_v19  ;;  %vm1831_vm2 = vmor %vm6266_vm1, %vm1830_vm15 }
  0x30   : > { %vm6305_vm3 = vmor %vm1831_vm2, %vm1832_vm0 }
  0x86   : > { %v423_v20 = vpop.permute.xlu0 %422 }
  0x87   : > { %v433_v30 = vpop.permute.xlu1 %432 }
  0x8a   : > { %v428_v24 = vpop.permute.xlu0 %427 }
  0x8b   : > { %v438_v40 = vpop.permute.xlu1 %437 }
  0x8e   : > { %v443_v51 = vpop.permute.xlu0 %442 }
  0x8f   : > { %v448_v56 = vpop.permute.xlu1 %447 }
  0x92   : > { %v453_v3 = vpop.permute.xlu0 %452 }
  0x93   : > { %v458_v8 = vpop.permute.xlu1 %457 }
  0xea   : > { %v545_v21 = vpop.f32.mrb[0].mxu0 }
  0xeb   : > { %v546_v22 = vadd.f32 %v545_v21, %v423_v20  ;;  %v547_v23 = vpop.f32.mrb[1].mxu0 }
  0xec   : > { %v548_v25 = vadd.f32 %v547_v23, %v423_v20  ;;  %v549_v26 = vpop.f32.mrb[2].mxu0  ;;  %v309_v20 = vld [vmem:[#allocation2 + $0x50] sm:$0x1]  ;;  %v315_v23 = vld [vmem:[#allocation2 + $0x58] sm:$0x1] }
  0xed   : > { %v584_v27 = vmax.f32 %v546_v22, 0.0  ;;  %v550_v28 = vadd.f32 %v549_v26, %v428_v24  ;;  %v551_v29 = vpop.f32.mrb[3].mxu0  ;;  %v312_v22 = vld [vmem:[#allocation2 + $0x54] sm:$0x1]  ;;  %v316_v26 = vsel %vm6025_vm5, 0, %v315_v23 }
  0xee   : > { %v585_v31 = vmax.f32 %v548_v25, 0.0  ;;  %v552_v32 = vadd.f32 %v551_v29, %v428_v24  ;;  %v310_v24 = vsel %vm6025_vm5, 0, %v309_v20  ;;  %v313_v25 = vsel %vm6025_vm5, 0, %v312_v22  ;;  %317 = vst [vmem:[#allocation2 + $0x58] sm:$0x1] %v316_v26 }
  0xef   : > { %v586_v33 = vmax.f32 %v550_v28, 0.0  ;;  %311 = vst [vmem:[#allocation2 + $0x50] sm:$0x1] %v310_v24  ;;  %314 = vst [vmem:[#allocation2 + $0x54] sm:$0x1] %v313_v25 }
  0xf0   : > { %v5639_v34 = vpack.i.bf16 %v584_v27, %v585_v31  ;;  %v587_v35 = vmax.f32 %v552_v32, 0.0  ;;  %v318_v27 = vld [vmem:[#allocation2 + $0x5c] sm:$0x1]  ;;  %v349_v29 = vld [vmem:[#allocation2 + $0xf0] sm:$0x1] }
  0xf1   : > { %v319_v28 = vsel %vm6025_vm5, 0, %v318_v27  ;;  %v350_v31 = vsel %vm6025_vm5, 0, %v349_v29 }
  0xf2   : > { %v5641_v36 = vpack.i.bf16 %v586_v33, %v587_v35  ;;  %v555_v37 = vpop.f32.mrb[4].mxu0  ;;  %5640 = vxpose.xlu0.b32.start [1/8] (short) %v5639_v34, 128  ;;  %320 = vst [vmem:[#allocation2 + $0x5c] sm:$0x1] %v319_v28  ;;  %v355_v33 = vld [vmem:[#allocation2 + $0xf8] sm:$0x1] }
  0xf3   : > { %v556_v38 = vadd.f32 %v555_v37, %v433_v30  ;;  %v557_v39 = vpop.f32.mrb[5].mxu0  ;;  %v358_v34 = vld [vmem:[#allocation2 + $0xfc] sm:$0x1]  ;;  %351 = vst [vmem:[#allocation2 + $0xf0] sm:$0x1] %v350_v31  ;;  %v356_v35 = vsel %vm6025_vm5, 0, %v355_v33 }
  0xf4   : > { %v558_v41 = vadd.f32 %v557_v39, %v433_v30  ;;  %v559_v42 = vpop.f32.mrb[6].mxu0  ;;  %v352_v30 = vld [vmem:[#allocation2 + $0xf4] sm:$0x1]  ;;  %357 = vst [vmem:[#allocation2 + $0xf8] sm:$0x1] %v356_v35 }
  0xf5   : > { %v588_v43 = vmax.f32 %v556_v38, 0.0  ;;  %v560_v44 = vadd.f32 %v559_v42, %v438_v40  ;;  %v561_v45 = vpop.f32.mrb[7].mxu0  ;;  %v353_v32 = vsel %vm6025_vm5, 0, %v352_v30  ;;  %v321_v37 = vld [vmem:[#allocation2 + $0x60] sm:$0x1] }
  0xf6   : > { %v589_v46 = vmax.f32 %v558_v41, 0.0  ;;  %v562_v47 = vadd.f32 %v561_v45, %v438_v40  ;;  %5642 = vxpose.xlu0.b32.cont [2/8] (short) %v5641_v36, 128  ;;  %354 = vst [vmem:[#allocation2 + $0xf4] sm:$0x1] %v353_v32  ;;  %v359_v36 = vsel %vm6025_vm5, 0, %v358_v34  ;;  %v341_v38 = vld [vmem:[#allocation2 + $0xb0] sm:$0x1] }
  0xf7   : > { %v590_v48 = vmax.f32 %v560_v44, 0.0  ;;  %360 = vst [vmem:[#allocation2 + $0xfc] sm:$0x1] %v359_v36  ;;  %v361_v39 = vld [vmem:[#allocation2 + $0x100] sm:$0x1]  ;;  %v322_v41 = vsel %vm6025_vm5, 0, %v321_v37 }
  0xf8   : > { %v5643_v49 = vpack.i.bf16 %v588_v43, %v589_v46  ;;  %v591_v50 = vmax.f32 %v562_v47, 0.0  ;;  %v399_v40 = vld [vmem:[#allocation3 + $0x38] sm:$0x1]  ;;  %v342_v42 = vsel %vm6025_vm5, 0, %v341_v38  ;;  %v362_v43 = vsel %vm6025_vm5, 0, %v361_v39 }
  0xf9   : > { %v400_v44 = vsel %vm6025_vm5, 0, %v399_v40  ;;  %v305_v46 = vld [vmem:[#allocation2 + $0x14] sm:$0x7]  ;;  %323 = vst [vmem:[#allocation2 + $0x60] sm:$0x1] %v322_v41 }
  0xfa   : > { %v5645_v52 = vpack.i.bf16 %v590_v48, %v591_v50  ;;  %v565_v53 = vpop.f32.mrb[8].mxu0  ;;  %5644 = vxpose.xlu0.b32.cont [3/8] (short) %v5643_v49, 128  ;;  %343 = vst [vmem:[#allocation2 + $0xb0] sm:$0x1] %v342_v42  ;;  %363 = vst [vmem:[#allocation2 + $0x100] sm:$0x1] %v362_v43  ;;  %v306_v47 = vsel %vm6054_vm8, 0, %v305_v46 }
  0xfb   : > { %v566_v54 = vadd.f32 %v565_v53, %v443_v51  ;;  %v567_v55 = vpop.f32.mrb[9].mxu0  ;;  %401 = vst [vmem:[#allocation3 + $0x38] sm:$0x1] %v400_v44  ;;  %307 = vst [vmem:[#allocation2 + $0x14] sm:$0x7] %v306_v47  ;;  %v5742_v50 = vld [vmem:[%s6879_s3 + $0x20] sm:$0xff]  }
  0xfc   : > { %v568_v57 = vadd.f32 %v567_v55, %v443_v51  ;;  %v569_v58 = vpop.f32.mrb[10].mxu0  ;;  %v325_v48 = vld [vmem:[#allocation2 + $0x28] sm:$0x7]  ;;  %5308 = vmatprep.subr.bf16.mxu1 %v5742_v50  ;;  %v345_v51 = vld [vmem:[#allocation2 + $0x3c] sm:$0x7] }
  0xfd   : > { %v592_v59 = vmax.f32 %v566_v54, 0.0  ;;  %v570_v60 = vadd.f32 %v569_v58, %v448_v56  ;;  %v571_v61 = vpop.f32.mrb[11].mxu0  ;;  %v326_v49 = vsel %vm6054_vm8, 0, %v325_v48  ;;  %5309 = vmatpush3.bf16.msra.mxu1 %v5742_v50  ;;  %v295_v53 = vld [vmem:[#allocation2 + $0x8] sm:$0x1] }
  0xfe   : > { %v593_v62 = vmax.f32 %v568_v57, 0.0  ;;  %v572_v63 = vadd.f32 %v571_v61, %v448_v56  ;;  %5646 = vxpose.xlu0.b32.cont [4/8] (short) %v5645_v52, 128  ;;  %327 = vst [vmem:[#allocation2 + $0x28] sm:$0x7] %v326_v49  ;;  %v292_v52 = vld [vmem:[#allocation2 + $0x4] sm:$0x1]  ;;  %v296_v56 = vsel %vm6025_vm5, 0, %v295_v53 }
  0xff   : > { %v594_v0 = vmax.f32 %v570_v60, 0.0  ;;  %v298_v54 = vld [vmem:[#allocation2 + $0xc] sm:$0x1]  ;;  %v293_v55 = vsel %vm6025_vm5, 0, %v292_v52  ;;  %v301_v58 = vld [vmem:[#allocation2 + $0x10] sm:$0x1] }
 0x100   : > { %v5647_v1 = vpack.i.bf16 %v592_v59, %v593_v62  ;;  %v595_v2 = vmax.f32 %v572_v63, 0.0  ;;  %v299_v57 = vsel %vm6025_vm5, 0, %v298_v54  ;;  %v346_v59 = vsel %vm6054_vm8, 0, %v345_v51  ;;  %294 = vst [vmem:[#allocation2 + $0x4] sm:$0x1] %v293_v55  ;;  %v5745_v63 = vld [vmem:[%s6879_s3 + $0x28] sm:$0xff]  }
 0x101   : > { %297 = vst [vmem:[#allocation2 + $0x8] sm:$0x1] %v296_v56  ;;  %300 = vst [vmem:[#allocation2 + $0xc] sm:$0x1] %v299_v57  ;;  %v302_v60 = vsel %vm6025_vm5, 0, %v301_v58  ;;  %5310 = vmatprep.subr.bf16.mxu1 %v5745_v63 }
 0x102   : > { %v5649_v4 = vpack.i.bf16 %v594_v0, %v595_v2  ;;  %v575_v5 = vpop.f32.mrb[12].mxu0  ;;  %5648 = vxpose.xlu0.b32.cont [5/8] (short) %v5647_v1, 128  ;;  %v329_v61 = vld [vmem:[#allocation2 + $0xa0] sm:$0x1]  ;;  %v332_v62 = vld [vmem:[#allocation2 + $0xa4] sm:$0x1]  ;;  %5311 = vmatpush3.bf16.msra.mxu1 %v5745_v63 }
 0x103   : > { %v576_v6 = vadd.f32 %v575_v5, %v453_v3  ;;  %v577_v7 = vpop.f32.mrb[13].mxu0  ;;  %347 = vst [vmem:[#allocation2 + $0x3c] sm:$0x7] %v346_v59  ;;  %303 = vst [vmem:[#allocation2 + $0x10] sm:$0x1] %v302_v60  ;;  %v330_v0 = vsel %vm6025_vm5, 0, %v329_v61 }
 0x104   : > { %v578_v9 = vadd.f32 %v577_v7, %v453_v3  ;;  %v579_v10 = vpop.f32.mrb[14].mxu0  ;;  %v333_v1 = vsel %vm6025_vm5, 0, %v332_v62  ;;  %v335_v2 = vld [vmem:[#allocation2 + $0xa8] sm:$0x1]  ;;  %v338_v3 = vld [vmem:[#allocation2 + $0xac] sm:$0x1] }
 0x105   : > { %v596_v11 = vmax.f32 %v576_v6, 0.0  ;;  %v580_v12 = vadd.f32 %v579_v10, %v458_v8  ;;  %v581_v13 = vpop.f32.mrb[15].mxu0  ;;  %331 = vst [vmem:[#allocation2 + $0xa0] sm:$0x1] %v330_v0  ;;  %334 = vst [vmem:[#allocation2 + $0xa4] sm:$0x1] %v333_v1 }
 0x106   : > { %v597_v14 = vmax.f32 %v578_v9, 0.0  ;;  %v582_v15 = vadd.f32 %v581_v13, %v458_v8  ;;  %5650 = vxpose.xlu0.b32.cont [6/8] (short) %v5649_v4, 128  ;;  %v336_v4 = vsel %vm6025_vm5, 0, %v335_v2  ;;  %v339_v5 = vsel %vm6025_vm5, 0, %v338_v3  ;;  %v5746_v6 = vld [vmem:[%s6879_s3 + $0x30] sm:$0xff]   ;;  %v283_v7 = vld [vmem:[#allocation2] sm:$0x7] }
 0x107   : > { %v598_v16 = vmax.f32 %v580_v12, 0.0  ;;  %337 = vst [vmem:[#allocation2 + $0xa8] sm:$0x1] %v336_v4  ;;  %340 = vst [vmem:[#allocation2 + $0xac] sm:$0x1] %v339_v5  ;;  %5312 = vmatprep.subr.bf16.mxu1 %v5746_v6  ;;  %v5747_v8 = vld [vmem:[%s6879_s3 + $0x38] sm:$0xff]  }
 0x108   : > { %v5651_v17 = vpack.i.bf16 %v596_v11, %v597_v14  ;;  %v599_v18 = vmax.f32 %v582_v15, 0.0  ;;  %5313 = vmatpush3.bf16.msra.mxu1 %v5746_v6  ;;  %v284_v9 = vsel %vm6054_vm8, 0, %v283_v7  ;;  %v6097_v10 = vld [vmem:[%s6879_s3] sm:$0xff]   ;;  %v5928_v13 = vmov 1983009808  }
 0x109   : > { %285 = vst [vmem:[#allocation2] sm:$0x7] %v284_v9  ;;  %5314 = vmatprep.subr.bf16.mxu1 %v5747_v8  ;;  %v698_v14 = vunpack.c.l.s4 %v5928_v13  ;;  %v700_v15 = vlaneseq }
 0x10a   : > { %v5653_v19 = vpack.i.bf16 %v598_v16, %v599_v18  ;;  %5652 = vxpose.xlu0.b32.cont [7/8] (short) %v5651_v17, 128 }
 0x10b   : > { %v699_v17 = vunpack.c.0.s8 %v698_v14  ;;  %v701_v18 = vshrl.u32 %v700_v15, 7 }
 0x10c   : > { %5315 = vmatpush3.bf16.msra.mxu1 %v5747_v8 }
 0x10d   : > { %5324 = vmatprep.subr.bf16.mxu1 %v6097_v10  ;;  %v6102_v22 = vsub.s32 %v699_v17, %v701_v18 }
 0x10e   : > { %5654 = vxpose.xlu0.b32.end [8/8] (short) %v5653_v19, 128 }
 0x110   : > { %v289_v11 = vld [vmem:[#allocation2] sm:$0x1] }
 0x111   : > { %v290_v12 = vsel %vm6025_vm5, 0, %v289_v11 }
 0x112   : > { %291 = vst [vmem:[#allocation2] sm:$0x1] %v290_v12 }
 0x119   : > { %v6132_v8 = vld.sshfl [vmem:[#allocation2] sm:$0x13 pattern:$0x76325410] }
 0x11a   : > { %v1835_v17 = vshrl.u32 %v6132_v8, 16 }
 0x172   : > { %v5655_v16 = vpop.trf.xlu0 }
 0x173   : > { %v5659_v19 = vunpack.i.h.bf16 %v5655_v16  ;;  %v5656_v20 = vunpack.i.l.bf16 %v5655_v16 }
 0x176   : > { %v5660_v23 = vpop.trf.xlu0 }
 0x177   : > { %v5664_v24 = vunpack.i.h.bf16 %v5660_v23  ;;  %v5661_v25 = vunpack.i.l.bf16 %v5660_v23 }
 0x179   : > { %v5016_v26 = vpack.c.bf16 %v5664_v24, %v5664_v24  ;;  %v664_v27 = vpack.c.bf16 %v5664_v24, %v5659_v19  ;;  %v672_v28 = vpack.c.bf16 %v5661_v25, %v5656_v20  ;;  %v5024_v29 = vpack.c.bf16 %v5661_v25, %v5661_v25 }
 0x17a   : > { %v5665_v30 = vpop.trf.xlu0 }
 0x17b   : > { %v710_v31 = vrot.slane %v5016_v26, %v6102_v22  ;;  %v703_v32 = vrot.slane %v664_v27, %v6102_v22  ;;  %v839_v33 = vrot.slane %v672_v28, %v6102_v22  ;;  %v846_v34 = vrot.slane %v5024_v29, %v6102_v22 }
 0x17c   : > { %v5669_v39 = vunpack.i.h.bf16 %v5665_v30  ;;  %v5666_v40 = vunpack.i.l.bf16 %v5665_v30  ;;  %v6145_v27 = vrot.slane %v1835_v17, 6  ;;  %v1838_v28 = vshll.u32 %v6132_v8, 16 }
 0x17d   : > { %v712_v35 = vcombine.high %v710_v31, %v710_v31  ;;  %1020 = vst.msk [vmem:[#allocation2 + $0x6c] sm:$0x3] %vm1017_vm9, %v710_v31  ;;  %v711_v36 = vcombine.high %v703_v32, %v703_v32  ;;  %v847_v37 = vcombine.high %v839_v33, %v839_v33  ;;  %v848_v38 = vcombine.high %v846_v34, %v846_v34 }
 0x17e   : > { %1018 = vst.msk [vmem:[#allocation2 + $0x64] sm:$0x3] %vm1017_vm9, %v703_v32  ;;  %1194 = vst.msk [vmem:[#allocation2 + $0x104] sm:$0x3] %vm1017_vm9, %v839_v33  ;;  %v5670_v41 = vpop.trf.xlu0 }
 0x17f   : > { %1196 = vst.msk [vmem:[#allocation2 + $0x10c] sm:$0x3] %vm1017_vm9, %v846_v34  ;;  %1021 = vst.msk [vmem:[#allocation2 + $0x70] sm:$0x3] %vm1017_vm9, %v712_v35  ;;  %v5674_v42 = vunpack.i.h.bf16 %v5670_v41  ;;  %v5671_v43 = vunpack.i.l.bf16 %v5670_v41 }
 0x180   : > { %1019 = vst.msk [vmem:[#allocation2 + $0x68] sm:$0x3] %vm1017_vm9, %v711_v36  ;;  %1195 = vst.msk [vmem:[#allocation2 + $0x108] sm:$0x3] %vm1017_vm9, %v847_v37 }
 0x181   : > { %1197 = vst.msk [vmem:[#allocation2 + $0x110] sm:$0x3] %vm1017_vm9, %v848_v38  ;;  %v5017_v44 = vpack.c.bf16 %v5674_v42, %v5674_v42  ;;  %v665_v46 = vpack.c.bf16 %v5674_v42, %v5669_v39  ;;  %v673_v47 = vpack.c.bf16 %v5671_v43, %v5666_v40  ;;  %v5025_v48 = vpack.c.bf16 %v5671_v43, %v5671_v43 }
 0x182   : > { %v5675_v49 = vpop.trf.xlu0 }
 0x183   : > { %v727_v50 = vrot.slane %v5017_v44, %v6102_v22  ;;  %v720_v51 = vrot.slane %v665_v46, %v6102_v22  ;;  %v856_v52 = vrot.slane %v673_v47, %v6102_v22  ;;  %v863_v53 = vrot.slane %v5025_v48, %v6102_v22 }
 0x184   : > { %v5679_v58 = vunpack.i.h.bf16 %v5675_v49  ;;  %v5676_v59 = vunpack.i.l.bf16 %v5675_v49 }
 0x185   : > { %v729_v54 = vcombine.high %v727_v50, %v727_v50  ;;  %1025 = vst.msk [vmem:[#allocation2 + $0x80] sm:$0x3] %vm1017_vm9, %v727_v50  ;;  %v728_v55 = vcombine.high %v720_v51, %v720_v51  ;;  %v864_v56 = vcombine.high %v856_v52, %v856_v52  ;;  %v865_v57 = vcombine.high %v863_v53, %v863_v53 }
 0x186   : > { %1023 = vst.msk [vmem:[#allocation2 + $0x78] sm:$0x3] %vm1017_vm9, %v720_v51  ;;  %1199 = vst.msk [vmem:[#allocation2 + $0x118] sm:$0x3] %vm1017_vm9, %v856_v52  ;;  %v5680_v60 = vpop.trf.xlu0 }
 0x187   : > { %1201 = vst.msk [vmem:[#allocation2 + $0x120] sm:$0x3] %vm1017_vm9, %v863_v53  ;;  %1026 = vst.msk [vmem:[#allocation2 + $0x84] sm:$0x3] %vm1017_vm9, %v729_v54  ;;  %v5684_v61 = vunpack.i.h.bf16 %v5680_v60  ;;  %v5681_v62 = vunpack.i.l.bf16 %v5680_v60  ;;  %v1094_v53 = vld [vmem:[#allocation2 + $0x50] sm:$0x7] }
 0x188   : > { %1024 = vst.msk [vmem:[#allocation2 + $0x7c] sm:$0x3] %vm1017_vm9, %v728_v55  ;;  %1200 = vst.msk [vmem:[#allocation2 + $0x11c] sm:$0x3] %vm1017_vm9, %v864_v56 }
 0x189   : > { %1202 = vst.msk [vmem:[#allocation2 + $0x124] sm:$0x3] %vm1017_vm9, %v865_v57  ;;  %v5018_v63 = vpack.c.bf16 %v5684_v61, %v5684_v61  ;;  %v666_v0 = vpack.c.bf16 %v5684_v61, %v5679_v58  ;;  %v674_v1 = vpack.c.bf16 %v5681_v62, %v5676_v59  ;;  %v5026_v2 = vpack.c.bf16 %v5681_v62, %v5681_v62  ;;  %v1100_v59 = vld [vmem:[#allocation2 + $0x58] sm:$0x7] }
 0x18a   : > { %v5685_v3 = vpop.trf.xlu0 }
 0x18b   : > { %v744_v4 = vrot.slane %v5018_v63, %v6102_v22  ;;  %v737_v5 = vrot.slane %v666_v0, %v6102_v22  ;;  %v873_v6 = vrot.slane %v674_v1, %v6102_v22  ;;  %v880_v7 = vrot.slane %v5026_v2, %v6102_v22  ;;  %v1097_v1 = vld [vmem:[#allocation2 + $0x54] sm:$0x7] }
 0x18c   : > { %v5689_v14 = vunpack.i.h.bf16 %v5685_v3  ;;  %v5686_v15 = vunpack.i.l.bf16 %v5685_v3 }
 0x18d   : > { %v746_v9 = vcombine.high %v744_v4, %v744_v4  ;;  %1030 = vst.msk [vmem:[#allocation2 + $0x94] sm:$0x3] %vm1017_vm9, %v744_v4  ;;  %v745_v11 = vcombine.high %v737_v5, %v737_v5  ;;  %v881_v12 = vcombine.high %v873_v6, %v873_v6  ;;  %v882_v13 = vcombine.high %v880_v7, %v880_v7 }
 0x18e   : > { %1028 = vst.msk [vmem:[#allocation2 + $0x8c] sm:$0x3] %vm1017_vm9, %v737_v5  ;;  %1204 = vst.msk [vmem:[#allocation2 + $0x12c] sm:$0x3] %vm1017_vm9, %v873_v6  ;;  %v5690_v16 = vpop.trf.xlu0  ;;  %v1103_v6 = vld [vmem:[#allocation2 + $0x5c] sm:$0x7] }
 0x18f   : > { %1206 = vst.msk [vmem:[#allocation2 + $0x134] sm:$0x3] %vm1017_vm9, %v880_v7  ;;  %1031 = vst.msk [vmem:[#allocation2 + $0x98] sm:$0x3] %vm1017_vm9, %v746_v9  ;;  %v5694_v18 = vunpack.i.h.bf16 %v5690_v16  ;;  %v5691_v19 = vunpack.i.l.bf16 %v5690_v16 }
 0x190   : > { %1029 = vst.msk [vmem:[#allocation2 + $0x90] sm:$0x3] %vm1017_vm9, %v745_v11  ;;  %1205 = vst.msk [vmem:[#allocation2 + $0x130] sm:$0x3] %vm1017_vm9, %v881_v12 }
 0x191   : > { %1207 = vst.msk [vmem:[#allocation2 + $0x138] sm:$0x3] %vm1017_vm9, %v882_v13  ;;  %v5019_v20 = vpack.c.bf16 %v5694_v18, %v5694_v18  ;;  %v667_v23 = vpack.c.bf16 %v5694_v18, %v5689_v14  ;;  %v675_v24 = vpack.c.bf16 %v5691_v19, %v5686_v15  ;;  %v5027_v25 = vpack.c.bf16 %v5691_v19, %v5691_v19  ;;  %v1268_v13 = vld [vmem:[#allocation2 + $0xf0] sm:$0x7]  ;;  %v1271_v18 = vld [vmem:[#allocation2 + $0xf4] sm:$0x7] }
 0x192   : > { %v6143_v26 = vpop.trf.xlu0 }
 0x193   : > { %v761_v29 = vrot.slane %v5019_v20, %v6102_v22  ;;  %v754_v30 = vrot.slane %v667_v23, %v6102_v22  ;;  %v890_v31 = vrot.slane %v675_v24, %v6102_v22  ;;  %v897_v32 = vrot.slane %v5027_v25, %v6102_v22 }
 0x194   : > { %v5699_v33 = vunpack.i.h.bf16 %v6143_v26  ;;  %v5696_v34 = vunpack.i.l.bf16 %v6143_v26 }
 0x195   : > { %v763_v35 = vcombine.high %v761_v29, %v761_v29  ;;  %v1052_v36 = vrot.slane %v761_v29, %v6102_v22  ;;  %v762_v37 = vcombine.high %v754_v30, %v754_v30  ;;  %v898_v38 = vcombine.high %v890_v31, %v890_v31  ;;  %v1274_v29 = vld [vmem:[#allocation2 + $0xf8] sm:$0x7] }
 0x196   : > { %v899_v39 = vcombine.high %v897_v32, %v897_v32  ;;  %v1038_v40 = vrot.slane %v754_v30, %v6102_v22  ;;  %v1214_v41 = vrot.slane %v890_v31, %v6102_v22  ;;  %v1228_v42 = vrot.slane %v897_v32, %v6102_v22  ;;  %v5700_v43 = vpop.trf.xlu0 }
 0x197   : > { %v1059_v44 = vrot.slane %v763_v35, %v6102_v22  ;;  %v1075_v46 = vshrl.u32 %v1052_v36, 16  ;;  %v1078_v47 = vshll.u32 %v1052_v36, 16  ;;  %v1045_v48 = vrot.slane %v762_v37, %v6102_v22 }
 0x198   : > { %v1061_v49 = vshrl.u32 %v1038_v40, 16  ;;  %v1064_v50 = vshll.u32 %v1038_v40, 16  ;;  %v1221_v51 = vrot.slane %v898_v38, %v6102_v22  ;;  %v1235_v52 = vrot.slane %v899_v39, %v6102_v22 }
 0x199   : > { %v1077_v54 = vrot.slane %v1075_v46, 7  ;;  %v1082_v55 = vshrl.u32 %v1059_v44, 16  ;;  %v1085_v56 = vshll.u32 %v1059_v44, 16  ;;  %v1068_v57 = vshrl.u32 %v1045_v48, 16 }
 0x19a   : > { %v1063_v60 = vrot.slane %v1061_v49, 7  ;;  %v1071_v61 = vshll.u32 %v1045_v48, 16  ;;  %v1237_v62 = vshrl.u32 %v1214_v41, 16  ;;  %v1240_v63 = vshll.u32 %v1214_v41, 16  ;;  %v6168_v0 = vpop.trf.xlu0 }
 0x19b   : > { %v1080_v2 = vor.u32 %v1078_v47, %v1077_v54  ;;  %v1084_v3 = vrot.slane %v1082_v55, 7  ;;  %v1070_v4 = vrot.slane %v1068_v57, 7  ;;  %v1244_v5 = vshrl.u32 %v1221_v51, 16 }
 0x19c   : > { %v1066_v7 = vor.u32 %v1064_v50, %v1063_v60  ;;  %v1239_v9 = vrot.slane %v1237_v62, 7  ;;  %v1247_v11 = vshll.u32 %v1221_v51, 16  ;;  %v1251_v12 = vshrl.u32 %v1228_v42, 16 }
 0x19d   : > { %v1087_v14 = vor.u32 %v1085_v56, %v1084_v3  ;;  %v1101_v15 = vsel %vm6164_vm11, %v1080_v2, %v1100_v59  ;;  %v1073_v16 = vor.u32 %v1071_v61, %v1070_v4  ;;  %v1246_v17 = vrot.slane %v1244_v5, 7 }
 0x19e   : > { %1102 = vst [vmem:[#allocation2 + $0x58] sm:$0x7] %v1101_v15  ;;  %v1095_v19 = vsel %vm6164_vm11, %v1066_v7, %v1094_v53  ;;  %v1242_v20 = vor.u32 %v1240_v63, %v1239_v9  ;;  %v1253_v23 = vrot.slane %v1251_v12, 7  ;;  %v1254_v24 = vshll.u32 %v1228_v42, 16  ;;  %v5710_v25 = vpop.trf.xlu0  ;;  %v1277_v42 = vld [vmem:[#allocation2 + $0xfc] sm:$0x7] }
 0x19f   : > { %v1104_v30 = vsel %vm6164_vm11, %v1087_v14, %v1103_v6  ;;  %1096 = vst [vmem:[#allocation2 + $0x50] sm:$0x7] %v1095_v19  ;;  %v1098_v31 = vsel %vm6164_vm11, %v1073_v16, %v1097_v1  ;;  %v1249_v32 = vor.u32 %v1247_v11, %v1246_v17  ;;  %v1258_v35 = vshrl.u32 %v1235_v52, 16 }
 0x1a0   : > { %1105 = vst [vmem:[#allocation2 + $0x5c] sm:$0x7] %v1104_v30  ;;  %1099 = vst [vmem:[#allocation2 + $0x54] sm:$0x7] %v1098_v31  ;;  %v1256_v36 = vor.u32 %v1254_v24, %v1253_v23  ;;  %v1261_v37 = vshll.u32 %v1235_v52, 16  ;;  %v1269_v38 = vsel %vm6164_vm11, %v1242_v20, %v1268_v13  ;;  %v5704_v39 = vunpack.i.h.bf16 %v5700_v43 }
 0x1a1   : > { %v1260_v40 = vrot.slane %v1258_v35, 7  ;;  %1270 = vst [vmem:[#allocation2 + $0xf0] sm:$0x7] %v1269_v38  ;;  %v1272_v41 = vsel %vm6164_vm11, %v1249_v32, %v1271_v18  ;;  %v5701_v47 = vunpack.i.l.bf16 %v5700_v43  ;;  %v5709_v51 = vunpack.i.h.bf16 %v6168_v0 }
 0x1a2   : > { %1273 = vst [vmem:[#allocation2 + $0xf4] sm:$0x7] %v1272_v41  ;;  %v1275_v44 = vsel %vm6164_vm11, %v1256_v36, %v1274_v29  ;;  %v5020_v46 = vpack.c.bf16 %v5704_v39, %v5704_v39  ;;  %v668_v48 = vpack.c.bf16 %v5704_v39, %v5699_v33  ;;  %v5715_v49 = vpop.trf.xlu0  ;;  %v5706_v43 = vunpack.i.l.bf16 %v6168_v0 }
 0x1a3   : > { %v1263_v50 = vor.u32 %v1261_v37, %v1260_v40  ;;  %1276 = vst [vmem:[#allocation2 + $0xf8] sm:$0x7] %v1275_v44  ;;  %v676_v53 = vpack.c.bf16 %v5701_v47, %v5696_v34  ;;  %v5028_v55 = vpack.c.bf16 %v5701_v47, %v5701_v47  ;;  %v5714_v57 = vunpack.i.h.bf16 %v5710_v25 }
 0x1a4   : > { %v778_v52 = vrot.slane %v5020_v46, %v6102_v22  ;;  %v771_v54 = vrot.slane %v668_v48, %v6102_v22  ;;  %v5711_v62 = vunpack.i.l.bf16 %v5710_v25  ;;  %v5719_v2 = vunpack.i.h.bf16 %v5715_v49 }
 0x1a5   : > { %v1278_v56 = vsel %vm6164_vm11, %v1263_v50, %v1277_v42  ;;  %v907_v60 = vrot.slane %v676_v53, %v6102_v22  ;;  %v914_v61 = vrot.slane %v5028_v55, %v6102_v22  ;;  %v5021_v34 = vpack.c.bf16 %v5714_v57, %v5714_v57 }
 0x1a6   : > { %1279 = vst [vmem:[#allocation2 + $0xfc] sm:$0x7] %v1278_v56  ;;  %v780_v33 = vcombine.high %v778_v52, %v778_v52  ;;  %1109 = vst.msk [vmem:[#allocation2 + $0xbc] sm:$0x3] %vm1017_vm9, %v778_v52  ;;  %v779_v59 = vcombine.high %v771_v54, %v771_v54  ;;  %v5720_v26 = vpop.trf.xlu0  ;;  %v669_v63 = vpack.c.bf16 %v5714_v57, %v5709_v51  ;;  %v5716_v7 = vunpack.i.l.bf16 %v5715_v49 }
 0x1a7   : > { %1107 = vst.msk [vmem:[#allocation2 + $0xb4] sm:$0x3] %vm1017_vm9, %v771_v54  ;;  %v915_v1 = vcombine.high %v907_v60, %v907_v60  ;;  %v916_v0 = vcombine.high %v914_v61, %v914_v61  ;;  %1281 = vst.msk [vmem:[#allocation2 + $0x18] sm:$0x3] %vm1017_vm9, %v907_v60  ;;  %v795_v3 = vrot.slane %v5021_v34, %v6102_v22  ;;  %v5724_v9 = vunpack.i.h.bf16 %v5720_v26 }
 0x1a8   : > { %1110 = vst.msk [vmem:[#allocation2 + $0xc0] sm:$0x3] %vm1017_vm9, %v780_v33  ;;  %1108 = vst.msk [vmem:[#allocation2 + $0xb8] sm:$0x3] %vm1017_vm9, %v779_v59  ;;  %v677_v4 = vpack.c.bf16 %v5711_v62, %v5706_v43  ;;  %v788_v5 = vrot.slane %v669_v63, %v6102_v22  ;;  %v5029_v6 = vpack.c.bf16 %v5711_v62, %v5711_v62  ;;  %v5721_v17 = vunpack.i.l.bf16 %v5720_v26 }
 0x1a9   : > { %1283 = vst.msk [vmem:[#allocation2 + $0x20] sm:$0x3] %vm1017_vm9, %v914_v61  ;;  %1282 = vst.msk [vmem:[#allocation2 + $0x1c] sm:$0x3] %vm1017_vm9, %v915_v1  ;;  %v797_v12 = vcombine.high %v795_v3, %v795_v3  ;;  %v5022_v16 = vpack.c.bf16 %v5724_v9, %v5724_v9  ;;  %v670_v18 = vpack.c.bf16 %v5724_v9, %v5719_v2  ;;  %v6238_v56 = vrot.slane %v1838_v28, 7 }
 0x1aa   : > { %1284 = vst.msk [vmem:[#allocation2 + $0x24] sm:$0x3] %vm1017_vm9, %v916_v0  ;;  %v5725_v11 = vpop.trf.xlu0  ;;  %1114 = vst.msk [vmem:[#allocation2 + $0xd0] sm:$0x3] %vm1017_vm9, %v795_v3  ;;  %v796_v13 = vcombine.high %v788_v5, %v788_v5  ;;  %v924_v14 = vrot.slane %v677_v4, %v6102_v22  ;;  %v931_v15 = vrot.slane %v5029_v6, %v6102_v22  ;;  %v1187_v1 = vld [vmem:[#allocation2 + $0xa8] sm:$0x7] }
 0x1ab   : > { %1112 = vst.msk [vmem:[#allocation2 + $0xc8] sm:$0x3] %vm1017_vm9, %v788_v5  ;;  %1115 = vst.msk [vmem:[#allocation2 + $0xd4] sm:$0x3] %vm1017_vm9, %v797_v12  ;;  %v1802_v23 = vcombine.high %v6132_v8, %v6132_v8  ;;  %v812_v24 = vrot.slane %v5022_v16, %v6102_v22  ;;  %v678_v25 = vpack.c.bf16 %v5721_v17, %v5716_v7  ;;  %v5729_v32 = vunpack.i.h.bf16 %v5725_v11  ;;  %v1181_v5 = vld [vmem:[#allocation2 + $0xa0] sm:$0x7] }
 0x1ac   : > { %v932_v19 = vcombine.high %v924_v14, %v924_v14  ;;  %v933_v20 = vcombine.high %v931_v15, %v931_v15  ;;  %1113 = vst.msk [vmem:[#allocation2 + $0xcc] sm:$0x3] %vm1017_vm9, %v796_v13  ;;  %1286 = vst.msk [vmem:[#allocation2 + $0x2c] sm:$0x3] %vm1017_vm9, %v924_v14  ;;  %v805_v29 = vrot.slane %v670_v18, %v6102_v22  ;;  %v5726_v42 = vunpack.i.l.bf16 %v5725_v11  ;;  %v1190_v12 = vld [vmem:[#allocation2 + $0xac] sm:$0x7] }
 0x1ad   : > { %1288 = vst.msk [vmem:[#allocation2 + $0x34] sm:$0x3] %vm1017_vm9, %v931_v15  ;;  %v5030_v30 = vpack.c.bf16 %v5721_v17, %v5721_v17  ;;  %v814_v37 = vcombine.high %v812_v24, %v812_v24  ;;  %1119 = vst.msk [vmem:[#allocation2 + $0xe4] sm:$0x3] %vm1017_vm9, %v812_v24  ;;  %v941_v39 = vrot.slane %v678_v25, %v6102_v22  ;;  %v6240_v43 = vshll.u32 %v1802_v23, 16 }
 0x1ae   : > { %v5730_v31 = vpop.trf.xlu0  ;;  %1287 = vst.msk [vmem:[#allocation2 + $0x30] sm:$0x3] %vm1017_vm9, %v932_v19  ;;  %1289 = vst.msk [vmem:[#allocation2 + $0x38] sm:$0x3] %vm1017_vm9, %v933_v20  ;;  %v813_v38 = vcombine.high %v805_v29, %v805_v29  ;;  %v1184_v17 = vld [vmem:[#allocation2 + $0xa4] sm:$0x7] }
 0x1af   : > { %v5866_v35 = vld.sshfl [vmem:[#allocation2 + $0x14] sm:$0xf pattern:$0x76325410]  ;;  %v5734_v36 = vunpack.i.h.bf16 %v5730_v31  ;;  %v948_v40 = vrot.slane %v5030_v30, %v6102_v22  ;;  %1117 = vst.msk [vmem:[#allocation2 + $0xdc] sm:$0x3] %vm1017_vm9, %v805_v29  ;;  %v5731_v47 = vunpack.i.l.bf16 %v5730_v31  ;;  %v949_v48 = vcombine.high %v941_v39, %v941_v39 }
 0x1b0   : > { %v6224_v41 = vld.sshfl [vmem:[#allocation2 + $0xb4] sm:$0xf pattern:$0x76325410]  ;;  %1120 = vst.msk [vmem:[#allocation2 + $0xe8] sm:$0x3] %vm1017_vm9, %v814_v37 }
 0x1b1   : > { %v5867_v44 = vld.sshfl [vmem:[#allocation2 + $0x1c] sm:$0xf pattern:$0x76325410]  ;;  %v5023_v46 = vpack.c.bf16 %v5734_v36, %v5734_v36  ;;  %v950_v49 = vcombine.high %v948_v40, %v948_v40  ;;  %1118 = vst.msk [vmem:[#allocation2 + $0xe0] sm:$0x3] %vm1017_vm9, %v813_v38  ;;  %v671_v50 = vpack.c.bf16 %v5734_v36, %v5729_v32  ;;  %v679_v53 = vpack.c.bf16 %v5731_v47, %v5726_v42 }
 0x1b2   : > { %1291 = vst.msk [vmem:[#allocation2 + $0x40] sm:$0x3] %vm1017_vm9, %v941_v39  ;;  %1293 = vst.msk [vmem:[#allocation2 + $0x48] sm:$0x3] %vm1017_vm9, %v948_v40  ;;  %v5031_v54 = vpack.c.bf16 %v5731_v47, %v5731_v47  ;;  %v1512_v57 = vcombine.low %v5866_v35, %v5867_v44  ;;  %v1356_v39 = vld [vmem:[#allocation2 + $0x4] sm:$0x7] }
 0x1b3   : > { %v6230_v51 = vld.sshfl [vmem:[#allocation2 + $0xbc] sm:$0xf pattern:$0x76325410]  ;;  %v829_v52 = vrot.slane %v5023_v46, %v6102_v22  ;;  %1292 = vst.msk [vmem:[#allocation2 + $0x44] sm:$0x3] %vm1017_vm9, %v949_v48  ;;  %v822_v55 = vrot.slane %v671_v50, %v6102_v22  ;;  %v958_v60 = vrot.slane %v679_v53, %v6102_v22 }
 0x1b4   : > { %1294 = vst.msk [vmem:[#allocation2 + $0x4c] sm:$0x3] %vm1017_vm9, %v950_v49  ;;  %v965_v26 = vrot.slane %v5031_v54, %v6102_v22  ;;  %5316 = vmatprep.mubr.msk.bf16.mxu1 %vm1608_vm12, %v1512_v57  ;;  %v1359_v40 = vld [vmem:[#allocation2 + $0x8] sm:$0x7]  ;;  %v1362_v48 = vld [vmem:[#allocation2 + $0xc] sm:$0x7] }
 0x1b5   : > { %v831_v33 = vcombine.high %v829_v52, %v829_v52  ;;  %v1141_v59 = vrot.slane %v829_v52, %v6102_v22  ;;  %v830_v61 = vcombine.high %v822_v55, %v822_v55  ;;  %v1127_v34 = vrot.slane %v822_v55, %v6102_v22  ;;  %v1365_v54 = vld [vmem:[#allocation2 + $0x10] sm:$0x7] }
 0x1b6   : > { %v966_v63 = vcombine.high %v958_v60, %v958_v60  ;;  %v967_v0 = vcombine.high %v965_v26, %v965_v26  ;;  %v1301_v11 = vrot.slane %v958_v60, %v6102_v22  ;;  %v1315_v20 = vrot.slane %v965_v26, %v6102_v22  ;;  %v5753_v26 = vld [vmem:[%s6879_s3 + $0x8] sm:$0xff]  }
 0x1b7   : > { %v1148_v8 = vrot.slane %v831_v33, %v6102_v22  ;;  %v1164_v28 = vshrl.u32 %v1141_v59, 16  ;;  %v1167_v62 = vshll.u32 %v1141_v59, 16  ;;  %v1134_v2 = vrot.slane %v830_v61, %v6102_v22 }
 0x1b8   : > { %v1150_v3 = vshrl.u32 %v1127_v34, 16  ;;  %v1153_v4 = vshll.u32 %v1127_v34, 16  ;;  %v1308_v16 = vrot.slane %v966_v63, %v6102_v22  ;;  %v1322_v23 = vrot.slane %v967_v0, %v6102_v22 }
 0x1b9   : > { %v1166_v6 = vrot.slane %v1164_v28, 7  ;;  %v1171_v7 = vshrl.u32 %v1148_v8, 16  ;;  %v1174_v9 = vshll.u32 %v1148_v8, 16  ;;  %v1157_v14 = vshrl.u32 %v1134_v2, 16 }
 0x1ba   : > { %v1152_v13 = vrot.slane %v1150_v3, 7  ;;  %v1160_v15 = vshll.u32 %v1134_v2, 16  ;;  %v5870_v24 = vld.sshfl [vmem:[#allocation2 + $0x3c] sm:$0xf pattern:$0x76325410]  ;;  %v1841_v3 = vor.u32 %v6238_v56, %v6145_v27 }
 0x1bb   : > { %v1169_v18 = vor.u32 %v1167_v62, %v1166_v6  ;;  %v1173_v19 = vrot.slane %v1171_v7, 7  ;;  %v1159_v29 = vrot.slane %v1157_v14, 7  ;;  %v1324_v30 = vshrl.u32 %v1301_v11, 16 }
 0x1bc   : > { %v1155_v25 = vor.u32 %v1153_v4, %v1152_v13  ;;  %v1327_v31 = vshll.u32 %v1301_v11, 16  ;;  %v5871_v32 = vld.sshfl [vmem:[#allocation2 + $0x44] sm:$0xf pattern:$0x76325410]  ;;  %v1331_v37 = vshrl.u32 %v1308_v16, 16 }
 0x1bd   : > { %v1176_v35 = vor.u32 %v1174_v9, %v1173_v19  ;;  %v1188_v36 = vsel %vm6164_vm11, %v1169_v18, %v1187_v1  ;;  %v1334_v38 = vshll.u32 %v1308_v16, 16  ;;  %v1162_v42 = vor.u32 %v1160_v15, %v1159_v29  ;;  %v5872_v62 = vld.sshfl [vmem:[#allocation2 + $0xdc] sm:$0xf pattern:$0x76325410]  ;;  %v5756_v9 = vld [vmem:[%s6879_s3 + $0x10] sm:$0xff]  }
 0x1be   : > { %1189 = vst [vmem:[#allocation2 + $0xa8] sm:$0x7] %v1188_v36  ;;  %v1182_v44 = vsel %vm6164_vm11, %v1155_v25, %v1181_v5  ;;  %v1326_v46 = vrot.slane %v1324_v30, 7  ;;  %v1338_v47 = vshrl.u32 %v1315_v20, 16  ;;  %v1333_v50 = vrot.slane %v1331_v37, 7  ;;  %v5757_v13 = vld [vmem:[%s6879_s3 + $0x18] sm:$0xff]  }
 0x1bf   : > { %v1191_v49 = vsel %vm6164_vm11, %v1176_v35, %v1190_v12  ;;  %1183 = vst [vmem:[#allocation2 + $0xa0] sm:$0x7] %v1182_v44  ;;  %v1341_v52 = vshll.u32 %v1315_v20, 16  ;;  %v1345_v53 = vshrl.u32 %v1322_v23, 16  ;;  %v1185_v55 = vsel %vm6164_vm11, %v1162_v42, %v1184_v17 }
 0x1c0   : > { %1192 = vst [vmem:[#allocation2 + $0xac] sm:$0x7] %v1191_v49  ;;  %v1329_v57 = vor.u32 %v1327_v31, %v1326_v46  ;;  %v1340_v33 = vrot.slane %v1338_v47, 7  ;;  %v1348_v59 = vshll.u32 %v1322_v23, 16  ;;  %1186 = vst [vmem:[#allocation2 + $0xa4] sm:$0x7] %v1185_v55  ;;  %v1336_v60 = vor.u32 %v1334_v38, %v1333_v50 }
 0x1c1   : > { %v1347_v61 = vrot.slane %v1345_v53, 7  ;;  %v1533_v0 = vcombine.low %v5870_v24, %v5871_v32  ;;  %v5873_v2 = vld.sshfl [vmem:[#allocation2 + $0xe4] sm:$0xf pattern:$0x76325410]  ;;  %v6280_v5 = vcombine.low %v6224_v41, %v6230_v51  ;;  %v1842_v56 = vrot.slane %v1841_v3, 2 }
 0x1c2   : > { %v1343_v8 = vor.u32 %v1341_v52, %v1340_v33  ;;  %v1357_v28 = vsel %vm6164_vm11, %v1329_v57, %v1356_v39  ;;  %v1360_v1 = vsel %vm6164_vm11, %v1336_v60, %v1359_v40  ;;  %v5874_v6 = vld.sshfl [vmem:[#allocation2 + $0x30] sm:$0xf pattern:$0x76325410]  ;;  %v1846_v11 = vrot.slane %v6240_v43, 7  ;;  %v5760_v40 = vld [vmem:[%s6879_s3 + $0x40] sm:$0xff]  }
 0x1c3   : > { %v1350_v63 = vor.u32 %v1348_v59, %v1347_v61  ;;  %1358 = vst [vmem:[#allocation2 + $0x4] sm:$0x7] %v1357_v28  ;;  %1361 = vst [vmem:[#allocation2 + $0x8] sm:$0x7] %v1360_v1  ;;  %5317 = vmatmul.mubr.msk.bf16.vlgmr.msra.gmra.mrb[0].mxu1 %vm1608_vm12, %v1533_v0  ;;  %v6311_v43 = vcombine.low %v5872_v62, %v5873_v2 }
 0x1c4   : > { %v1363_v4 = vsel %vm6164_vm11, %v1343_v8, %v1362_v48  ;;  %v5875_v27 = vld.sshfl [vmem:[#allocation2 + $0x28] sm:$0xf pattern:$0x76325410]  ;;  %5320 = vmatprep.mubr.msk.bf16.mxu1 %vm1608_vm12, %v6280_v5  ;;  %5325 = vmatpush3.bf16.msra.mxu1 %v6097_v10  ;;  %v6315_v20 = vsel %vm6305_vm3, %v1842_v56, %v1846_v11  ;;  %v5854_v10 = vld [vmem:[%s6881_s5 + $0xc0] sm:$0xff]  }
 0x1c5   : > { %1364 = vst [vmem:[#allocation2 + $0xc] sm:$0x7] %v1363_v4  ;;  %v1366_v7 = vsel %vm6164_vm11, %v1350_v63, %v1365_v54  ;;  %5326 = vmatprep.subr.bf16.mxu1 %v5753_v26  ;;  %v6296_v51 = vld.sshfl [vmem:[#allocation2 + $0xc8] sm:$0xf pattern:$0x76325410]  ;;  %v6319_v25 = vcombine.low %v5875_v27, %v5874_v6 }
 0x1c6   : > { %1367 = vst [vmem:[#allocation2 + $0x10] sm:$0x7] %v1366_v7  ;;  %v6294_v41 = vld.sshfl [vmem:[#allocation2 + $0xa0] sm:$0x13 pattern:$0x76325410] }
 0x1c7   : > { %v6299_v12 = vld.sshfl [vmem:[#allocation2 + $0xa8] sm:$0x13 pattern:$0x76325410]  ;;  %v1931_v15 = vshrl.u32 %v6294_v41, 16  ;;  %v1934_v16 = vshll.u32 %v6294_v41, 16 }
 0x1c8   : > { %v5878_v14 = vld.sshfl [vmem:[#allocation2 + $0xa8] sm:$0xf pattern:$0x76325410]  ;;  %5327 = vmatpush3.bf16.msra.mxu1 %v5753_v26  ;;  %v1959_v30 = vshrl.u32 %v6299_v12, 16  ;;  %v1962_v35 = vshll.u32 %v6299_v12, 16  ;;  %v1921_v6 = vcombine.high %v6299_v12, %v6299_v12 }
 0x1c9   : > { %v5880_v18 = vld.sshfl [vmem:[#allocation2 + $0xa0] sm:$0xf pattern:$0x76325410]  ;;  %5328 = vmatprep.subr.bf16.mxu1 %v5756_v9  ;;  %v1933_v60 = vrot.slane %v1931_v15, 6  ;;  %v1936_v61 = vrot.slane %v1934_v16, 7 }
 0x1ca   : > { %v5877_v17 = vld.sshfl [vmem:[#allocation2] sm:$0xf pattern:$0x76325410]  ;;  %v5765_v26 = vld [vmem:[%s6879_s3 + $0x48] sm:$0xff]   ;;  %v6333_v63 = vcombine.low %v5880_v18, %v5878_v14  ;;  %v1961_v56 = vrot.slane %v1959_v30, 6 }
 0x1cb   : > { %v5049_v19 = vld.sshfl [vmem:[#allocation2 + $0x4] sm:$0x13 pattern:$0x76325410]  ;;  %5321 = vmatmul.mubr.msk.bf16.gmra.mrb[4].mxu1 %vm1608_vm12, %v6311_v43  ;;  %v1964_v11 = vrot.slane %v1962_v35, 7 }
 0x1cc   : > { %v6317_v23 = vld.sshfl [vmem:[#allocation2 + $0xa4] sm:$0x13 pattern:$0x76325410]  ;;  %v1849_v29 = vshrl.u32 %v5049_v19, 16  ;;  %v1852_v32 = vshll.u32 %v5049_v19, 16  ;;  %5329 = vmatpush3.bf16.msra.mxu1 %v5756_v9  ;;  %v1810_v37 = vcombine.high %v5049_v19, %v5049_v19  ;;  %v1905_v19 = vcombine.high %v6294_v41, %v6294_v41 }
 0x1cd   : > { %v5879_v24 = vld.sshfl [vmem:[#allocation2 + $0x8] sm:$0xf pattern:$0x76325410]  ;;  %5330 = vmatprep.subr.bf16.mxu1 %v5757_v13  ;;  %v1945_v52 = vshrl.u32 %v6317_v23, 16  ;;  %v1948_v7 = vshll.u32 %v6317_v23, 16  ;;  %v1913_v27 = vcombine.high %v6317_v23, %v6317_v23 }
 0x1ce   : > { %v5050_v31 = vld.sshfl [vmem:[#allocation2 + $0x8] sm:$0x13 pattern:$0x76325410]  ;;  %v1851_v39 = vrot.slane %v1849_v29, 6  ;;  %v1854_v44 = vrot.slane %v1852_v32, 7  ;;  %v1404_v48 = vcombine.low %v5877_v17, %v5879_v24  ;;  %v1937_v29 = vor.u32 %v1936_v61, %v1933_v60 }
 0x1cf   : > { %v5051_v36 = vld.sshfl [vmem:[#allocation2 + $0xc] sm:$0x13 pattern:$0x76325410]  ;;  %v1818_v38 = vcombine.high %v5050_v31, %v5050_v31  ;;  %v1863_v46 = vshrl.u32 %v5050_v31, 16  ;;  %v1866_v47 = vshll.u32 %v5050_v31, 16 }
 0x1d0   : > { %v1826_v42 = vcombine.high %v5051_v36, %v5051_v36  ;;  %v5881_v49 = vld.sshfl [vmem:[#allocation2 + $0xd0] sm:$0xf pattern:$0x76325410]  ;;  %v1877_v50 = vshrl.u32 %v5051_v36, 16  ;;  %v1855_v53 = vor.u32 %v1854_v44, %v1851_v39  ;;  %v1880_v57 = vshll.u32 %v5051_v36, 16  ;;  %5331 = vmatpush3.bf16.msra.mxu1 %v5757_v13  ;;  %5332 = vmatprep.mubr.msk.bf16.mxu1 %vm1608_vm12, %v1404_v48 }
 0x1d1   : > { %v1865_v54 = vrot.slane %v1863_v46, 6  ;;  %v1868_v55 = vrot.slane %v1866_v47, 7  ;;  %v1872_v33 = vshll.u32 %v1818_v38, 16  ;;  %5340 = vmatprep.subr.bf16.mxu1 %v5760_v40  ;;  %v1858_v34 = vshll.u32 %v1810_v37, 16  ;;  %v5766_v13 = vld [vmem:[%s6879_s3 + $0x50] sm:$0xff]   ;;  %v5769_v41 = vld [vmem:[%s6879_s3 + $0x58] sm:$0xff]  }
 0x1d2   : > { %v1879_v59 = vrot.slane %v1877_v50, 6  ;;  %v1882_v28 = vrot.slane %v1880_v57, 7  ;;  %v1886_v62 = vshll.u32 %v1826_v42, 16  ;;  %v1856_v1 = vrot.slane %v1855_v53, 2  ;;  %v5770_v53 = vld [vmem:[%s6879_s3 + $0x60] sm:$0xff]  }
 0x1d3   : > { %v1869_v8 = vor.u32 %v1868_v55, %v1865_v54  ;;  %v5055_v0 = vld.sshfl [vmem:[#allocation2 + $0xac] sm:$0x13 pattern:$0x76325410]  ;;  %v1947_v2 = vrot.slane %v1945_v52, 6  ;;  %5333 = vmatmul.mubr.msk.bf16.vlgmr.msra.gmra.mrb[0].mxu1 %vm1608_vm12, %v6319_v25  ;;  %v1874_v9 = vrot.slane %v1872_v33, 7  ;;  %v1965_v36 = vor.u32 %v1964_v11, %v1961_v56 }
 0x1d4   : > { %v1883_v4 = vor.u32 %v1882_v28, %v1879_v59  ;;  %5341 = vmatpush3.bf16.msra.mxu1 %v5760_v40  ;;  %5336 = vmatprep.mubr.msk.bf16.mxu1 %vm1608_vm12, %v6333_v63  ;;  %v1860_v14 = vrot.slane %v1858_v34, 7  ;;  %v1929_v12 = vcombine.high %v5055_v0, %v5055_v0  ;;  %v1950_v16 = vrot.slane %v1948_v7, 7  ;;  %v6402_v7 = vld.sshfl [vmem:[#allocation2 + $0x64] sm:$0xf pattern:$0x76325410] }
 0x1d5   : > { %v1870_v3 = vrot.slane %v1869_v8, 2  ;;  %5342 = vmatprep.subr.bf16.mxu1 %v5765_v26  ;;  %v1888_v18 = vrot.slane %v1886_v62, 7  ;;  %v1973_v23 = vshrl.u32 %v5055_v0, 16  ;;  %v1976_v31 = vshll.u32 %v5055_v0, 16  ;;  %v5771_v8 = vld [vmem:[%s6879_s3 + $0x68] sm:$0xff]  }
 0x1d6   : > { %v1884_v15 = vrot.slane %v1883_v4, 2  ;;  %v6355_v24 = vsel %vm6305_vm3, %v1856_v1, %v1860_v14  ;;  %v1951_v30 = vor.u32 %v1950_v16, %v1947_v2  ;;  %v1954_v35 = vshll.u32 %v1913_v27, 16  ;;  %v5882_v1 = vld.sshfl [vmem:[#allocation2 + $0x50] sm:$0xf pattern:$0x76325410] }
 0x1d7   : > { %v6349_v17 = vsel %vm6305_vm3, %v1870_v3, %v1874_v9  ;;  %v1975_v37 = vrot.slane %v1973_v23, 6  ;;  %v6362_v38 = vcombine.low %v6296_v51, %v5881_v49  ;;  %v1978_v40 = vrot.slane %v1976_v31, 7  ;;  %v5883_v0 = vld.sshfl [vmem:[#allocation2 + $0x58] sm:$0xf pattern:$0x76325410] }
 0x1d8   : > { %5343 = vmatpush3.bf16.msra.mxu1 %v5765_v26  ;;  %v6359_v32 = vsel %vm6305_vm3, %v1884_v15, %v1888_v18  ;;  %v1982_v42 = vshll.u32 %v1929_v12, 16  ;;  %v1940_v44 = vshll.u32 %v1905_v19, 16  ;;  %v1952_v46 = vrot.slane %v1951_v30, 2  ;;  %v5772_v2 = vld [vmem:[%s6879_s3 + $0x70] sm:$0xff]   ;;  %v5776_v23 = vld [vmem:[%s6879_s3 + $0x80] sm:$0xff]  }
 0x1d9   : > { %5344 = vmatprep.subr.bf16.mxu1 %v5766_v13  ;;  %v1987_v39 = vcombine.low %v6349_v17, %v6359_v32  ;;  %v1968_v47 = vshll.u32 %v1921_v6, 16  ;;  %v1986_v48 = vcombine.low %v6315_v20, %v6355_v24  ;;  %v1979_v51 = vor.u32 %v1978_v40, %v1975_v37  ;;  %v5775_v6 = vld [vmem:[%s6879_s3 + $0x78] sm:$0xff]   ;;  %v6404_v9 = vld.sshfl [vmem:[#allocation2 + $0x6c] sm:$0xf pattern:$0x76325410] }
 0x1da   : > { %v1938_v49 = vrot.slane %v1937_v29, 2  ;;  %v1956_v50 = vrot.slane %v1954_v35, 7  ;;  %v1966_v52 = vrot.slane %v1965_v36, 2  ;;  %v1984_v57 = vrot.slane %v1982_v42, 7  ;;  %v5781_v37 = vld [vmem:[%s6879_s3 + $0x88] sm:$0xff]  }
 0x1db   : > { %5337 = vmatmul.mubr.msk.bf16.gmra.mrb[4].mxu1 %vm1608_vm12, %v6362_v38  ;;  %v2001_v54 = vrot.slane %v1987_v39, %v6102_v22  ;;  %v1980_v55 = vrot.slane %v1979_v51, 2  ;;  %v1942_v33 = vrot.slane %v1940_v44, 7  ;;  %v1970_v59 = vrot.slane %v1968_v47, 7 }
 0x1dc   : > { %5345 = vmatpush3.bf16.msra.mxu1 %v5766_v13  ;;  %5348 = vmatprep.mubr.msk.bf16.mxu1 %vm1608_vm12, %v6319_v25  ;;  %v1957_v20 = vsel %vm6305_vm3, %v1952_v46, %v1956_v50  ;;  %v1994_v60 = vrot.slane %v1986_v48, %v6102_v22  ;;  %v5884_v56 = vld.sshfl [vmem:[#allocation2 + $0x78] sm:$0xf pattern:$0x76325410]  ;;  %v2167_v14 = vcombine.low %v5882_v1, %v5883_v0 }
 0x1dd   : > { %5346 = vmatprep.subr.bf16.mxu1 %v5769_v41  ;;  %v1985_v25 = vsel %vm6305_vm3, %v1980_v55, %v1984_v57  ;;  %v1943_v61 = vsel %vm6305_vm3, %v1938_v49, %v1942_v33  ;;  %v1971_v26 = vsel %vm6305_vm3, %v1966_v52, %v1970_v59  ;;  %v5885_v11 = vld.sshfl [vmem:[#allocation2 + $0x80] sm:$0xf pattern:$0x76325410]  ;;  %v2384_v40 = vcombine.low %v6402_v7, %v6404_v9  ;;  %v5782_v55 = vld [vmem:[%s6879_s3 + $0x90] sm:$0xff]   ;;  %v5787_v0 = vld [vmem:[%s6879_s3 + $0x98] sm:$0xff]  }
 0x1de   : > { %v2002_v34 = vcombine.low %v1994_v60, %v2001_v54  ;;  %v2003_v28 = vcombine.low %v1943_v61, %v1957_v20  ;;  %v2004_v62 = vcombine.low %v1971_v26, %v1985_v25  ;;  %v6408_v13 = vld.sshfl [vmem:[#allocation2 + $0x104] sm:$0xf pattern:$0x76325410]  ;;  %v6424_v36 = vcombine.low %v5884_v56, %v5885_v11 }
 0x1df   : > { %v5888_v15 = vld.sshfl [vmem:[#allocation2 + $0xf0] sm:$0xf pattern:$0x76325410]  ;;  %v3320_v60 = vcombine.low %v6355_v24, %v6349_v17 }
 0x1e0   : > { %5347 = vmatpush3.bf16.msra.mxu1 %v5769_v41  ;;  %v2011_v3 = vrot.slane %v2003_v28, %v6102_v22  ;;  %v2018_v4 = vrot.slane %v2004_v62, %v6102_v22  ;;  %v5889_v12 = vld.sshfl [vmem:[#allocation2 + $0xf8] sm:$0xf pattern:$0x76325410] }
 0x1e1   : > { %5356 = vmatprep.subr.bf16.mxu1 %v5770_v53  ;;  %v6410_v16 = vld.sshfl [vmem:[#allocation2 + $0x10c] sm:$0xf pattern:$0x76325410]  ;;  %v2209_v39 = vcombine.low %v5888_v15, %v5889_v12  ;;  %v5788_v12 = vld [vmem:[%s6879_s3 + $0xa0] sm:$0xff]  }
 0x1e2   : > { %v6406_v27 = vcombine.low %v2011_v3, %v2018_v4  ;;  %v5892_v18 = vld.sshfl [vmem:[#allocation2 + $0x118] sm:$0xf pattern:$0x76325410]  ;;  %v2426_v44 = vcombine.low %v6408_v13, %v6410_v16 }
 0x1e3   : > { %5349 = vmatmul.mubr.msk.bf16.vlgmr.msra.gmra.mrb[0].mxu1 %vm1608_vm12, %v2002_v34  ;;  %v5893_v19 = vld.sshfl [vmem:[#allocation2 + $0x120] sm:$0xf pattern:$0x76325410] }
 0x1e4   : > { %5357 = vmatpush3.bf16.msra.mxu1 %v5770_v53  ;;  %5352 = vmatprep.mubr.msk.bf16.mxu1 %vm1608_vm12, %v6362_v38  ;;  %v6418_v29 = vld.sshfl [vmem:[#allocation2 + $0x50] sm:$0x13 pattern:$0x76325410]  ;;  %v6438_v47 = vcombine.low %v5892_v18, %v5893_v19 }
 0x1e5   : > { %5358 = vmatprep.subr.bf16.mxu1 %v5771_v8  ;;  %v6420_v30 = vld.sshfl [vmem:[#allocation2 + $0x8c] sm:$0xf pattern:$0x76325410]  ;;  %v2606_v46 = vshrl.u32 %v6418_v29, 16  ;;  %v2609_v49 = vshll.u32 %v6418_v29, 16  ;;  %v2580_v61 = vcombine.high %v6418_v29, %v6418_v29 }
 0x1e6   : > { %v5081_v31 = vld.sshfl [vmem:[#allocation2 + $0x54] sm:$0x13 pattern:$0x76325410] }
 0x1e7   : > { %v6422_v35 = vld.sshfl [vmem:[#allocation2 + $0x5c] sm:$0x13 pattern:$0x76325410]  ;;  %v2588_v51 = vcombine.high %v5081_v31, %v5081_v31  ;;  %v2620_v50 = vshrl.u32 %v5081_v31, 16  ;;  %v2623_v52 = vshll.u32 %v5081_v31, 16 }
 0x1e8   : > { %5359 = vmatpush3.bf16.msra.mxu1 %v5771_v8  ;;  %v5115_v41 = vld.sshfl [vmem:[#allocation2 + $0x10] sm:$0x13 pattern:$0x76325410]  ;;  %v2648_v53 = vshrl.u32 %v6422_v35, 16  ;;  %v2651_v33 = vshll.u32 %v6422_v35, 16 }
 0x1e9   : > { %5360 = vmatprep.subr.bf16.mxu1 %v5772_v2  ;;  %v6431_v42 = vld.sshfl [vmem:[#allocation2 + $0x94] sm:$0xf pattern:$0x76325410]  ;;  %v3263_v54 = vcombine.high %v5115_v41, %v5115_v41  ;;  %v3307_v20 = vshrl.u32 %v5115_v41, 16  ;;  %v3310_v59 = vshll.u32 %v5115_v41, 16 }
 0x1ea   : > { %v6440_v48 = vld.sshfl [vmem:[#allocation2 + $0x58] sm:$0x13 pattern:$0x76325410]  ;;  %v2608_v26 = vrot.slane %v2606_v46, 6  ;;  %v2622_v17 = vrot.slane %v2620_v50, 6  ;;  %v2405_v56 = vcombine.low %v6420_v30, %v6431_v42 }
 0x1eb   : > { %5353 = vmatmul.mubr.msk.bf16.gmra.mrb[4].mxu1 %vm1608_vm12, %v6406_v27  ;;  %v6448_v57 = vld.sshfl [vmem:[#allocation2 + $0x12c] sm:$0xf pattern:$0x76325410]  ;;  %v2634_v34 = vshrl.u32 %v6440_v48, 16  ;;  %v2637_v8 = vshll.u32 %v6440_v48, 16  ;;  %v2596_v11 = vcombine.high %v6440_v48, %v6440_v48 }
 0x1ec   : > { %5361 = vmatpush3.bf16.msra.mxu1 %v5772_v2  ;;  %5364 = vmatprep.mubr.msk.bf16.mxu1 %vm1608_vm12, %v2167_v14  ;;  %v6453_v25 = vld.sshfl [vmem:[#allocation2 + $0x134] sm:$0xf pattern:$0x76325410]  ;;  %v3309_v28 = vrot.slane %v3307_v20, 6  ;;  %v3312_v62 = vrot.slane %v3310_v59, 7  ;;  %v2604_v14 = vcombine.high %v6422_v35, %v6422_v35 }
 0x1ed   : > { %5362 = vmatprep.subr.bf16.mxu1 %v5775_v6  ;;  %v3316_v1 = vshll.u32 %v3263_v54, 16  ;;  %v2611_v2 = vrot.slane %v2609_v49, 7  ;;  %v2625_v24 = vrot.slane %v2623_v52, 7  ;;  %v6462_v3 = vshll.u32 %v2588_v51, 16 }
 0x1ee   : > { %v2650_v4 = vrot.slane %v2648_v53, 6  ;;  %v6464_v7 = vld.sshfl [vmem:[#allocation2 + $0xf4] sm:$0x13 pattern:$0x76325410]  ;;  %v3313_v9 = vor.u32 %v3312_v62, %v3309_v28  ;;  %v2636_v18 = vrot.slane %v2634_v34, 6  ;;  %v6491_v52 = vrot.slane %v3320_v60, %v6102_v22 }
 0x1ef   : > { %v6472_v15 = vld.sshfl [vmem:[#allocation2 + $0xfc] sm:$0x13 pattern:$0x76325410]  ;;  %v2639_v19 = vrot.slane %v2637_v8, 7  ;;  %v3318_v29 = vrot.slane %v3316_v1, 7  ;;  %v2612_v30 = vor.u32 %v2611_v2, %v2608_v26 }
 0x1f0   : > { %5363 = vmatpush3.bf16.msra.mxu1 %v5775_v6  ;;  %v2653_v6 = vrot.slane %v2651_v33, 7  ;;  %v2615_v31 = vshll.u32 %v2580_v61, 16  ;;  %v2631_v35 = vrot.slane %v6462_v3, 7  ;;  %v2716_v46 = vshrl.u32 %v6464_v7, 16 }
 0x1f1   : > { %5372 = vmatprep.subr.bf16.mxu1 %v5776_v23  ;;  %v6481_v41 = vld.sshfl [vmem:[#allocation2 + $0xf0] sm:$0x13 pattern:$0x76325410]  ;;  %v2719_v48 = vshll.u32 %v6464_v7, 16  ;;  %v2744_v49 = vshrl.u32 %v6472_v15, 16  ;;  %v2640_v53 = vor.u32 %v2639_v19, %v2636_v18  ;;  %v2684_v3 = vcombine.high %v6464_v7, %v6464_v7 }
 0x1f2   : > { %v5086_v42 = vld.sshfl [vmem:[#allocation2 + $0xf8] sm:$0x13 pattern:$0x76325410]  ;;  %v2643_v54 = vshll.u32 %v2596_v11, 16  ;;  %v2702_v33 = vshrl.u32 %v6481_v41, 16 }
 0x1f3   : > { %5365 = vmatmul.mubr.msk.bf16.vlgmr.msra.gmra.mrb[0].mxu1 %vm1608_vm12, %v6424_v36  ;;  %v2705_v20 = vshll.u32 %v6481_v41, 16  ;;  %v2730_v59 = vshrl.u32 %v5086_v42, 16  ;;  %v2733_v61 = vshll.u32 %v5086_v42, 16  ;;  %v2613_v60 = vrot.slane %v2612_v30, 2 }
 0x1f4   : > { %5373 = vmatpush3.bf16.msra.mxu1 %v5776_v23  ;;  %5368 = vmatprep.mubr.msk.bf16.mxu1 %vm1608_vm12, %v2209_v39  ;;  %v3314_v23 = vrot.slane %v3313_v9, 2  ;;  %v2654_v39 = vor.u32 %v2653_v6, %v2650_v4  ;;  %v2718_v28 = vrot.slane %v2716_v46, 6  ;;  %v2721_v62 = vrot.slane %v2719_v48, 7 }
 0x1f5   : > { %5374 = vmatprep.subr.bf16.mxu1 %v5781_v37  ;;  %v2746_v1 = vrot.slane %v2744_v49, 6  ;;  %v2700_v4 = vcombine.high %v6472_v15, %v6472_v15  ;;  %v2704_v6 = vrot.slane %v2702_v33, 6  ;;  %v2707_v9 = vrot.slane %v2705_v20, 7 }
 0x1f6   : > { %v3319_v51 = vsel %vm6305_vm3, %v3314_v23, %v3318_v29  ;;  %v2655_v8 = vrot.slane %v2654_v39, 2  ;;  %v2732_v11 = vrot.slane %v2730_v59, 6  ;;  %v2617_v18 = vrot.slane %v2615_v31, 7  ;;  %v5797_v39 = vld [vmem:[%s6879_s3 + $0xb8] sm:$0xff]  }
 0x1f7   : > { %v3321_v50 = vcombine.low %v6359_v32, %v3319_v51  ;;  %v5793_v32 = vld [vmem:[%s6879_s3 + $0xa8] sm:$0xff]   ;;  %v2692_v16 = vcombine.high %v5086_v42, %v5086_v42  ;;  %v2708_v30 = vor.u32 %v2707_v9, %v2704_v6  ;;  %v2725_v31 = vshll.u32 %v2684_v3, 16  ;;  %v5801_v3 = vld [vmem:[%s6879_s3 + $0xd8] sm:$0xff]  }
 0x1f8   : > { %5375 = vmatpush3.bf16.msra.mxu1 %v5781_v37  ;;  %v2626_v37 = vor.u32 %v2625_v24, %v2622_v17  ;;  %v2641_v17 = vrot.slane %v2640_v53, 2  ;;  %v2618_v23 = vsel %vm6305_vm3, %v2613_v60, %v2617_v18  ;;  %v5899_v6 = vld.sshfl [vmem:[#allocation2 + $0xc] sm:$0xf pattern:$0x76325410] }
 0x1f9   : > { %5376 = vmatprep.subr.bf16.mxu1 %v5782_v55  ;;  %v6496_v26 = vrot.slane %v3321_v50, %v6102_v22  ;;  %v2739_v49 = vshll.u32 %v2692_v16, 16  ;;  %v2709_v50 = vrot.slane %v2708_v30, 2  ;;  %v2727_v53 = vrot.slane %v2725_v31, 7  ;;  %v5805_v9 = vld [vmem:[%s6879_s3 + $0xe8] sm:$0xff]   ;;  %v5817_v30 = vld [vmem:[%s6879_s3 + $0x118] sm:$0xff]  }
 0x1fa   : > { %v2627_v34 = vrot.slane %v2626_v37, 2  ;;  %v5813_v16 = vld [vmem:[%s6879_s3 + $0x108] sm:$0xff]  }
 0x1fb   : > { %5369 = vmatmul.mubr.msk.bf16.gmra.mrb[4].mxu1 %vm1608_vm12, %v6438_v47  ;;  %v390_v31 = vld [vmem:[#allocation3 + $0x2c] sm:$0x1] }
 0x1fc   : > { %5377 = vmatpush3.bf16.msra.mxu1 %v5782_v55  ;;  %5380 = vmatprep.mubr.msk.bf16.mxu1 %vm1608_vm12, %v2384_v40  ;;  %v2747_v40 = vshll.u32 %v6472_v15, 16  ;;  %v2657_v55 = vshll.u32 %v2604_v14, 16  ;;  %v2735_v14 = vrot.slane %v2733_v61, 7  ;;  %v2632_v7 = vsel %vm6305_vm3, %v2627_v34, %v2631_v35 }
 0x1fd   : > { %5378 = vmatprep.subr.bf16.mxu1 %v5787_v0  ;;  %v2645_v15 = vrot.slane %v2643_v54, 7  ;;  %v2753_v35 = vshll.u32 %v2700_v4, 16  ;;  %v2757_v42 = vcombine.low %v2618_v23, %v2632_v7  ;;  %v2741_v61 = vrot.slane %v2739_v49, 7  ;;  %v5809_v7 = vld [vmem:[%s6879_s3 + $0xf8] sm:$0xff]  }
 0x1fe   : > { %v2749_v2 = vrot.slane %v2747_v40, 7  ;;  %v2659_v24 = vrot.slane %v2657_v55, 7  ;;  %v2736_v37 = vor.u32 %v2735_v14, %v2732_v11  ;;  %v5898_v4 = vld.sshfl [vmem:[#allocation2 + $0x4] sm:$0xf pattern:$0x76325410] }
 0x1ff   : > { %v2646_v29 = vsel %vm6305_vm3, %v2641_v17, %v2645_v15  ;;  %v2765_v55 = vrot.slane %v2757_v42, %v6102_v22  ;;  %v5900_v11 = vld.sshfl [vmem:[#allocation2 + $0x2c] sm:$0xf pattern:$0x76325410]  ;;  %v373_v42 = vld [vmem:[#allocation3 + $0x8] sm:$0x1] }
 0x200   : > { %5379 = vmatpush3.bf16.msra.mxu1 %v5787_v0  ;;  %v3336_v0 = vcombine.low %v6491_v52, %v6496_v26  ;;  %v2660_v13 = vsel %vm6305_vm3, %v2655_v8, %v2659_v24  ;;  %v2750_v19 = vor.u32 %v2749_v2, %v2746_v1  ;;  %v2737_v54 = vrot.slane %v2736_v37, 2  ;;  %v5799_v8 = vld [vmem:[%s6879_s3 + $0xc8] sm:$0xff]   ;;  %v5800_v1 = vld [vmem:[%s6879_s3 + $0xd0] sm:$0xff]   ;;  %v5818_v26 = vld [vmem:[%s6881_s5 + $0x20] sm:$0xff]  }
 0x201   : > { %5388 = vmatprep.subr.bf16.mxu1 %v5788_v12  ;;  %v2758_v46 = vcombine.low %v2646_v29, %v2660_v13  ;;  %v5901_v14 = vld.sshfl [vmem:[#allocation2 + $0x34] sm:$0xf pattern:$0x76325410]  ;;  %v5810_v13 = vld [vmem:[%s6879_s3 + $0x100] sm:$0xff]  }
 0x202   : > { %v2751_v40 = vrot.slane %v2750_v19, 2  ;;  %v2742_v60 = vsel %vm6305_vm3, %v2737_v54, %v2741_v61  ;;  %v2951_v18 = vcombine.low %v5900_v11, %v5901_v14  ;;  %v5902_v15 = vld.sshfl [vmem:[#allocation2 + $0x18] sm:$0xf pattern:$0x76325410] }
 0x203   : > { %5381 = vmatmul.mubr.msk.bf16.vlgmr.msra.gmra.mrb[0].mxu1 %vm1608_vm12, %v2405_v56  ;;  %v5794_v56 = vld [vmem:[%s6879_s3 + $0xb0] sm:$0xff]   ;;  %v2772_v33 = vrot.slane %v2758_v46, %v6102_v22  ;;  %v5905_v19 = vld.sshfl [vmem:[#allocation2 + $0x48] sm:$0xf pattern:$0x76325410]  ;;  %v5831_v61 = vld [vmem:[%s6881_s5 + $0x118] sm:$0xff]  }
 0x204   : > { %5389 = vmatpush3.bf16.msra.mxu1 %v5788_v12  ;;  %5384 = vmatprep.mubr.msk.bf16.mxu1 %vm1608_vm12, %v2426_v44  ;;  %v2676_v12 = vcombine.high %v6481_v41, %v6481_v41  ;;  %v2722_v44 = vor.u32 %v2721_v62, %v2718_v28  ;;  %v2447_v41 = vcombine.low %v6448_v57, %v6453_v25  ;;  %v2755_v57 = vrot.slane %v2753_v35, 7  ;;  %v5798_v25 = vld [vmem:[%s6879_s3 + $0xc0] sm:$0xff]   ;;  %v393_v37 = vld [vmem:[#allocation3 + $0x30] sm:$0x1]  ;;  %v376_v46 = vld [vmem:[#allocation3 + $0xc] sm:$0x1] }
 0x205   : > { %5390 = vmatprep.subr.bf16.mxu1 %v5793_v32  ;;  %v2773_v34 = vcombine.low %v2765_v55, %v2772_v33  ;;  %v377_v49 = vsel %vm6025_vm5, 0, %v376_v46  ;;  %v383_v54 = vld [vmem:[#allocation3 + $0x14] sm:$0x7]  ;;  %v5821_v55 = vld [vmem:[%s6881_s5 + $0x38] sm:$0xff]   ;;  %v5825_v33 = vld [vmem:[%s6881_s5 + $0x100] sm:$0xff]  }
 0x206   : > { %v2711_v48 = vshll.u32 %v2676_v12, 16  ;;  %v2723_v51 = vrot.slane %v2722_v44, 2  ;;  %v5903_v12 = vld.sshfl [vmem:[#allocation2 + $0x20] sm:$0xf pattern:$0x76325410] }
 0x207   : > { %v5904_v44 = vld.sshfl [vmem:[#allocation2 + $0x40] sm:$0xf pattern:$0x76325410]  ;;  %v3091_v23 = vcombine.low %v5902_v15, %v5903_v12  ;;  %378 = vst [vmem:[#allocation3 + $0xc] sm:$0x1] %v377_v49 }
 0x208   : > { %5391 = vmatpush3.bf16.msra.mxu1 %v5793_v32  ;;  %v2713_v20 = vrot.slane %v2711_v48, 7  ;;  %v2728_v59 = vsel %vm6305_vm3, %v2723_v51, %v2727_v53  ;;  %v3112_v29 = vcombine.low %v5904_v44, %v5905_v19  ;;  %v374_v51 = vsel %vm6025_vm5, 0, %v373_v42  ;;  %v5819_v53 = vld [vmem:[%s6881_s5 + $0x28] sm:$0xff]  }
 0x209   : > { %5392 = vmatprep.subr.bf16.mxu1 %v5794_v56  ;;  %375 = vst [vmem:[#allocation3 + $0x8] sm:$0x1] %v374_v51 }
 0x20a   : > { %v2714_v32 = vsel %vm6305_vm3, %v2709_v50, %v2713_v20  ;;  %v5827_v20 = vld [vmem:[%s6881_s5 + $0x108] sm:$0xff]  }
 0x20b   : > { %5385 = vmatmul.mubr.msk.bf16.gmra.mrb[4].mxu1 %vm1608_vm12, %v2447_v41  ;;  %v2774_v28 = vcombine.low %v2714_v32, %v2728_v59  ;;  %v394_v41 = vsel %vm6025_vm5, 0, %v393_v37  ;;  %v5829_v59 = vld [vmem:[%s6881_s5 + $0x110] sm:$0xff]  }
 0x20c   : > { %5393 = vmatpush3.bf16.msra.mxu1 %v5794_v56  ;;  %5396 = vmatprep.mubr.msk.bf16.mxu1 %vm1608_vm12, %v6424_v36  ;;  %v2756_v36 = vsel %vm6305_vm3, %v2751_v40, %v2755_v57  ;;  %v2930_v56 = vcombine.low %v5898_v4, %v5899_v6  ;;  %395 = vst [vmem:[#allocation3 + $0x30] sm:$0x1] %v394_v41  ;;  %v379_v40 = vld [vmem:[#allocation3 + $0x10] sm:$0x1] }
 0x20d   : > { %5394 = vmatprep.subr.bf16.mxu1 %v5797_v39  ;;  %v2775_v62 = vcombine.low %v2742_v60, %v2756_v36  ;;  %v2782_v2 = vrot.slane %v2774_v28, %v6102_v22  ;;  %v380_v50 = vsel %vm6025_vm5, 0, %v379_v40  ;;  %v5820_v57 = vld [vmem:[%s6881_s5 + $0x30] sm:$0xff]   ;;  %v364_v36 = vld [vmem:[#allocation3] sm:$0x7] }
 0x20e   : > { %381 = vst [vmem:[#allocation3 + $0x10] sm:$0x1] %v380_v50  ;;  %v365_v32 = vsel %vm6054_vm8, 0, %v364_v36 }
 0x20f   : > { %v2789_v17 = vrot.slane %v2775_v62, %v6102_v22  ;;  %366 = vst [vmem:[#allocation3] sm:$0x7] %v365_v32 }
 0x210   : > { %5395 = vmatpush3.bf16.msra.mxu1 %v5797_v39  ;;  %v370_v39 = vld [vmem:[#allocation3 + $0x4] sm:$0x1] }
 0x211   : > { %5404 = vmatprep.subr.bf16.mxu1 %v5798_v25  ;;  %v2790_v24 = vcombine.low %v2782_v2, %v2789_v17  ;;  %v371_v48 = vsel %vm6025_vm5, 0, %v370_v39 }
 0x212   : > { %372 = vst [vmem:[#allocation3 + $0x4] sm:$0x1] %v371_v48 }
 0x213   : > { %5397 = vmatmul.mubr.msk.bf16.vlgmr.msra.gmra.mrb[0].mxu1 %vm1608_vm12, %v2773_v34 }
 0x214   : > { %5405 = vmatpush3.bf16.msra.mxu1 %v5798_v25  ;;  %5400 = vmatprep.mubr.msk.bf16.mxu1 %vm1608_vm12, %v6438_v47  ;;  %v5802_v47 = vld [vmem:[%s6879_s3 + $0xe0] sm:$0xff]   ;;  %v384_v25 = vsel %vm6054_vm8, 0, %v383_v54 }
 0x215   : > { %5406 = vmatprep.subr.bf16.mxu1 %v5799_v8  ;;  %385 = vst [vmem:[#allocation3 + $0x14] sm:$0x7] %v384_v25 }
 0x216   : > { %v367_v60 = vld [vmem:[#allocation3] sm:$0x1] }
 0x217   : > { %v368_v34 = vsel %vm6025_vm5, 0, %v367_v60 }
 0x218   : > { %5407 = vmatpush3.bf16.msra.mxu1 %v5799_v8  ;;  %369 = vst [vmem:[#allocation3] sm:$0x1] %v368_v34  ;;  %v5124_v8 = vld [vmem:[%s6880_s4] ss:$0 sm:$0xff] }
 0x219   : > { %5408 = vmatprep.subr.bf16.mxu1 %v5800_v1 }
 0x21b   : > { %5401 = vmatmul.mubr.msk.bf16.gmra.mrb[4].mxu1 %vm1608_vm12, %v2790_v24 }
 0x21c   : > { %5409 = vmatpush3.bf16.msra.mxu1 %v5800_v1  ;;  %5412 = vmatprep.mubr.msk.bf16.mxu1 %vm1608_vm12, %v6333_v63  ;;  %v5806_v63 = vld [vmem:[%s6879_s3 + $0xf0] sm:$0xff]  }
 0x21d   : > { %5410 = vmatprep.subr.bf16.mxu1 %v5801_v3 }
 0x220   : > { %5411 = vmatpush3.bf16.msra.mxu1 %v5801_v3 }
 0x221   : > { %5420 = vmatprep.subr.bf16.mxu1 %v5802_v47 }
 0x223   : > { %5413 = vmatmul.mubr.msk.bf16.vlgmr.msra.gmra.mrb[0].mxu1 %vm1608_vm12, %v6362_v38 }
 0x224   : > { %5421 = vmatpush3.bf16.msra.mxu1 %v5802_v47  ;;  %5416 = vmatprep.mubr.msk.bf16.mxu1 %vm1608_vm12, %v2930_v56 }
 0x225   : > { %5422 = vmatprep.subr.bf16.mxu1 %v5805_v9 }
 0x228   : > { %5423 = vmatpush3.bf16.msra.mxu1 %v5805_v9 }
 0x229   : > { %5424 = vmatprep.subr.bf16.mxu1 %v5806_v63 }
 0x22b   : > { %5417 = vmatmul.mubr.msk.bf16.gmra.mrb[4].mxu1 %vm1608_vm12, %v2951_v18 }
 0x22c   : > { %5425 = vmatpush3.bf16.msra.mxu1 %v5806_v63  ;;  %5428 = vmatprep.mubr.msk.bf16.mxu1 %vm1608_vm12, %v6280_v5  ;;  %v5814_v5 = vld [vmem:[%s6879_s3 + $0x110] sm:$0xff]  }
 0x22d   : > { %5426 = vmatprep.subr.bf16.mxu1 %v5809_v7 }
 0x230   : > { %5427 = vmatpush3.bf16.msra.mxu1 %v5809_v7 }
 0x231   : > { %5436 = vmatprep.subr.bf16.mxu1 %v5810_v13 }
 0x233   : > { %5429 = vmatmul.mubr.msk.bf16.vlgmr.msra.gmra.mrb[0].mxu1 %vm1608_vm12, %v6311_v43  ;;  %v387_v43 = vld [vmem:[#allocation3 + $0x28] sm:$0x1] }
 0x234   : > { %5437 = vmatpush3.bf16.msra.mxu1 %v5810_v13  ;;  %5432 = vmatprep.mubr.msk.bf16.mxu1 %vm1608_vm12, %v3091_v23  ;;  %v388_v35 = vsel %vm6025_vm5, 0, %v387_v43 }
 0x235   : > { %5438 = vmatprep.subr.bf16.mxu1 %v5813_v16  ;;  %389 = vst [vmem:[#allocation3 + $0x28] sm:$0x1] %v388_v35 }
 0x238   : > { %5439 = vmatpush3.bf16.msra.mxu1 %v5813_v16 }
 0x239   : > { %5440 = vmatprep.subr.bf16.mxu1 %v5814_v5 }
 0x23b   : > { %5433 = vmatmul.mubr.msk.bf16.gmra.mrb[4].mxu1 %vm1608_vm12, %v3112_v29 }
 0x23c   : > { %5441 = vmatpush3.bf16.msra.mxu1 %v5814_v5  ;;  %5444 = vmatprep.mubr.msk.bf16.mxu1 %vm1608_vm12, %v6362_v38  ;;  %v391_v38 = vsel %vm6025_vm5, 0, %v390_v31  ;;  %v3577_v54 = vld [vmem:[#allocation3 + $0x28] sm:$0x7] }
 0x23d   : > { %5442 = vmatprep.subr.bf16.mxu1 %v5817_v30  ;;  %392 = vst [vmem:[#allocation3 + $0x2c] sm:$0x1] %v391_v38 }
 0x240   : > { %5443 = vmatpush3.bf16.msra.mxu1 %v5817_v30 }
 0x243   : > { %5445 = vmatmul.mubr.msk.bf16.vlgmr.msra.gmra.mrb[0].mxu1 %vm1608_vm12, %v6406_v27  ;;  %v396_v27 = vld [vmem:[#allocation3 + $0x34] sm:$0x1] }
 0x244   : > { %5448 = vmatprep.mubr.msk.bf16.mxu1 %vm1608_vm12, %v2951_v18  ;;  %v397_v52 = vsel %vm6025_vm5, 0, %v396_v27  ;;  %v3580_v32 = vld [vmem:[#allocation3 + $0x2c] sm:$0x7]  ;;  %vm4937_vm5 = vcmask 130048  }
 0x245   : > { %398 = vst [vmem:[#allocation3 + $0x34] sm:$0x1] %v397_v52 }
 0x24b   : > { %5449 = vmatmul.mubr.msk.bf16.gmra.mrb[4].mxu1 %vm1608_vm12, %v3336_v0  ;;  %v5929_v0 = vmov 0.0  }
 0x24c   : > { %5452 = vmatprep.subr.bf16.mxu0 %v5929_v0  ;;  %5548 = vmatprep.subr.bf16.mxu1 %v5929_v0  ;;  %v3586_v60 = vld [vmem:[#allocation3 + $0x34] sm:$0x7] }
 0x24d   : > { %5453 = vmatpush3.bf16.msra.mxu0 %v5818_v26  ;;  %5460 = vmatprep.mubr.msk.bf16.mxu0 %vm5930_vm4, %v5929_v0 }
 0x24e   : > { %5454 = vmatprep.subr.bf16.mxu0 %v5929_v0  ;;  %5556 = vmatprep.mubr.msk.bf16.mxu1 %vm5930_vm4, %v5929_v0 }
 0x24f   : > { %5549 = vmatpush3.bf16.msra.mxu1 %v5825_v33 }
 0x250   : > { %5550 = vmatprep.subr.bf16.mxu1 %v5929_v0 }
 0x251   : > { %5455 = vmatpush3.bf16.msra.mxu0 %v5819_v53 }
 0x252   : > { %5456 = vmatprep.subr.bf16.mxu0 %v5929_v0 }
 0x253   : > { %5551 = vmatpush3.bf16.msra.mxu1 %v5827_v20 }
 0x254   : > { %5552 = vmatprep.subr.bf16.mxu1 %v5929_v0 }
 0x255   : > { %5457 = vmatpush3.bf16.msra.mxu0 %v5820_v57 }
 0x256   : > { %5458 = vmatprep.subr.bf16.mxu0 %v5929_v0 }
 0x257   : > { %5553 = vmatpush3.bf16.msra.mxu1 %v5829_v59 }
 0x258   : > { %5554 = vmatprep.subr.bf16.mxu1 %v5929_v0 }
 0x259   : > { %5459 = vmatpush3.bf16.msra.mxu0 %v5821_v55 }
 0x25a   : > { %5464 = vmatprep.subr.bf16.mxu0 %v5929_v0 }
 0x25b   : > { %5555 = vmatpush3.bf16.msra.mxu1 %v5831_v61  ;;  %v3583_v61 = vld [vmem:[#allocation3 + $0x30] sm:$0x7] }
 0x316   : > { %v5446_v28 = vpop.f32.mrb[0].mxu1 }
 0x317   : > { %v3454_v62 = vadd.f32 %v5446_v28, %v5124_v8  ;;  %v3406_v1 = vpop.f32.mrb[1].mxu1 }
 0x318   : > { %v3452_v2 = vadd.f32 %v5124_v8, %v3406_v1  ;;  %v5447_v17 = vpop.f32.mrb[2].mxu1 }
 0x319   : > { %v3455_v24 = vadd.f32 %v5447_v17, %v5124_v8  ;;  %v3409_v3 = vpop.f32.mrb[3].mxu1  ;;  %v3462_v4 = vmax.f32 %v3454_v62, 0.0 }
 0x31a   : > { %v3453_v45 = vadd.f32 %v5124_v8, %v3409_v3  ;;  %v3460_v47 = vmax.f32 %v3452_v2, 0.0 }
 0x31b   : > { %v3463_v6 = vmax.f32 %v3455_v24, 0.0 }
 0x31c   : > { %v3461_v9 = vmax.f32 %v3453_v45, 0.0 }
 0x31d   : > { %v3469_v11 = vpack.c.bf16 %v3463_v6, %v3462_v4  ;;  %v5126_v21 = vpack.c.bf16 %v3463_v6, %v3463_v6 }
 0x31e   : > { %v3468_v14 = vpack.c.bf16 %v3461_v9, %v3460_v47  ;;  %v5125_v56 = vpack.c.bf16 %v3461_v9, %v3461_v9  ;;  %v5450_v63 = vpop.f32.mrb[4].mxu1 }
 0x31f   : > { %v3507_v18 = vrot.slane %v3469_v11, %v6102_v22  ;;  %v3514_v7 = vrot.slane %v5126_v21, %v6102_v22  ;;  %v3458_v15 = vadd.f32 %v5450_v63, %v5124_v8  ;;  %v3422_v12 = vpop.f32.mrb[5].mxu1 }
 0x320   : > { %v3480_v13 = vrot.slane %v3468_v14, %v6102_v22  ;;  %v3487_v16 = vrot.slane %v5125_v56, %v6102_v22  ;;  %v3456_v44 = vadd.f32 %v5124_v8, %v3422_v12  ;;  %v5451_v19 = vpop.f32.mrb[6].mxu1 }
 0x321   : > { %v3515_v23 = vcombine.high %v3507_v18, %v3507_v18  ;;  %v3516_v5 = vcombine.high %v3514_v7, %v3514_v7  ;;  %v3523_v29 = vrot.slane %v3507_v18, %v6102_v22  ;;  %v3537_v30 = vrot.slane %v3514_v7, %v6102_v22  ;;  %v3425_v43 = vpop.f32.mrb[7].mxu1 }
 0x322   : > { %v3488_v31 = vcombine.high %v3480_v13, %v3480_v13  ;;  %v3489_v37 = vcombine.high %v3487_v16, %v3487_v16  ;;  %3495 = vst.msk [vmem:[#allocation3 + $0x3c] sm:$0x3] %vm1017_vm9, %v3480_v13  ;;  %3497 = vst.msk [vmem:[#allocation3 + $0x44] sm:$0x3] %vm1017_vm9, %v3487_v16  ;;  %v3466_v35 = vmax.f32 %v3458_v15, 0.0  ;;  %v3464_v52 = vmax.f32 %v3456_v44, 0.0 }
 0x323   : > { %v3530_v38 = vrot.slane %v3515_v23, %v6102_v22  ;;  %v3544_v41 = vrot.slane %v3516_v5, %v6102_v22  ;;  %v3546_v27 = vshrl.u32 %v3523_v29, 16  ;;  %v3549_v26 = vshll.u32 %v3523_v29, 16  ;;  %v3695_v16 = vld [vmem:[#allocation3 + $0x4] sm:$0x7]  ;;  %v3701_v29 = vld [vmem:[#allocation3 + $0xc] sm:$0x7] }
 0x324   : > { %v3560_v39 = vshrl.u32 %v3537_v30, 16  ;;  %3496 = vst.msk [vmem:[#allocation3 + $0x40] sm:$0x3] %vm1017_vm9, %v3488_v31  ;;  %3498 = vst.msk [vmem:[#allocation3 + $0x48] sm:$0x3] %vm1017_vm9, %v3489_v37  ;;  %v3459_v42 = vadd.f32 %v5451_v19, %v5124_v8  ;;  %v3457_v46 = vadd.f32 %v5124_v8, %v3425_v43  ;;  %v3563_v49 = vshll.u32 %v3537_v30, 16 }
 0x325   : > { %v3548_v48 = vrot.slane %v3546_v27, 7  ;;  %v3553_v51 = vshrl.u32 %v3530_v38, 16  ;;  %v3567_v40 = vshrl.u32 %v3544_v41, 16  ;;  %v3556_v50 = vshll.u32 %v3530_v38, 16  ;;  %v3698_v37 = vld [vmem:[#allocation3 + $0x8] sm:$0x7] }
 0x326   : > { %v3562_v53 = vrot.slane %v3560_v39, 7  ;;  %v3467_v57 = vmax.f32 %v3459_v42, 0.0  ;;  %v3465_v25 = vmax.f32 %v3457_v46, 0.0  ;;  %v3570_v59 = vshll.u32 %v3544_v41, 16 }
 0x327   : > { %v3551_v55 = vor.u32 %v3549_v26, %v3548_v48  ;;  %v3555_v33 = vrot.slane %v3553_v51, 7  ;;  %v3569_v20 = vrot.slane %v3567_v40, 7  ;;  %v3704_v26 = vld [vmem:[#allocation3 + $0x10] sm:$0x7] }
 0x328   : > { %v3565_v36 = vor.u32 %v3563_v49, %v3562_v53  ;;  %v3471_v34 = vpack.c.bf16 %v3467_v57, %v3466_v35  ;;  %v5128_v28 = vpack.c.bf16 %v3467_v57, %v3467_v57  ;;  %v3470_v8 = vpack.c.bf16 %v3465_v25, %v3464_v52  ;;  %v5824_v53 = vld [vmem:[%s6881_s5] sm:$0xff]  }
 0x329   : > { %v3558_v62 = vor.u32 %v3556_v50, %v3555_v33  ;;  %v3572_v1 = vor.u32 %v3570_v59, %v3569_v20  ;;  %v3578_v2 = vsel %vm6164_vm11, %v3551_v55, %v3577_v54  ;;  %v5127_v17 = vpack.c.bf16 %v3465_v25, %v3465_v25  ;;  %v5139_v54 = vld.sshfl [vmem:[#allocation3] sm:$0x13 pattern:$0x76325410]  ;;  %v5826_v25 = vld [vmem:[%s6881_s5 + $0x8] sm:$0xff]  }
 0x32a   : > { %3579 = vst [vmem:[#allocation3 + $0x28] sm:$0x7] %v3578_v2  ;;  %v3584_v24 = vsel %vm6164_vm11, %v3565_v36, %v3583_v61  ;;  %v3624_v3 = vrot.slane %v3471_v34, %v6102_v22  ;;  %v3631_v45 = vrot.slane %v5128_v28, %v6102_v22  ;;  %v3597_v4 = vrot.slane %v3470_v8, %v6102_v22  ;;  %v5828_v61 = vld [vmem:[%s6881_s5 + $0x10] sm:$0xff]  }
 0x32b   : > { %v3581_v6 = vsel %vm6164_vm11, %v3558_v62, %v3580_v32  ;;  %3585 = vst [vmem:[#allocation3 + $0x30] sm:$0x7] %v3584_v24  ;;  %v3587_v47 = vsel %vm6164_vm11, %v3572_v1, %v3586_v60  ;;  %v3604_v9 = vrot.slane %v5127_v17, %v6102_v22  ;;  %v3950_v55 = vshrl.u32 %v5139_v54, 16 }
 0x32c   : > { %3582 = vst [vmem:[#allocation3 + $0x2c] sm:$0x7] %v3581_v6  ;;  %3588 = vst [vmem:[#allocation3 + $0x34] sm:$0x7] %v3587_v47  ;;  %v3632_v11 = vcombine.high %v3624_v3, %v3624_v3  ;;  %v3633_v21 = vcombine.high %v3631_v45, %v3631_v45  ;;  %v3640_v14 = vrot.slane %v3624_v3, %v6102_v22  ;;  %v3953_v59 = vshll.u32 %v5139_v54, 16 }
 0x32d   : > { %v3654_v56 = vrot.slane %v3631_v45, %v6102_v22  ;;  %3612 = vst.msk [vmem:[#allocation3 + $0x18] sm:$0x3] %vm1017_vm9, %v3597_v4  ;;  %v3605_v63 = vcombine.high %v3597_v4, %v3597_v4  ;;  %v3606_v18 = vcombine.high %v3604_v9, %v3604_v9  ;;  %3614 = vst.msk [vmem:[#allocation3 + $0x20] sm:$0x3] %vm1017_vm9, %v3604_v9  ;;  %v3952_v24 = vrot.slane %v3950_v55, 6 }
 0x32e   : > { %v3647_v7 = vrot.slane %v3632_v11, %v6102_v22  ;;  %v3661_v15 = vrot.slane %v3633_v21, %v6102_v22  ;;  %v3663_v12 = vshrl.u32 %v3640_v14, 16  ;;  %v3666_v19 = vshll.u32 %v3640_v14, 16 }
 0x32f   : > { %v3677_v13 = vshrl.u32 %v3654_v56, 16  ;;  %3613 = vst.msk [vmem:[#allocation3 + $0x1c] sm:$0x3] %vm1017_vm9, %v3605_v63  ;;  %3615 = vst.msk [vmem:[#allocation3 + $0x24] sm:$0x3] %vm1017_vm9, %v3606_v18  ;;  %v3680_v31 = vshll.u32 %v3654_v56, 16  ;;  %v3924_v4 = vcombine.high %v5139_v54, %v5139_v54 }
 0x330   : > { %v3665_v44 = vrot.slane %v3663_v12, 7  ;;  %v3670_v23 = vshrl.u32 %v3647_v7, 16  ;;  %v3684_v5 = vshrl.u32 %v3661_v15, 16  ;;  %v3673_v30 = vshll.u32 %v3647_v7, 16  ;;  %v5830_v7 = vld [vmem:[%s6881_s5 + $0x18] sm:$0xff]   ;;  %v5835_v54 = vld [vmem:[%s6881_s5 + $0x48] sm:$0xff]  }
 0x331   : > { %v3679_v43 = vrot.slane %v3677_v13, 7  ;;  %v3687_v27 = vshll.u32 %v3661_v15, 16  ;;  %v3955_v6 = vrot.slane %v3953_v59, 7 }
 0x332   : > { %v3668_v35 = vor.u32 %v3666_v19, %v3665_v44  ;;  %v3672_v38 = vrot.slane %v3670_v23, 7  ;;  %v3686_v41 = vrot.slane %v3684_v5, 7 }
 0x333   : > { %v3682_v52 = vor.u32 %v3680_v31, %v3679_v43 }
 0x334   : > { %v3675_v39 = vor.u32 %v3673_v30, %v3672_v38  ;;  %v3689_v42 = vor.u32 %v3687_v27, %v3686_v41  ;;  %v3696_v46 = vsel %vm6164_vm11, %v3668_v35, %v3695_v16  ;;  %v5906_v48 = vld.sshfl [vmem:[#allocation3 + $0x14] sm:$0xf pattern:$0x76325410]  ;;  %v5834_v38 = vld [vmem:[%s6881_s5 + $0x40] sm:$0xff]   ;;  %v3956_v27 = vor.u32 %v3955_v6, %v3952_v24 }
 0x335   : > { %3697 = vst [vmem:[#allocation3 + $0x4] sm:$0x7] %v3696_v46  ;;  %v3702_v51 = vsel %vm6164_vm11, %v3682_v52, %v3701_v29  ;;  %v3959_v52 = vshll.u32 %v3924_v4, 16 }
 0x336   : > { %v3699_v49 = vsel %vm6164_vm11, %v3675_v39, %v3698_v37  ;;  %3703 = vst [vmem:[#allocation3 + $0xc] sm:$0x7] %v3702_v51  ;;  %v3705_v40 = vsel %vm6164_vm11, %v3689_v42, %v3704_v26  ;;  %v5907_v50 = vld.sshfl [vmem:[#allocation3 + $0x1c] sm:$0xf pattern:$0x76325410] }
 0x337   : > { %3700 = vst [vmem:[#allocation3 + $0x8] sm:$0x7] %v3699_v49  ;;  %3706 = vst [vmem:[#allocation3 + $0x10] sm:$0x7] %v3705_v40  ;;  %v3751_v57 = vcombine.low %v5906_v48, %v5907_v50 }
 0x338   : > { %v5911_v24 = vld.sshfl [vmem:[#allocation3 + $0x30] sm:$0xf pattern:$0x76325410] }
 0x339   : > { %5461 = vmatmul.mubr.msk.bf16.vlgmr.msra.gmra.mrb[16].mxu0 %vm1608_vm12, %v3751_v57  ;;  %v3957_v57 = vrot.slane %v3956_v27, 2  ;;  %v5159_v6 = vld.sshfl [vmem:[#allocation3 + $0x2c] sm:$0x13 pattern:$0x76325410] }
 0x33a   : > { %5465 = vmatpush3.bf16.msra.mxu0 %v5824_v53  ;;  %5472 = vmatprep.mubr.msk.bf16.mxu0 %vm5930_vm4, %v5929_v0 }
 0x33b   : > { %5466 = vmatprep.subr.bf16.mxu0 %v5929_v0 }
 0x33c   : > { %v5177_v58 = vld.sshfl [vmem:[#allocation3 + $0x4] sm:$0x13 pattern:$0x76325410] }
 0x33d   : > { %v4744_v33 = vshrl.u32 %v5177_v58, 16  ;;  %v4747_v20 = vshll.u32 %v5177_v58, 16  ;;  %v5908_v36 = vld.sshfl [vmem:[#allocation3] sm:$0xf pattern:$0x76325410]  ;;  %v4718_v28 = vcombine.high %v5177_v58, %v5177_v58 }
 0x33e   : > { %v5178_v32 = vld.sshfl [vmem:[#allocation3 + $0x8] sm:$0x13 pattern:$0x76325410]  ;;  %5467 = vmatpush3.bf16.msra.mxu0 %v5826_v25  ;;  %v3961_v25 = vrot.slane %v3959_v52, 7 }
 0x33f   : > { %v5909_v60 = vld.sshfl [vmem:[#allocation3 + $0x8] sm:$0xf pattern:$0x76325410]  ;;  %v4726_v8 = vcombine.high %v5178_v32, %v5178_v32  ;;  %v4746_v62 = vrot.slane %v4744_v33, 6  ;;  %v4749_v1 = vrot.slane %v4747_v20, 7  ;;  %5468 = vmatprep.subr.bf16.mxu0 %v5929_v0 }
 0x340   : > { %v5179_v34 = vld.sshfl [vmem:[#allocation3 + $0xc] sm:$0x13 pattern:$0x76325410]  ;;  %v4758_v17 = vshrl.u32 %v5178_v32, 16  ;;  %v4761_v45 = vshll.u32 %v5178_v32, 16  ;;  %v3840_v26 = vcombine.low %v5908_v36, %v5909_v60  ;;  %v3962_v59 = vsel %vm6305_vm3, %v3957_v57, %v3961_v25 }
 0x341   : > { %v5180_v2 = vld.sshfl [vmem:[#allocation3 + $0x10] sm:$0x13 pattern:$0x76325410]  ;;  %v4750_v3 = vor.u32 %v4749_v1, %v4746_v62  ;;  %v4734_v47 = vcombine.high %v5179_v34, %v5179_v34  ;;  %v4772_v21 = vshrl.u32 %v5179_v34, 16  ;;  %v4753_v14 = vshll.u32 %v4718_v28, 16 }
 0x342   : > { %v4742_v9 = vcombine.high %v5180_v2, %v5180_v2  ;;  %v4760_v11 = vrot.slane %v4758_v17, 6  ;;  %v4763_v56 = vrot.slane %v4761_v45, 7  ;;  %v4767_v63 = vshll.u32 %v4726_v8, 16  ;;  %5469 = vmatpush3.bf16.msra.mxu0 %v5828_v61  ;;  %v5836_v20 = vld [vmem:[%s6881_s5 + $0x50] sm:$0xff]   ;;  %v5837_v60 = vld [vmem:[%s6881_s5 + $0x58] sm:$0xff]   ;;  %v5838_v8 = vld [vmem:[%s6881_s5 + $0x60] sm:$0xff]  }
 0x343   : > { %v4775_v18 = vshll.u32 %v5179_v34, 16  ;;  %v4774_v15 = vrot.slane %v4772_v21, 6  ;;  %v4786_v12 = vshrl.u32 %v5180_v2, 16  ;;  %v4789_v13 = vshll.u32 %v5180_v2, 16  ;;  %5470 = vmatprep.subr.bf16.mxu0 %v5929_v0  ;;  %v5839_v1 = vld [vmem:[%s6881_s5 + $0x68] sm:$0xff]   ;;  %v5840_v2 = vld [vmem:[%s6881_s5 + $0x70] sm:$0xff]  }
 0x344   : > { %v4751_v16 = vrot.slane %v4750_v3, 2  ;;  %v4764_v44 = vor.u32 %v4763_v56, %v4760_v11  ;;  %v4781_v23 = vshll.u32 %v4734_v47, 16  ;;  %v4795_v30 = vshll.u32 %v4742_v9, 16  ;;  %v5841_v3 = vld [vmem:[%s6881_s5 + $0x78] sm:$0xff]   ;;  %v5844_v45 = vld [vmem:[%s6881_s5 + $0x80] sm:$0xff]   ;;  %v5845_v9 = vld [vmem:[%s6881_s5 + $0x88] sm:$0xff]  }
 0x345   : > { %v4777_v19 = vrot.slane %v4775_v18, 7  ;;  %v4788_v5 = vrot.slane %v4786_v12, 6  ;;  %v4791_v29 = vrot.slane %v4789_v13, 7  ;;  %v4755_v43 = vrot.slane %v4753_v14, 7 }
 0x346   : > { %v4765_v31 = vrot.slane %v4764_v44, 2  ;;  %v4769_v37 = vrot.slane %v4767_v63, 7  ;;  %5471 = vmatpush3.bf16.msra.mxu0 %v5830_v7  ;;  %v4783_v48 = vrot.slane %v4781_v23, 7  ;;  %v4797_v49 = vrot.slane %v4795_v30, 7 }
 0x347   : > { %v4778_v35 = vor.u32 %v4777_v19, %v4774_v15  ;;  %v4792_v41 = vor.u32 %v4791_v29, %v4788_v5  ;;  %5476 = vmatprep.subr.bf16.mxu0 %v5929_v0  ;;  %v4756_v39 = vsel %vm6305_vm3, %v4751_v16, %v4755_v43  ;;  %v5910_v17 = vld.sshfl [vmem:[#allocation3 + $0x28] sm:$0xf pattern:$0x76325410]  ;;  %v4361_v14 = vshrl.u32 %v5159_v6, 16  ;;  %v5846_v15 = vld [vmem:[%s6881_s5 + $0x90] sm:$0xff]  }
 0x348   : > { %v4770_v42 = vsel %vm6305_vm3, %v4765_v31, %v4769_v37  ;;  %v4013_v32 = vcombine.low %v3962_v59, %v4756_v39  ;;  %v4132_v4 = vcombine.low %v5910_v17, %v5911_v24  ;;  %v5161_v47 = vld.sshfl [vmem:[#allocation3 + $0x34] sm:$0x13 pattern:$0x76325410]  ;;  %v4364_v56 = vshll.u32 %v5159_v6, 16  ;;  %v5847_v37 = vld [vmem:[%s6881_s5 + $0x98] sm:$0xff]  }
 0x349   : > { %v4779_v46 = vrot.slane %v4778_v35, 2  ;;  %v4793_v51 = vrot.slane %v4792_v41, 2  ;;  %v4807_v40 = vcombine.low %v4756_v39, %v4770_v42  ;;  %5473 = vmatmul.mubr.msk.bf16.vlgmr.msra.gmra.mrb[20].mxu0 %vm1608_vm12, %v3840_v26  ;;  %v5158_v11 = vld.sshfl [vmem:[#allocation3 + $0x28] sm:$0x13 pattern:$0x76325410]  ;;  %v4329_v43 = vcombine.high %v5159_v6, %v5159_v6 }
 0x34a   : > { %5477 = vmatpush3.bf16.msra.mxu0 %v5834_v38  ;;  %5484 = vmatprep.mubr.msk.bf16.mxu0 %vm5930_vm4, %v5929_v0  ;;  %v4021_v28 = vrot.slane %v4013_v32, %v6102_v22  ;;  %v5160_v21 = vld.sshfl [vmem:[#allocation3 + $0x30] sm:$0x13 pattern:$0x76325410]  ;;  %v4389_v63 = vshrl.u32 %v5161_v47, 16  ;;  %v4392_v18 = vshll.u32 %v5161_v47, 16  ;;  %v4345_v35 = vcombine.high %v5161_v47, %v5161_v47 }
 0x34b   : > { %v4784_v50 = vsel %vm6305_vm3, %v4779_v46, %v4783_v48  ;;  %v4798_v53 = vsel %vm6305_vm3, %v4793_v51, %v4797_v49  ;;  %v4815_v58 = vrot.slane %v4807_v40, %v6102_v22  ;;  %5478 = vmatprep.subr.bf16.mxu0 %v5929_v0  ;;  %v4347_v7 = vshrl.u32 %v5158_v11, 16  ;;  %v5912_v44 = vld.sshfl [vmem:[#allocation3 + $0x3c] sm:$0xf pattern:$0x76325410] }
 0x34c   : > { %v4808_v55 = vcombine.low %v4784_v50, %v4798_v53  ;;  %v4014_v36 = vcombine.low %v4770_v42, %v4784_v50  ;;  %v4350_v12 = vshll.u32 %v5158_v11, 16  ;;  %v4375_v13 = vshrl.u32 %v5160_v21, 16  ;;  %v5913_v19 = vld.sshfl [vmem:[#allocation3 + $0x44] sm:$0xf pattern:$0x76325410] }
 0x34d   : > { %v4378_v16 = vshll.u32 %v5160_v21, 16  ;;  %v4363_v23 = vrot.slane %v4361_v14, 6  ;;  %v4366_v5 = vrot.slane %v4364_v56, 7  ;;  %v4391_v29 = vrot.slane %v4389_v63, 6  ;;  %v5850_v46 = vld [vmem:[%s6881_s5 + $0xa0] sm:$0xff]   ;;  %v5857_v47 = vld [vmem:[%s6881_s5 + $0xd8] sm:$0xff]  }
 0x34e   : > { %v4822_v33 = vrot.slane %v4808_v55, %v6102_v22  ;;  %5479 = vmatpush3.bf16.msra.mxu0 %v5835_v54  ;;  %v4028_v34 = vrot.slane %v4014_v36, %v6102_v22  ;;  %v4394_v30 = vrot.slane %v4392_v18, 7  ;;  %v4349_v31 = vrot.slane %v4347_v7, 6  ;;  %v5851_v55 = vld [vmem:[%s6881_s5 + $0xa8] sm:$0xff]   ;;  %v5862_v14 = vld [vmem:[%s6881_s5 + $0xf0] sm:$0xff]   ;;  %v5863_v18 = vld [vmem:[%s6881_s5 + $0xf8] sm:$0xff]  }
 0x34f   : > { %5480 = vmatprep.subr.bf16.mxu0 %v5929_v0  ;;  %v4352_v38 = vrot.slane %v4350_v12, 7  ;;  %v4377_v41 = vrot.slane %v4375_v13, 6  ;;  %v4380_v27 = vrot.slane %v4378_v16, 7  ;;  %v4321_v52 = vcombine.high %v5158_v11, %v5158_v11 }
 0x350   : > { %v4823_v61 = vcombine.low %v4815_v58, %v4822_v33  ;;  %v4029_v62 = vcombine.low %v4021_v28, %v4028_v34  ;;  %v4337_v26 = vcombine.high %v5160_v21, %v5160_v21  ;;  %v4367_v39 = vor.u32 %v4366_v5, %v4363_v23  ;;  %v5852_v34 = vld [vmem:[%s6881_s5 + $0xb0] sm:$0xff]   ;;  %v5861_v21 = vld [vmem:[%s6881_s5 + $0xe8] sm:$0xff]   ;;  %v5916_v56 = vld.sshfl [vmem:[#allocation3 + $0x18] sm:$0xf pattern:$0x76325410] }
 0x351   : > { %v4395_v42 = vor.u32 %v4394_v30, %v4391_v29  ;;  %v4353_v48 = vor.u32 %v4352_v38, %v4349_v31  ;;  %v4370_v51 = vshll.u32 %v4329_v43, 16  ;;  %v4381_v49 = vor.u32 %v4380_v27, %v4377_v41  ;;  %v5915_v6 = vld.sshfl [vmem:[#allocation3 + $0xc] sm:$0xf pattern:$0x76325410] }
 0x352   : > { %5557 = vmatmul.mubr.msk.bf16.vlgmr.msra.gmra.mrb[8].mxu1 %vm1608_vm12, %v4823_v61  ;;  %5481 = vmatpush3.bf16.msra.mxu0 %v5836_v20  ;;  %v4398_v40 = vshll.u32 %v4345_v35, 16  ;;  %v4235_v50 = vcombine.low %v5912_v44, %v5913_v19  ;;  %v4356_v53 = vshll.u32 %v4321_v52, 16  ;;  %v4368_v54 = vrot.slane %v4367_v39, 2 }
 0x353   : > { %5482 = vmatprep.subr.bf16.mxu0 %v5929_v0  ;;  %v4384_v57 = vshll.u32 %v4337_v26, 16  ;;  %v4396_v25 = vrot.slane %v4395_v42, 2  ;;  %v4354_v58 = vrot.slane %v4353_v48, 2  ;;  %v4372_v33 = vrot.slane %v4370_v51, 7 }
 0x354   : > { %v4382_v20 = vrot.slane %v4381_v49, 2  ;;  %v4400_v59 = vrot.slane %v4398_v40, 7  ;;  %v4358_v61 = vrot.slane %v4356_v53, 7 }
 0x355   : > { %v4373_v36 = vsel %vm6305_vm3, %v4368_v54, %v4372_v33  ;;  %v4386_v32 = vrot.slane %v4384_v57, 7  ;;  %v5917_v63 = vld.sshfl [vmem:[#allocation3 + $0x20] sm:$0xf pattern:$0x76325410] }
 0x356   : > { %5483 = vmatpush3.bf16.msra.mxu0 %v5837_v60  ;;  %v4401_v60 = vsel %vm6305_vm3, %v4396_v25, %v4400_v59  ;;  %v4359_v28 = vsel %vm6305_vm3, %v4354_v58, %v4358_v61  ;;  %v4632_v7 = vcombine.low %v5916_v56, %v5917_v63 }
 0x357   : > { %5488 = vmatprep.subr.bf16.mxu0 %v5929_v0 }
 0x359   : > { %5485 = vmatmul.mubr.msk.bf16.vlgmr.msra.gmra.mrb[24].mxu0 %vm1608_vm12, %v4029_v62  ;;  %v4410_v62 = vcombine.low %v4359_v28, %v4373_v36 }
 0x35a   : > { %5489 = vmatpush3.bf16.msra.mxu0 %v5838_v8  ;;  %5496 = vmatprep.mubr.msk.bf16.mxu0 %vm5930_vm4, %v5929_v0  ;;  %v4387_v8 = vsel %vm6305_vm3, %v4382_v20, %v4386_v32 }
 0x35b   : > { %5490 = vmatprep.subr.bf16.mxu0 %v5929_v0  ;;  %v4418_v17 = vrot.slane %v4410_v62, %v6102_v22 }
 0x35e   : > { %5491 = vmatpush3.bf16.msra.mxu0 %v5839_v1  ;;  %v4411_v1 = vcombine.low %v4387_v8, %v4401_v60 }
 0x35f   : > { %5492 = vmatprep.subr.bf16.mxu0 %v5929_v0 }
 0x360   : > { %v4425_v24 = vrot.slane %v4411_v1, %v6102_v22  ;;  %v5856_v22 = vld [vmem:[%s6881_s5 + $0xd0] sm:$0xff]  }
 0x362   : > { %5493 = vmatpush3.bf16.msra.mxu0 %v5840_v2  ;;  %v5853_v2 = vld [vmem:[%s6881_s5 + $0xb8] sm:$0xff]  }
 0x363   : > { %5494 = vmatprep.subr.bf16.mxu0 %v5929_v0 }
 0x366   : > { %5495 = vmatpush3.bf16.msra.mxu0 %v5841_v3  ;;  %v4426_v3 = vcombine.low %v4418_v17, %v4425_v24  ;;  %v5186_v24 = vld [vmem:[%s6882_s6] ss:$0 sm:$0xff] }
 0x367   : > { %5500 = vmatprep.subr.bf16.mxu0 %v5929_v0 }
 0x369   : > { %5497 = vmatmul.mubr.msk.bf16.vlgmr.msra.gmra.mrb[28].mxu0 %vm1608_vm12, %v4132_v4  ;;  %v5914_v4 = vld.sshfl [vmem:[#allocation3 + $0x4] sm:$0xf pattern:$0x76325410] }
 0x36a   : > { %5501 = vmatpush3.bf16.msra.mxu0 %v5844_v45  ;;  %5508 = vmatprep.mubr.msk.bf16.mxu0 %vm5930_vm4, %v5929_v0  ;;  %v5855_v45 = vld [vmem:[%s6881_s5 + $0xc8] sm:$0xff]   ;;  %v4529_v11 = vcombine.low %v5914_v4, %v5915_v6 }
 0x36b   : > { %5502 = vmatprep.subr.bf16.mxu0 %v5929_v0 }
 0x36e   : > { %5503 = vmatpush3.bf16.msra.mxu0 %v5845_v9  ;;  %v5860_v9 = vld [vmem:[%s6881_s5 + $0xe0] sm:$0xff]  }
 0x36f   : > { %5504 = vmatprep.subr.bf16.mxu0 %v5929_v0 }
 0x372   : > { %5505 = vmatpush3.bf16.msra.mxu0 %v5846_v15 }
 0x373   : > { %5506 = vmatprep.subr.bf16.mxu0 %v5929_v0 }
 0x376   : > { %5507 = vmatpush3.bf16.msra.mxu0 %v5847_v37 }
 0x377   : > { %5512 = vmatprep.subr.bf16.mxu0 %v5929_v0 }
 0x379   : > { %5509 = vmatmul.mubr.msk.bf16.vlgmr.msra.gmra.mrb[32].mxu0 %vm1608_vm12, %v4235_v50 }
 0x37a   : > { %5513 = vmatpush3.bf16.msra.mxu0 %v5850_v46  ;;  %5520 = vmatprep.mubr.msk.bf16.mxu0 %vm5930_vm4, %v5929_v0 }
 0x37b   : > { %5514 = vmatprep.subr.bf16.mxu0 %v5929_v0 }
 0x37e   : > { %5515 = vmatpush3.bf16.msra.mxu0 %v5851_v55 }
 0x37f   : > { %5516 = vmatprep.subr.bf16.mxu0 %v5929_v0 }
 0x382   : > { %5517 = vmatpush3.bf16.msra.mxu0 %v5852_v34 }
 0x383   : > { %5518 = vmatprep.subr.bf16.mxu0 %v5929_v0 }
 0x386   : > { %5519 = vmatpush3.bf16.msra.mxu0 %v5853_v2 }
 0x387   : > { %5524 = vmatprep.subr.bf16.mxu0 %v5929_v0 }
 0x389   : > { %5521 = vmatmul.mubr.msk.bf16.vlgmr.msra.gmra.mrb[36].mxu0 %vm1608_vm12, %v4426_v3 }
 0x38a   : > { %5525 = vmatpush3.bf16.msra.mxu0 %v5854_v10  ;;  %5532 = vmatprep.mubr.msk.bf16.mxu0 %vm5930_vm4, %v5929_v0 }
 0x38b   : > { %5526 = vmatprep.subr.bf16.mxu0 %v5929_v0 }
 0x38e   : > { %5527 = vmatpush3.bf16.msra.mxu0 %v5855_v45 }
 0x38f   : > { %5528 = vmatprep.subr.bf16.mxu0 %v5929_v0 }
 0x392   : > { %5529 = vmatpush3.bf16.msra.mxu0 %v5856_v22 }
 0x393   : > { %5530 = vmatprep.subr.bf16.mxu0 %v5929_v0 }
 0x396   : > { %5531 = vmatpush3.bf16.msra.mxu0 %v5857_v47 }
 0x397   : > { %5536 = vmatprep.subr.bf16.mxu0 %v5929_v0 }
 0x399   : > { %5533 = vmatmul.mubr.msk.bf16.vlgmr.msra.gmra.mrb[40].mxu0 %vm1608_vm12, %v4529_v11 }
 0x39a   : > { %5537 = vmatpush3.bf16.msra.mxu0 %v5860_v9  ;;  %5544 = vmatprep.mubr.msk.bf16.mxu0 %vm5930_vm4, %v5929_v0 }
 0x39b   : > { %5538 = vmatprep.subr.bf16.mxu0 %v5929_v0 }
 0x39e   : > { %5539 = vmatpush3.bf16.msra.mxu0 %v5861_v21 }
 0x39f   : > { %5540 = vmatprep.subr.bf16.mxu0 %v5929_v0 }
 0x3a2   : > { %5541 = vmatpush3.bf16.msra.mxu0 %v5862_v14 }
 0x3a3   : > { %5542 = vmatprep.subr.bf16.mxu0 %v5929_v0 }
 0x3a6   : > { %5543 = vmatpush3.bf16.msra.mxu0 %v5863_v18 }
 0x3a9   : > { %5545 = vmatmul.mubr.msk.bf16.vlgmr.msra.gmra.mrb[44].mxu0 %vm1608_vm12, %v4632_v7 }
 0x40c   : > { %v3813_v15 = vpop.f32.mrb[16].mxu0 }
 0x40d   : > { %v5462_v12 = vpop.f32.mrb[17].mxu0 }
 0x40e   : > { %v3816_v13 = vpop.f32.mrb[18].mxu0 }
 0x40f   : > { %v5463_v16 = vpop.f32.mrb[19].mxu0 }
 0x41c   : > { %v3902_v44 = vpop.f32.mrb[20].mxu0 }
 0x41d   : > { %v3903_v19 = vadd.f32 %v3902_v44, %v3813_v15  ;;  %v5474_v23 = vpop.f32.mrb[21].mxu0 }
 0x41e   : > { %v3905_v5 = vpop.f32.mrb[22].mxu0 }
 0x41f   : > { %v3906_v29 = vadd.f32 %v3905_v5, %v3816_v13  ;;  %v5475_v30 = vpop.f32.mrb[23].mxu0 }
 0x425   : > { %v4885_v43 = vpop.f32.mrb[8].mxu1 }
 0x426   : > { %v5558_v31 = vpop.f32.mrb[9].mxu1 }
 0x427   : > { %v4888_v37 = vpop.f32.mrb[10].mxu1 }
 0x428   : > { %v5559_v35 = vpop.f32.mrb[11].mxu1 }
 0x42c   : > { %v4091_v38 = vpop.f32.mrb[24].mxu0 }
 0x42d   : > { %v4098_v0 = vadd.f32 %v4091_v38, %v3903_v19  ;;  %v5486_v41 = vpop.f32.mrb[25].mxu0 }
 0x42e   : > { %v4094_v27 = vpop.f32.mrb[26].mxu0 }
 0x42f   : > { %v4099_v52 = vadd.f32 %v4094_v27, %v3906_v29  ;;  %v5487_v26 = vpop.f32.mrb[27].mxu0 }
 0x43c   : > { %v4194_v39 = vpop.f32.mrb[28].mxu0 }
 0x43d   : > { %v4201_v42 = vadd.f32 %v4194_v39, %v4098_v0  ;;  %v5498_v46 = vpop.f32.mrb[29].mxu0 }
 0x43e   : > { %v4197_v48 = vpop.f32.mrb[30].mxu0 }
 0x43f   : > { %v4202_v51 = vadd.f32 %v4197_v48, %v4099_v52  ;;  %v5499_v49 = vpop.f32.mrb[31].mxu0 }
 0x44c   : > { %v4297_v40 = vpop.f32.mrb[32].mxu0 }
 0x44d   : > { %v4304_v50 = vadd.f32 %v4297_v40, %v4201_v42  ;;  %v5510_v53 = vpop.f32.mrb[33].mxu0 }
 0x44e   : > { %v4300_v54 = vpop.f32.mrb[34].mxu0 }
 0x44f   : > { %v4305_v57 = vadd.f32 %v4300_v54, %v4202_v51  ;;  %v5511_v25 = vpop.f32.mrb[35].mxu0 }
 0x45c   : > { %v4488_v55 = vpop.f32.mrb[36].mxu0 }
 0x45d   : > { %v4495_v58 = vadd.f32 %v4488_v55, %v4304_v50  ;;  %v5522_v33 = vpop.f32.mrb[37].mxu0 }
 0x45e   : > { %v4491_v20 = vpop.f32.mrb[38].mxu0 }
 0x45f   : > { %v4496_v59 = vadd.f32 %v4491_v20, %v4305_v57  ;;  %v5523_v61 = vpop.f32.mrb[39].mxu0 }
 0x46c   : > { %v4591_v36 = vpop.f32.mrb[40].mxu0 }
 0x46d   : > { %v4598_v32 = vadd.f32 %v4591_v36, %v4495_v58  ;;  %v5534_v60 = vpop.f32.mrb[41].mxu0 }
 0x46e   : > { %v4594_v34 = vpop.f32.mrb[42].mxu0 }
 0x46f   : > { %v4599_v28 = vadd.f32 %v4594_v34, %v4496_v59  ;;  %v5535_v8 = vpop.f32.mrb[43].mxu0 }
 0x47c   : > { %v4694_v62 = vpop.f32.mrb[44].mxu0 }
 0x47d   : > { %v4701_v1 = vadd.f32 %v4694_v62, %v4598_v32  ;;  %v5546_v2 = vpop.f32.mrb[45].mxu0 }
 0x47e   : > { %v4697_v17 = vpop.f32.mrb[46].mxu0 }
 0x47f   : > { %v4892_v10 = vadd.f32 %v4885_v43, %v4701_v1  ;;  %v4702_v3 = vadd.f32 %v4697_v17, %v4599_v28  ;;  %v5547_v45 = vpop.f32.mrb[47].mxu0 }
 0x481   : > { %v4893_v22 = vadd.f32 %v4888_v37, %v4702_v3  ;;  %v4901_v4 = vadd.f32 %v5186_v24, %v4892_v10 }
 0x483   : > { %v4902_v6 = vadd.f32 %v5186_v24, %v4893_v22  ;;  %v4903_v47 = vmax.f32 %v4901_v4, 0.0 }
 0x485   : > { %4905 = vxpose.xlu1.b32.start [1/2] (short) (narrow) %v4903_v47, 32  ;;  %v4904_v9 = vmax.f32 %v4902_v6, 0.0 }
 0x489   : > { %4906 = vxpose.xlu1.b32.end [2/2] (short) (narrow) %v4904_v9, 32 }
 0x505   : > { %v4921_v11 = vpop.trf.xlu1 }
 0x506   : > { %4938 = vst.msk [vmem:[%s278_s14] sm:$0xff] %vm4937_vm5, %v4921_v11 }
 0x509   : > { %v4922_v21 = vpop.trf.xlu1 }
 0x50a   : > { %4939 = vst.msk [vmem:[%s278_s14 + $0x8] sm:$0xff] %vm4937_vm5, %v4922_v21 }
 0x50d   : > { %v4923_v14 = vpop.trf.xlu1 }
 0x50e   : > { %4940 = vst.msk [vmem:[%s278_s14 + $0x10] sm:$0xff] %vm4937_vm5, %v4923_v14 }
 0x511   : > { %v4924_v56 = vpop.trf.xlu1 }
 0x512   : > { %4941 = vst.msk [vmem:[%s278_s14 + $0x18] sm:$0xff] %vm4937_vm5, %v4924_v56 }
 0x513 PF: > { %s17_s24 = sadd.s32 1, %s5924_s24  }
 0x514   : > { %p14_p4 = scmp.ge.s32.totalorder %s17_s24, 4  }
 0x516   :  { %16 = sbr.rel (!%p14_p4) target bundleno = 1 (0x1), region = 102 }

</bundles_post_ra>
